<compile_context>
chip_gen: v7x
topology: tpu7x:2x2x1
jax: 0.10.0
libtpu: 0.0.40
codegen_flags: <defaults>
</compile_context>

<pallas_src>
import functools

import jax
import jax.numpy as jnp
import numpy as np
from jax import lax
from jax.experimental import pallas as pl
from jax.experimental.pallas import tpu as pltpu


def _round_up(v, m):
    return (v + m - 1) // m * m


# ----------------------------------------------------------------------------
# In-kernel helpers
# ----------------------------------------------------------------------------
def _conv3x3_acc(pad_ref, w_ref, h_out, w_out, stride, acc):
    """3x3 conv as 9 shifted-view matmuls accumulated in f32.

    pad_ref : (Hp, Wp, Cin) zero-padded activation scratch in VMEM (f32).
    w_ref   : (9, Cin, Co) bf16 weights, tap order (kh, kw) row-major.
    acc     : f32 init broadcastable against (h_out*w_out, Co) (e.g. a (1, Co) bias).
    returns : (h_out * w_out, Co) f32.
    """
    tap = 0
    for kh in range(3):
        for kw in range(3):
            if stride == 1:
                v = pad_ref[kh:kh + h_out, kw:kw + w_out, :]
            else:
                v = pad_ref[pl.ds(kh, h_out, stride), pl.ds(kw, w_out, stride), :]
            v = v.reshape(h_out * w_out, v.shape[-1]).astype(jnp.bfloat16)
            acc = acc + jnp.dot(v, w_ref[tap], preferred_element_type=jnp.float32)
            tap += 1
    return acc


def residual_conv_kernel(x_ref, s1_ref, h1_ref, w1_ref, b1_ref,
                         w2_ref, ws_ref, bc_ref, o_ref,
                         pad1_ref, pads_ref, pad2_ref, *,
                         h, w, h_out, w_out, stride, padding, cout, cout_pad):
    x = x_ref[0]                                            # (H, W, Cin) f32

    # --- skip branch input: raw x, zero pad 1 (conv_skip: k=3, padding=1)
    pads_ref[...] = jnp.zeros_like(pads_ref)
    pads_ref[1:1 + h, 1:1 + w, :] = x

    # --- main branch stage 1: BN1 + ReLU, zero pad `padding` (conv1 padding)
    pad1_ref[...] = jnp.zeros_like(pad1_ref)
    pad1_ref[padding:padding + h, padding:padding + w, :] = jnp.maximum(
        x * s1_ref[...] + h1_ref[...], 0.0)

    # --- conv1 (BN2 scale folded into w1', conv1 bias + BN2 shift in b1') + ReLU
    y1 = _conv3x3_acc(pad1_ref, w1_ref, h_out, w_out, stride, b1_ref[...])
    y1 = jnp.maximum(y1, 0.0)                               # (h_out*w_out, Co) f32

    # --- conv2 input: y1 zero-padded (k=3, stride 1, padding 1); stays in VMEM
    pad2_ref[...] = jnp.zeros_like(pad2_ref)
    pad2_ref[1:1 + h_out, 1:1 + w_out, :] = y1.reshape(h_out, w_out, cout)

    # --- conv_skip (BN3 folded) with the combined bias, conv2 accumulated on top
    out = _conv3x3_acc(pads_ref, ws_ref, h_out, w_out, stride, bc_ref[...])
    out = _conv3x3_acc(pad2_ref, w2_ref, h_out, w_out, 1, out)

    o_ref[0] = out.reshape(h_out, w_out, cout_pad)


# ----------------------------------------------------------------------------
# Host-side parameter folding
# ----------------------------------------------------------------------------
def _bn_fold(gamma, beta, mean, var, eps=1e-5):
    scale = gamma / jnp.sqrt(var + eps)
    return scale, beta - mean * scale


def _w_to_taps(w_oihw, cout_pad):
    """PyTorch (Co, Ci, 3, 3) -> (9, Ci, cout_pad) bf16, tap order (kh, kw)."""
    co, ci = w_oihw.shape[0], w_oihw.shape[1]
    t = jnp.transpose(w_oihw, (2, 3, 1, 0)).reshape(9, ci, co)
    if cout_pad > co:
        t = jnp.pad(t, ((0, 0), (0, 0), (0, cout_pad - co)))
    return t.astype(jnp.bfloat16)


def _fold_params(params, cout_pad):
    s1, h1 = _bn_fold(*params["bn1"])
    s2, h2 = _bn_fold(*params["bn2"])
    s3, h3 = _bn_fold(*params["bn3"])
    co, ci = params["w1"].shape[0], params["w1"].shape[1]
    # conv1 fused with BN2:  relu(s2*(W1*a + b1) + h2) = relu(W1'*a + b1')
    w1 = params["w1"] * s2[:, None, None, None]
    b1 = s2 * params["b1"] + h2
    # conv_skip fused with BN3, plus the combined constant of the residual sum
    ws = params["ws"] * s3[:, None, None, None]
    bc = params["b2"] + s3 * params["bs"] + h3
    return dict(
        s1=s1.reshape(1, ci).astype(jnp.float32),
        h1=h1.reshape(1, ci).astype(jnp.float32),
        w1=_w_to_taps(w1, co),                      # (9, Ci, Co)      bf16
        b1=b1.reshape(1, co).astype(jnp.float32),
        w2=_w_to_taps(params["w2"], cout_pad),      # (9, Co, Co_pad)  bf16
        ws=_w_to_taps(ws, cout_pad),                # (9, Ci, Co_pad)  bf16
        bc=jnp.pad(bc, (0, cout_pad - co)).reshape(1, cout_pad).astype(jnp.float32),
    )


# ----------------------------------------------------------------------------
# Forward wrapper
# ----------------------------------------------------------------------------
def residual_conv_forward(x_nchw, params, stride, padding):
    """Pallas forward of ResidualConv. Input/output in NCHW (PyTorch layout)."""
    n, ci, h, w = x_nchw.shape
    co = params["w1"].shape[0]
    co_pad = _round_up(co, 128)                     # lane-dense output channels
    h_out = (h + 2 * padding - 3) // stride + 1
    w_out = (w + 2 * padding - 3) // stride + 1
    hs_out = (h + 2 - 3) // stride + 1
    ws_out = (w + 2 - 3) // stride + 1
    assert (hs_out, ws_out) == (h_out, w_out), \
        "conv_block and conv_skip must produce matching spatial shapes"

    x = jnp.transpose(x_nchw, (0, 2, 3, 1)).astype(jnp.float32)   # NCHW -> NHWC
    f = _fold_params(params, co_pad)

    kernel = functools.partial(
        residual_conv_kernel,
        h=h, w=w, h_out=h_out, w_out=w_out,
        stride=stride, padding=padding, cout=co, cout_pad=co_pad)

    m = h_out * w_out
    cost = pl.CostEstimate(
        flops=2 * n * m * 9 * (ci * co + co * co + ci * co),
        transcendentals=0,
        bytes_accessed=int(
            n * h * w * ci * 4
            + sum(int(np.prod(a.shape)) * a.dtype.itemsize for a in f.values())
            + n * m * co_pad * 4),
    )

    out = pl.pallas_call(
        kernel,
        out_shape=jax.ShapeDtypeStruct((n, h_out, w_out, co_pad), jnp.float32),
        grid=(n,),
        in_specs=[
            pl.BlockSpec((1, h, w, ci), lambda b: (b, 0, 0, 0)),   # x (one image)
            pl.BlockSpec((1, ci), lambda b: (0, 0)),               # BN1 scale
            pl.BlockSpec((1, ci), lambda b: (0, 0)),               # BN1 shift
            pl.BlockSpec((9, ci, co), lambda b: (0, 0, 0)),        # w1' (bf16)
            pl.BlockSpec((1, co), lambda b: (0, 0)),               # b1'
            pl.BlockSpec((9, co, co_pad), lambda b: (0, 0, 0)),    # w2  (bf16)
            pl.BlockSpec((9, ci, co_pad), lambda b: (0, 0, 0)),    # ws' (bf16)
            pl.BlockSpec((1, co_pad), lambda b: (0, 0)),           # combined bias
        ],
        out_specs=pl.BlockSpec((1, h_out, w_out, co_pad), lambda b: (b, 0, 0, 0)),
        scratch_shapes=[
            pltpu.VMEM((h + 2 * padding, w + 2 * padding, ci), jnp.float32),  # bn1(x) padded
            pltpu.VMEM((h + 2, w + 2, ci), jnp.float32),                      # raw x padded
            pltpu.VMEM((h_out + 2, w_out + 2, co), jnp.float32),              # y1 padded
        ],
        compiler_params=pltpu.CompilerParams(
            dimension_semantics=("parallel",),
            vmem_limit_bytes=32 * 1024 * 1024,
        ),
        cost_estimate=cost,
    )(x, f["s1"], f["h1"], f["w1"], f["b1"], f["w2"], f["ws"], f["bc"])

    # TODO(synk): for large H*W, row-tile the spatial dim with a 2-row halo
    # (manual make_async_copy / pl.Element index maps) so each block stays within
    # the v7x 32 MiB scoped-VMEM budget instead of one whole image per grid step.
    out = out[..., :co]                             # drop lane padding
    return jnp.transpose(out, (0, 3, 1, 2))         # NHWC -> NCHW


# ----------------------------------------------------------------------------
# Pure-JAX reference (f32) for correctness check
# ----------------------------------------------------------------------------
def _conv_ref(x_nhwc, w_oihw, b, stride, padding):
    w_hwio = jnp.transpose(w_oihw, (2, 3, 1, 0))
    y = lax.conv_general_dilated(
        x_nhwc, w_hwio, window_strides=(stride, stride),
        padding=[(padding, padding), (padding, padding)],
        dimension_numbers=("NHWC", "HWIO", "NHWC"))
    return y + b.reshape(1, 1, 1, -1)


def residual_conv_reference(x_nchw, params, stride, padding):
    x = jnp.transpose(x_nchw, (0, 2, 3, 1)).astype(jnp.float32)
    s1, h1 = _bn_fold(*params["bn1"])
    s2, h2 = _bn_fold(*params["bn2"])
    s3, h3 = _bn_fold(*params["bn3"])
    y = jnp.maximum(x * s1 + h1, 0.0)
    y = _conv_ref(y, params["w1"], params["b1"], stride, padding)
    y = jnp.maximum(y * s2 + h2, 0.0)
    y = _conv_ref(y, params["w2"], params["b2"], 1, 1)
    skip = _conv_ref(x, params["ws"], params["bs"], stride, 1)
    skip = skip * s3 + h3
    return jnp.transpose(y + skip, (0, 3, 1, 2))


# ----------------------------------------------------------------------------
# Deterministic parameter init + run
# ----------------------------------------------------------------------------
def make_params(key, input_dim, output_dim):
    ks = jax.random.split(key, 12)

    def bn(kg, kb, km, kv, c):
        gamma = 0.5 + jax.random.uniform(kg, (c,), jnp.float32)
        beta = 0.1 * jax.random.normal(kb, (c,), jnp.float32)
        mean = 0.1 * jax.random.normal(km, (c,), jnp.float32)
        var = 0.5 + jax.random.uniform(kv, (c,), jnp.float32)
        return gamma, beta, mean, var

    return {
        "bn1": bn(ks[0], ks[1], ks[2], ks[3], input_dim),
        "w1": 0.1 * jax.random.normal(ks[4], (output_dim, input_dim, 3, 3), jnp.float32),
        "b1": 0.05 * jax.random.normal(ks[5], (output_dim,), jnp.float32),
        "bn2": bn(ks[6], ks[7], ks[0], ks[1], output_dim),
        "w2": 0.1 * jax.random.normal(ks[8], (output_dim, output_dim, 3, 3), jnp.float32),
        "b2": 0.05 * jax.random.normal(ks[9], (output_dim,), jnp.float32),
        "ws": 0.1 * jax.random.normal(ks[10], (output_dim, input_dim, 3, 3), jnp.float32),
        "bs": 0.05 * jax.random.normal(ks[11], (output_dim,), jnp.float32),
        "bn3": bn(ks[2], ks[3], ks[4], ks[5], output_dim),
    }


if __name__ == "__main__":
    INPUT_DIM, OUTPUT_DIM = 4, 8
    STRIDE, PADDING = 1, 1
    N, H, W = 2, 16, 16

    key = jax.random.PRNGKey(0)
    kx, kp = jax.random.split(key)
    x = jax.random.normal(kx, (N, INPUT_DIM, H, W), jnp.float32)  # NCHW like PyTorch
    params = make_params(kp, INPUT_DIM, OUTPUT_DIM)

    fwd = jax.jit(functools.partial(residual_conv_forward,
                                    stride=STRIDE, padding=PADDING))
    out = fwd(x, params)
    jax.block_until_ready(out)

    ref = residual_conv_reference(x, params, STRIDE, PADDING)
    # Kernel feeds bf16 operands to the MXU (f32 accumulate); tolerance reflects that.
    np.testing.assert_allclose(np.asarray(out), np.asarray(ref),
                               rtol=2e-2, atol=2e-2)
    print("KERNEL_OK")
</pallas_src>

<mosaic_0001>
module attributes {stable_mosaic.version = 11 : i64} {
  func.func @residual_conv_kernel(%arg0: i32, %arg1: memref<1x16x16x4xf32, #tpu.memory_space<vmem>>, %arg2: memref<1x4xf32, #tpu.memory_space<vmem>>, %arg3: memref<1x4xf32, #tpu.memory_space<vmem>>, %arg4: memref<9x4x8xbf16, #tpu.memory_space<vmem>>, %arg5: memref<1x8xf32, #tpu.memory_space<vmem>>, %arg6: memref<9x8x128xbf16, #tpu.memory_space<vmem>>, %arg7: memref<9x4x128xbf16, #tpu.memory_space<vmem>>, %arg8: memref<1x128xf32, #tpu.memory_space<vmem>>, %arg9: memref<1x16x16x128xf32, #tpu.memory_space<vmem>>, %arg10: memref<18x18x4xf32, #tpu.memory_space<vmem>>, %arg11: memref<18x18x4xf32, #tpu.memory_space<vmem>>, %arg12: memref<18x18x8xf32, #tpu.memory_space<vmem>>) attributes {dimension_semantics = [#tpu.dimension_semantics<parallel>], iteration_bounds = array<i64: 2>, scalar_prefetch = 0 : i64, scratch_operands = 3 : i64, tpu.core_type = #tpu.core_type<tc>, window_params = [{transform_indices = @transform_0, window_bounds = array<i64: 1, 16, 16, 4>}, {pipeline_mode = #tpu.pipeline_mode<synchronous>, transform_indices = @transform_1, window_bounds = array<i64: 1, 4>}, {pipeline_mode = #tpu.pipeline_mode<synchronous>, transform_indices = @transform_2, window_bounds = array<i64: 1, 4>}, {pipeline_mode = #tpu.pipeline_mode<synchronous>, transform_indices = @transform_3, window_bounds = array<i64: 9, 4, 8>}, {pipeline_mode = #tpu.pipeline_mode<synchronous>, transform_indices = @transform_4, window_bounds = array<i64: 1, 8>}, {pipeline_mode = #tpu.pipeline_mode<synchronous>, transform_indices = @transform_5, window_bounds = array<i64: 9, 8, 128>}, {pipeline_mode = #tpu.pipeline_mode<synchronous>, transform_indices = @transform_6, window_bounds = array<i64: 9, 4, 128>}, {pipeline_mode = #tpu.pipeline_mode<synchronous>, transform_indices = @transform_7, window_bounds = array<i64: 1, 128>}, {transform_indices = @transform_8, window_bounds = array<i64: 1, 16, 16, 128>}]} {
    %c0 = arith.constant 0 : index
    %c0_0 = arith.constant 0 : index
    %c0_1 = arith.constant 0 : index
    %c0_2 = arith.constant 0 : index
    %0 = vector.load %arg1[%c0, %c0_0, %c0_1, %c0_2] : memref<1x16x16x4xf32, #tpu.memory_space<vmem>>, vector<1x16x16x4xf32>
    %1 = vector.shape_cast %0 : vector<1x16x16x4xf32> to vector<16x16x4xf32>
    %cst = arith.constant 0.000000e+00 : f32
    %2 = vector.broadcast %cst : f32 to vector<18x18x4xf32>
    %c0_3 = arith.constant 0 : index
    %c0_4 = arith.constant 0 : index
    %c0_5 = arith.constant 0 : index
    %3 = vector.load %arg11[%c0_3, %c0_4, %c0_5] : memref<18x18x4xf32, #tpu.memory_space<vmem>>, vector<18x18x4xf32>
    tpu.vector_store %arg11[%c0_3, %c0_4, %c0_5], %2 {strides = array<i32>} : memref<18x18x4xf32, #tpu.memory_space<vmem>>, vector<18x18x4xf32>,
    %c1 = arith.constant 1 : index
    %c1_6 = arith.constant 1 : index
    %c0_7 = arith.constant 0 : index
    %4 = vector.load %arg11[%c1, %c1_6, %c0_7] : memref<18x18x4xf32, #tpu.memory_space<vmem>>, vector<16x16x4xf32>
    tpu.vector_store %arg11[%c1, %c1_6, %c0_7], %1 {strides = array<i32>} : memref<18x18x4xf32, #tpu.memory_space<vmem>>, vector<16x16x4xf32>,
    %cst_8 = arith.constant 0.000000e+00 : f32
    %5 = vector.broadcast %cst_8 : f32 to vector<18x18x4xf32>
    %c0_9 = arith.constant 0 : index
    %c0_10 = arith.constant 0 : index
    %c0_11 = arith.constant 0 : index
    %6 = vector.load %arg10[%c0_9, %c0_10, %c0_11] : memref<18x18x4xf32, #tpu.memory_space<vmem>>, vector<18x18x4xf32>
    tpu.vector_store %arg10[%c0_9, %c0_10, %c0_11], %5 {strides = array<i32>} : memref<18x18x4xf32, #tpu.memory_space<vmem>>, vector<18x18x4xf32>,
    %c0_12 = arith.constant 0 : index
    %c0_13 = arith.constant 0 : index
    %7 = vector.load %arg2[%c0_12, %c0_13] : memref<1x4xf32, #tpu.memory_space<vmem>>, vector<1x4xf32>
    %8 = vector.shape_cast %7 : vector<1x4xf32> to vector<1x1x4xf32>
    %9 = vector.broadcast %8 : vector<1x1x4xf32> to vector<16x16x4xf32>
    %10 = arith.mulf %1, %9 : vector<16x16x4xf32>
    %c0_14 = arith.constant 0 : index
    %c0_15 = arith.constant 0 : index
    %11 = vector.load %arg3[%c0_14, %c0_15] : memref<1x4xf32, #tpu.memory_space<vmem>>, vector<1x4xf32>
    %12 = vector.shape_cast %11 : vector<1x4xf32> to vector<1x1x4xf32>
    %13 = vector.broadcast %12 : vector<1x1x4xf32> to vector<16x16x4xf32>
    %14 = arith.addf %10, %13 : vector<16x16x4xf32>
    %cst_16 = arith.constant 0.000000e+00 : f32
    %15 = vector.broadcast %cst_16 : f32 to vector<16x16x4xf32>
    %16 = arith.maximumf %14, %15 : vector<16x16x4xf32>
    %c1_17 = arith.constant 1 : index
    %c1_18 = arith.constant 1 : index
    %c0_19 = arith.constant 0 : index
    %17 = vector.load %arg10[%c1_17, %c1_18, %c0_19] : memref<18x18x4xf32, #tpu.memory_space<vmem>>, vector<16x16x4xf32>
    tpu.vector_store %arg10[%c1_17, %c1_18, %c0_19], %16 {strides = array<i32>} : memref<18x18x4xf32, #tpu.memory_space<vmem>>, vector<16x16x4xf32>,
    %c0_20 = arith.constant 0 : index
    %c0_21 = arith.constant 0 : index
    %18 = vector.load %arg5[%c0_20, %c0_21] : memref<1x8xf32, #tpu.memory_space<vmem>>, vector<1x8xf32>
    %c0_22 = arith.constant 0 : index
    %c0_23 = arith.constant 0 : index
    %c0_24 = arith.constant 0 : index
    %19 = vector.load %arg10[%c0_22, %c0_23, %c0_24] : memref<18x18x4xf32, #tpu.memory_space<vmem>>, vector<16x16x4xf32>
    %20 = vector.shape_cast %19 : vector<16x16x4xf32> to vector<256x4xf32>
    %21 = arith.truncf %20 : vector<256x4xf32> to vector<256x4xbf16>
    %c0_25 = arith.constant 0 : index
    %c0_26 = arith.constant 0 : index
    %c0_27 = arith.constant 0 : index
    %22 = vector.load %arg4[%c0_25, %c0_26, %c0_27] : memref<9x4x8xbf16, #tpu.memory_space<vmem>>, vector<1x4x8xbf16>
    %23 = vector.shape_cast %22 : vector<1x4x8xbf16> to vector<4x8xbf16>
    %cst_28 = arith.constant dense<0.000000e+00> : vector<256x8xf32>
    %24 = tpu.matmul %21, %23, %cst_28 {dimension_numbers = #tpu.dot_dimension_numbers<[1], [0], [0], [1], [0, 0, 1, 1], [], []>} : vector<256x4xbf16>, vector<4x8xbf16>, vector<256x8xf32> -> vector<256x8xf32>
    %25 = vector.broadcast %18 : vector<1x8xf32> to vector<256x8xf32>
    %26 = arith.addf %25, %24 : vector<256x8xf32>
    %c0_29 = arith.constant 0 : index
    %c1_30 = arith.constant 1 : index
    %c0_31 = arith.constant 0 : index
    %27 = vector.load %arg10[%c0_29, %c1_30, %c0_31] : memref<18x18x4xf32, #tpu.memory_space<vmem>>, vector<16x16x4xf32>
    %28 = vector.shape_cast %27 : vector<16x16x4xf32> to vector<256x4xf32>
    %29 = arith.truncf %28 : vector<256x4xf32> to vector<256x4xbf16>
    %c1_32 = arith.constant 1 : index
    %c0_33 = arith.constant 0 : index
    %c0_34 = arith.constant 0 : index
    %30 = vector.load %arg4[%c1_32, %c0_33, %c0_34] : memref<9x4x8xbf16, #tpu.memory_space<vmem>>, vector<1x4x8xbf16>
    %31 = vector.shape_cast %30 : vector<1x4x8xbf16> to vector<4x8xbf16>
    %cst_35 = arith.constant dense<0.000000e+00> : vector<256x8xf32>
    %32 = tpu.matmul %29, %31, %cst_35 {dimension_numbers = #tpu.dot_dimension_numbers<[1], [0], [0], [1], [0, 0, 1, 1], [], []>} : vector<256x4xbf16>, vector<4x8xbf16>, vector<256x8xf32> -> vector<256x8xf32>
    %33 = arith.addf %26, %32 : vector<256x8xf32>
    %c0_36 = arith.constant 0 : index
    %c2 = arith.constant 2 : index
    %c0_37 = arith.constant 0 : index
    %34 = vector.load %arg10[%c0_36, %c2, %c0_37] : memref<18x18x4xf32, #tpu.memory_space<vmem>>, vector<16x16x4xf32>
    %35 = vector.shape_cast %34 : vector<16x16x4xf32> to vector<256x4xf32>
    %36 = arith.truncf %35 : vector<256x4xf32> to vector<256x4xbf16>
    %c2_38 = arith.constant 2 : index
    %c0_39 = arith.constant 0 : index
    %c0_40 = arith.constant 0 : index
    %37 = vector.load %arg4[%c2_38, %c0_39, %c0_40] : memref<9x4x8xbf16, #tpu.memory_space<vmem>>, vector<1x4x8xbf16>
    %38 = vector.shape_cast %37 : vector<1x4x8xbf16> to vector<4x8xbf16>
    %cst_41 = arith.constant dense<0.000000e+00> : vector<256x8xf32>
    %39 = tpu.matmul %36, %38, %cst_41 {dimension_numbers = #tpu.dot_dimension_numbers<[1], [0], [0], [1], [0, 0, 1, 1], [], []>} : vector<256x4xbf16>, vector<4x8xbf16>, vector<256x8xf32> -> vector<256x8xf32>
    %40 = arith.addf %33, %39 : vector<256x8xf32>
    %c1_42 = arith.constant 1 : index
    %c0_43 = arith.constant 0 : index
    %c0_44 = arith.constant 0 : index
    %41 = vector.load %arg10[%c1_42, %c0_43, %c0_44] : memref<18x18x4xf32, #tpu.memory_space<vmem>>, vector<16x16x4xf32>
    %42 = vector.shape_cast %41 : vector<16x16x4xf32> to vector<256x4xf32>
    %43 = arith.truncf %42 : vector<256x4xf32> to vector<256x4xbf16>
    %c3 = arith.constant 3 : index
    %c0_45 = arith.constant 0 : index
    %c0_46 = arith.constant 0 : index
    %44 = vector.load %arg4[%c3, %c0_45, %c0_46] : memref<9x4x8xbf16, #tpu.memory_space<vmem>>, vector<1x4x8xbf16>
    %45 = vector.shape_cast %44 : vector<1x4x8xbf16> to vector<4x8xbf16>
    %cst_47 = arith.constant dense<0.000000e+00> : vector<256x8xf32>
    %46 = tpu.matmul %43, %45, %cst_47 {dimension_numbers = #tpu.dot_dimension_numbers<[1], [0], [0], [1], [0, 0, 1, 1], [], []>} : vector<256x4xbf16>, vector<4x8xbf16>, vector<256x8xf32> -> vector<256x8xf32>
    %47 = arith.addf %40, %46 : vector<256x8xf32>
    %c1_48 = arith.constant 1 : index
    %c1_49 = arith.constant 1 : index
    %c0_50 = arith.constant 0 : index
    %48 = vector.load %arg10[%c1_48, %c1_49, %c0_50] : memref<18x18x4xf32, #tpu.memory_space<vmem>>, vector<16x16x4xf32>
    %49 = vector.shape_cast %48 : vector<16x16x4xf32> to vector<256x4xf32>
    %50 = arith.truncf %49 : vector<256x4xf32> to vector<256x4xbf16>
    %c4 = arith.constant 4 : index
    %c0_51 = arith.constant 0 : index
    %c0_52 = arith.constant 0 : index
    %51 = vector.load %arg4[%c4, %c0_51, %c0_52] : memref<9x4x8xbf16, #tpu.memory_space<vmem>>, vector<1x4x8xbf16>
    %52 = vector.shape_cast %51 : vector<1x4x8xbf16> to vector<4x8xbf16>
    %cst_53 = arith.constant dense<0.000000e+00> : vector<256x8xf32>
    %53 = tpu.matmul %50, %52, %cst_53 {dimension_numbers = #tpu.dot_dimension_numbers<[1], [0], [0], [1], [0, 0, 1, 1], [], []>} : vector<256x4xbf16>, vector<4x8xbf16>, vector<256x8xf32> -> vector<256x8xf32>
    %54 = arith.addf %47, %53 : vector<256x8xf32>
    %c1_54 = arith.constant 1 : index
    %c2_55 = arith.constant 2 : index
    %c0_56 = arith.constant 0 : index
    %55 = vector.load %arg10[%c1_54, %c2_55, %c0_56] : memref<18x18x4xf32, #tpu.memory_space<vmem>>, vector<16x16x4xf32>
    %56 = vector.shape_cast %55 : vector<16x16x4xf32> to vector<256x4xf32>
    %57 = arith.truncf %56 : vector<256x4xf32> to vector<256x4xbf16>
    %c5 = arith.constant 5 : index
    %c0_57 = arith.constant 0 : index
    %c0_58 = arith.constant 0 : index
    %58 = vector.load %arg4[%c5, %c0_57, %c0_58] : memref<9x4x8xbf16, #tpu.memory_space<vmem>>, vector<1x4x8xbf16>
    %59 = vector.shape_cast %58 : vector<1x4x8xbf16> to vector<4x8xbf16>
    %cst_59 = arith.constant dense<0.000000e+00> : vector<256x8xf32>
    %60 = tpu.matmul %57, %59, %cst_59 {dimension_numbers = #tpu.dot_dimension_numbers<[1], [0], [0], [1], [0, 0, 1, 1], [], []>} : vector<256x4xbf16>, vector<4x8xbf16>, vector<256x8xf32> -> vector<256x8xf32>
    %61 = arith.addf %54, %60 : vector<256x8xf32>
    %c2_60 = arith.constant 2 : index
    %c0_61 = arith.constant 0 : index
    %c0_62 = arith.constant 0 : index
    %62 = vector.load %arg10[%c2_60, %c0_61, %c0_62] : memref<18x18x4xf32, #tpu.memory_space<vmem>>, vector<16x16x4xf32>
    %63 = vector.shape_cast %62 : vector<16x16x4xf32> to vector<256x4xf32>
    %64 = arith.truncf %63 : vector<256x4xf32> to vector<256x4xbf16>
    %c6 = arith.constant 6 : index
    %c0_63 = arith.constant 0 : index
    %c0_64 = arith.constant 0 : index
    %65 = vector.load %arg4[%c6, %c0_63, %c0_64] : memref<9x4x8xbf16, #tpu.memory_space<vmem>>, vector<1x4x8xbf16>
    %66 = vector.shape_cast %65 : vector<1x4x8xbf16> to vector<4x8xbf16>
    %cst_65 = arith.constant dense<0.000000e+00> : vector<256x8xf32>
    %67 = tpu.matmul %64, %66, %cst_65 {dimension_numbers = #tpu.dot_dimension_numbers<[1], [0], [0], [1], [0, 0, 1, 1], [], []>} : vector<256x4xbf16>, vector<4x8xbf16>, vector<256x8xf32> -> vector<256x8xf32>
    %68 = arith.addf %61, %67 : vector<256x8xf32>
    %c2_66 = arith.constant 2 : index
    %c1_67 = arith.constant 1 : index
    %c0_68 = arith.constant 0 : index
    %69 = vector.load %arg10[%c2_66, %c1_67, %c0_68] : memref<18x18x4xf32, #tpu.memory_space<vmem>>, vector<16x16x4xf32>
    %70 = vector.shape_cast %69 : vector<16x16x4xf32> to vector<256x4xf32>
    %71 = arith.truncf %70 : vector<256x4xf32> to vector<256x4xbf16>
    %c7 = arith.constant 7 : index
    %c0_69 = arith.constant 0 : index
    %c0_70 = arith.constant 0 : index
    %72 = vector.load %arg4[%c7, %c0_69, %c0_70] : memref<9x4x8xbf16, #tpu.memory_space<vmem>>, vector<1x4x8xbf16>
    %73 = vector.shape_cast %72 : vector<1x4x8xbf16> to vector<4x8xbf16>
    %cst_71 = arith.constant dense<0.000000e+00> : vector<256x8xf32>
    %74 = tpu.matmul %71, %73, %cst_71 {dimension_numbers = #tpu.dot_dimension_numbers<[1], [0], [0], [1], [0, 0, 1, 1], [], []>} : vector<256x4xbf16>, vector<4x8xbf16>, vector<256x8xf32> -> vector<256x8xf32>
    %75 = arith.addf %68, %74 : vector<256x8xf32>
    %c2_72 = arith.constant 2 : index
    %c2_73 = arith.constant 2 : index
    %c0_74 = arith.constant 0 : index
    %76 = vector.load %arg10[%c2_72, %c2_73, %c0_74] : memref<18x18x4xf32, #tpu.memory_space<vmem>>, vector<16x16x4xf32>
    %77 = vector.shape_cast %76 : vector<16x16x4xf32> to vector<256x4xf32>
    %78 = arith.truncf %77 : vector<256x4xf32> to vector<256x4xbf16>
    %c8 = arith.constant 8 : index
    %c0_75 = arith.constant 0 : index
    %c0_76 = arith.constant 0 : index
    %79 = vector.load %arg4[%c8, %c0_75, %c0_76] : memref<9x4x8xbf16, #tpu.memory_space<vmem>>, vector<1x4x8xbf16>
    %80 = vector.shape_cast %79 : vector<1x4x8xbf16> to vector<4x8xbf16>
    %cst_77 = arith.constant dense<0.000000e+00> : vector<256x8xf32>
    %81 = tpu.matmul %78, %80, %cst_77 {dimension_numbers = #tpu.dot_dimension_numbers<[1], [0], [0], [1], [0, 0, 1, 1], [], []>} : vector<256x4xbf16>, vector<4x8xbf16>, vector<256x8xf32> -> vector<256x8xf32>
    %82 = arith.addf %75, %81 : vector<256x8xf32>
    %cst_78 = arith.constant 0.000000e+00 : f32
    %83 = vector.broadcast %cst_78 : f32 to vector<256x8xf32>
    %84 = arith.maximumf %82, %83 : vector<256x8xf32>
    %cst_79 = arith.constant 0.000000e+00 : f32
    %85 = vector.broadcast %cst_79 : f32 to vector<18x18x8xf32>
    %c0_80 = arith.constant 0 : index
    %c0_81 = arith.constant 0 : index
    %c0_82 = arith.constant 0 : index
    %86 = vector.load %arg12[%c0_80, %c0_81, %c0_82] : memref<18x18x8xf32, #tpu.memory_space<vmem>>, vector<18x18x8xf32>
    tpu.vector_store %arg12[%c0_80, %c0_81, %c0_82], %85 {strides = array<i32>} : memref<18x18x8xf32, #tpu.memory_space<vmem>>, vector<18x18x8xf32>,
    %87 = vector.shape_cast %84 : vector<256x8xf32> to vector<16x16x8xf32>
    %c1_83 = arith.constant 1 : index
    %c1_84 = arith.constant 1 : index
    %c0_85 = arith.constant 0 : index
    %88 = vector.load %arg12[%c1_83, %c1_84, %c0_85] : memref<18x18x8xf32, #tpu.memory_space<vmem>>, vector<16x16x8xf32>
    tpu.vector_store %arg12[%c1_83, %c1_84, %c0_85], %87 {strides = array<i32>} : memref<18x18x8xf32, #tpu.memory_space<vmem>>, vector<16x16x8xf32>,
    %c0_86 = arith.constant 0 : index
    %c0_87 = arith.constant 0 : index
    %89 = vector.load %arg8[%c0_86, %c0_87] : memref<1x128xf32, #tpu.memory_space<vmem>>, vector<1x128xf32>
    %c0_88 = arith.constant 0 : index
    %c0_89 = arith.constant 0 : index
    %c0_90 = arith.constant 0 : index
    %90 = vector.load %arg11[%c0_88, %c0_89, %c0_90] : memref<18x18x4xf32, #tpu.memory_space<vmem>>, vector<16x16x4xf32>
    %91 = vector.shape_cast %90 : vector<16x16x4xf32> to vector<256x4xf32>
    %92 = arith.truncf %91 : vector<256x4xf32> to vector<256x4xbf16>
    %c0_91 = arith.constant 0 : index
    %c0_92 = arith.constant 0 : index
    %c0_93 = arith.constant 0 : index
    %93 = vector.load %arg7[%c0_91, %c0_92, %c0_93] : memref<9x4x128xbf16, #tpu.memory_space<vmem>>, vector<1x4x128xbf16>
    %94 = vector.shape_cast %93 : vector<1x4x128xbf16> to vector<4x128xbf16>
    %cst_94 = arith.constant dense<0.000000e+00> : vector<256x128xf32>
    %95 = tpu.matmul %92, %94, %cst_94 {dimension_numbers = #tpu.dot_dimension_numbers<[1], [0], [0], [1], [0, 0, 1, 1], [], []>} : vector<256x4xbf16>, vector<4x128xbf16>, vector<256x128xf32> -> vector<256x128xf32>
    %96 = vector.broadcast %89 : vector<1x128xf32> to vector<256x128xf32>
    %97 = arith.addf %96, %95 : vector<256x128xf32>
    %c0_95 = arith.constant 0 : index
    %c1_96 = arith.constant 1 : index
    %c0_97 = arith.constant 0 : index
    %98 = vector.load %arg11[%c0_95, %c1_96, %c0_97] : memref<18x18x4xf32, #tpu.memory_space<vmem>>, vector<16x16x4xf32>
    %99 = vector.shape_cast %98 : vector<16x16x4xf32> to vector<256x4xf32>
    %100 = arith.truncf %99 : vector<256x4xf32> to vector<256x4xbf16>
    %c1_98 = arith.constant 1 : index
    %c0_99 = arith.constant 0 : index
    %c0_100 = arith.constant 0 : index
    %101 = vector.load %arg7[%c1_98, %c0_99, %c0_100] : memref<9x4x128xbf16, #tpu.memory_space<vmem>>, vector<1x4x128xbf16>
    %102 = vector.shape_cast %101 : vector<1x4x128xbf16> to vector<4x128xbf16>
    %cst_101 = arith.constant dense<0.000000e+00> : vector<256x128xf32>
    %103 = tpu.matmul %100, %102, %cst_101 {dimension_numbers = #tpu.dot_dimension_numbers<[1], [0], [0], [1], [0, 0, 1, 1], [], []>} : vector<256x4xbf16>, vector<4x128xbf16>, vector<256x128xf32> -> vector<256x128xf32>
    %104 = arith.addf %97, %103 : vector<256x128xf32>
    %c0_102 = arith.constant 0 : index
    %c2_103 = arith.constant 2 : index
    %c0_104 = arith.constant 0 : index
    %105 = vector.load %arg11[%c0_102, %c2_103, %c0_104] : memref<18x18x4xf32, #tpu.memory_space<vmem>>, vector<16x16x4xf32>
    %106 = vector.shape_cast %105 : vector<16x16x4xf32> to vector<256x4xf32>
    %107 = arith.truncf %106 : vector<256x4xf32> to vector<256x4xbf16>
    %c2_105 = arith.constant 2 : index
    %c0_106 = arith.constant 0 : index
    %c0_107 = arith.constant 0 : index
    %108 = vector.load %arg7[%c2_105, %c0_106, %c0_107] : memref<9x4x128xbf16, #tpu.memory_space<vmem>>, vector<1x4x128xbf16>
    %109 = vector.shape_cast %108 : vector<1x4x128xbf16> to vector<4x128xbf16>
    %cst_108 = arith.constant dense<0.000000e+00> : vector<256x128xf32>
    %110 = tpu.matmul %107, %109, %cst_108 {dimension_numbers = #tpu.dot_dimension_numbers<[1], [0], [0], [1], [0, 0, 1, 1], [], []>} : vector<256x4xbf16>, vector<4x128xbf16>, vector<256x128xf32> -> vector<256x128xf32>
    %111 = arith.addf %104, %110 : vector<256x128xf32>
    %c1_109 = arith.constant 1 : index
    %c0_110 = arith.constant 0 : index
    %c0_111 = arith.constant 0 : index
    %112 = vector.load %arg11[%c1_109, %c0_110, %c0_111] : memref<18x18x4xf32, #tpu.memory_space<vmem>>, vector<16x16x4xf32>
    %113 = vector.shape_cast %112 : vector<16x16x4xf32> to vector<256x4xf32>
    %114 = arith.truncf %113 : vector<256x4xf32> to vector<256x4xbf16>
    %c3_112 = arith.constant 3 : index
    %c0_113 = arith.constant 0 : index
    %c0_114 = arith.constant 0 : index
    %115 = vector.load %arg7[%c3_112, %c0_113, %c0_114] : memref<9x4x128xbf16, #tpu.memory_space<vmem>>, vector<1x4x128xbf16>
    %116 = vector.shape_cast %115 : vector<1x4x128xbf16> to vector<4x128xbf16>
    %cst_115 = arith.constant dense<0.000000e+00> : vector<256x128xf32>
    %117 = tpu.matmul %114, %116, %cst_115 {dimension_numbers = #tpu.dot_dimension_numbers<[1], [0], [0], [1], [0, 0, 1, 1], [], []>} : vector<256x4xbf16>, vector<4x128xbf16>, vector<256x128xf32> -> vector<256x128xf32>
    %118 = arith.addf %111, %117 : vector<256x128xf32>
    %c1_116 = arith.constant 1 : index
    %c1_117 = arith.constant 1 : index
    %c0_118 = arith.constant 0 : index
    %119 = vector.load %arg11[%c1_116, %c1_117, %c0_118] : memref<18x18x4xf32, #tpu.memory_space<vmem>>, vector<16x16x4xf32>
    %120 = vector.shape_cast %119 : vector<16x16x4xf32> to vector<256x4xf32>
    %121 = arith.truncf %120 : vector<256x4xf32> to vector<256x4xbf16>
    %c4_119 = arith.constant 4 : index
    %c0_120 = arith.constant 0 : index
    %c0_121 = arith.constant 0 : index
    %122 = vector.load %arg7[%c4_119, %c0_120, %c0_121] : memref<9x4x128xbf16, #tpu.memory_space<vmem>>, vector<1x4x128xbf16>
    %123 = vector.shape_cast %122 : vector<1x4x128xbf16> to vector<4x128xbf16>
    %cst_122 = arith.constant dense<0.000000e+00> : vector<256x128xf32>
    %124 = tpu.matmul %121, %123, %cst_122 {dimension_numbers = #tpu.dot_dimension_numbers<[1], [0], [0], [1], [0, 0, 1, 1], [], []>} : vector<256x4xbf16>, vector<4x128xbf16>, vector<256x128xf32> -> vector<256x128xf32>
    %125 = arith.addf %118, %124 : vector<256x128xf32>
    %c1_123 = arith.constant 1 : index
    %c2_124 = arith.constant 2 : index
    %c0_125 = arith.constant 0 : index
    %126 = vector.load %arg11[%c1_123, %c2_124, %c0_125] : memref<18x18x4xf32, #tpu.memory_space<vmem>>, vector<16x16x4xf32>
    %127 = vector.shape_cast %126 : vector<16x16x4xf32> to vector<256x4xf32>
    %128 = arith.truncf %127 : vector<256x4xf32> to vector<256x4xbf16>
    %c5_126 = arith.constant 5 : index
    %c0_127 = arith.constant 0 : index
    %c0_128 = arith.constant 0 : index
    %129 = vector.load %arg7[%c5_126, %c0_127, %c0_128] : memref<9x4x128xbf16, #tpu.memory_space<vmem>>, vector<1x4x128xbf16>
    %130 = vector.shape_cast %129 : vector<1x4x128xbf16> to vector<4x128xbf16>
    %cst_129 = arith.constant dense<0.000000e+00> : vector<256x128xf32>
    %131 = tpu.matmul %128, %130, %cst_129 {dimension_numbers = #tpu.dot_dimension_numbers<[1], [0], [0], [1], [0, 0, 1, 1], [], []>} : vector<256x4xbf16>, vector<4x128xbf16>, vector<256x128xf32> -> vector<256x128xf32>
    %132 = arith.addf %125, %131 : vector<256x128xf32>
    %c2_130 = arith.constant 2 : index
    %c0_131 = arith.constant 0 : index
    %c0_132 = arith.constant 0 : index
    %133 = vector.load %arg11[%c2_130, %c0_131, %c0_132] : memref<18x18x4xf32, #tpu.memory_space<vmem>>, vector<16x16x4xf32>
    %134 = vector.shape_cast %133 : vector<16x16x4xf32> to vector<256x4xf32>
    %135 = arith.truncf %134 : vector<256x4xf32> to vector<256x4xbf16>
    %c6_133 = arith.constant 6 : index
    %c0_134 = arith.constant 0 : index
    %c0_135 = arith.constant 0 : index
    %136 = vector.load %arg7[%c6_133, %c0_134, %c0_135] : memref<9x4x128xbf16, #tpu.memory_space<vmem>>, vector<1x4x128xbf16>
    %137 = vector.shape_cast %136 : vector<1x4x128xbf16> to vector<4x128xbf16>
    %cst_136 = arith.constant dense<0.000000e+00> : vector<256x128xf32>
    %138 = tpu.matmul %135, %137, %cst_136 {dimension_numbers = #tpu.dot_dimension_numbers<[1], [0], [0], [1], [0, 0, 1, 1], [], []>} : vector<256x4xbf16>, vector<4x128xbf16>, vector<256x128xf32> -> vector<256x128xf32>
    %139 = arith.addf %132, %138 : vector<256x128xf32>
    %c2_137 = arith.constant 2 : index
    %c1_138 = arith.constant 1 : index
    %c0_139 = arith.constant 0 : index
    %140 = vector.load %arg11[%c2_137, %c1_138, %c0_139] : memref<18x18x4xf32, #tpu.memory_space<vmem>>, vector<16x16x4xf32>
    %141 = vector.shape_cast %140 : vector<16x16x4xf32> to vector<256x4xf32>
    %142 = arith.truncf %141 : vector<256x4xf32> to vector<256x4xbf16>
    %c7_140 = arith.constant 7 : index
    %c0_141 = arith.constant 0 : index
    %c0_142 = arith.constant 0 : index
    %143 = vector.load %arg7[%c7_140, %c0_141, %c0_142] : memref<9x4x128xbf16, #tpu.memory_space<vmem>>, vector<1x4x128xbf16>
    %144 = vector.shape_cast %143 : vector<1x4x128xbf16> to vector<4x128xbf16>
    %cst_143 = arith.constant dense<0.000000e+00> : vector<256x128xf32>
    %145 = tpu.matmul %142, %144, %cst_143 {dimension_numbers = #tpu.dot_dimension_numbers<[1], [0], [0], [1], [0, 0, 1, 1], [], []>} : vector<256x4xbf16>, vector<4x128xbf16>, vector<256x128xf32> -> vector<256x128xf32>
    %146 = arith.addf %139, %145 : vector<256x128xf32>
    %c2_144 = arith.constant 2 : index
    %c2_145 = arith.constant 2 : index
    %c0_146 = arith.constant 0 : index
    %147 = vector.load %arg11[%c2_144, %c2_145, %c0_146] : memref<18x18x4xf32, #tpu.memory_space<vmem>>, vector<16x16x4xf32>
    %148 = vector.shape_cast %147 : vector<16x16x4xf32> to vector<256x4xf32>
    %149 = arith.truncf %148 : vector<256x4xf32> to vector<256x4xbf16>
    %c8_147 = arith.constant 8 : index
    %c0_148 = arith.constant 0 : index
    %c0_149 = arith.constant 0 : index
    %150 = vector.load %arg7[%c8_147, %c0_148, %c0_149] : memref<9x4x128xbf16, #tpu.memory_space<vmem>>, vector<1x4x128xbf16>
    %151 = vector.shape_cast %150 : vector<1x4x128xbf16> to vector<4x128xbf16>
    %cst_150 = arith.constant dense<0.000000e+00> : vector<256x128xf32>
    %152 = tpu.matmul %149, %151, %cst_150 {dimension_numbers = #tpu.dot_dimension_numbers<[1], [0], [0], [1], [0, 0, 1, 1], [], []>} : vector<256x4xbf16>, vector<4x128xbf16>, vector<256x128xf32> -> vector<256x128xf32>
    %153 = arith.addf %146, %152 : vector<256x128xf32>
    %c0_151 = arith.constant 0 : index
    %c0_152 = arith.constant 0 : index
    %c0_153 = arith.constant 0 : index
    %154 = vector.load %arg12[%c0_151, %c0_152, %c0_153] : memref<18x18x8xf32, #tpu.memory_space<vmem>>, vector<16x16x8xf32>
    %155 = vector.shape_cast %154 : vector<16x16x8xf32> to vector<256x8xf32>
    %156 = arith.truncf %155 : vector<256x8xf32> to vector<256x8xbf16>
    %c0_154 = arith.constant 0 : index
    %c0_155 = arith.constant 0 : index
    %c0_156 = arith.constant 0 : index
    %157 = vector.load %arg6[%c0_154, %c0_155, %c0_156] : memref<9x8x128xbf16, #tpu.memory_space<vmem>>, vector<1x8x128xbf16>
    %158 = vector.shape_cast %157 : vector<1x8x128xbf16> to vector<8x128xbf16>
    %cst_157 = arith.constant dense<0.000000e+00> : vector<256x128xf32>
    %159 = tpu.matmul %156, %158, %cst_157 {dimension_numbers = #tpu.dot_dimension_numbers<[1], [0], [0], [1], [0, 0, 1, 1], [], []>} : vector<256x8xbf16>, vector<8x128xbf16>, vector<256x128xf32> -> vector<256x128xf32>
    %160 = arith.addf %153, %159 : vector<256x128xf32>
    %c0_158 = arith.constant 0 : index
    %c1_159 = arith.constant 1 : index
    %c0_160 = arith.constant 0 : index
    %161 = vector.load %arg12[%c0_158, %c1_159, %c0_160] : memref<18x18x8xf32, #tpu.memory_space<vmem>>, vector<16x16x8xf32>
    %162 = vector.shape_cast %161 : vector<16x16x8xf32> to vector<256x8xf32>
    %163 = arith.truncf %162 : vector<256x8xf32> to vector<256x8xbf16>
    %c1_161 = arith.constant 1 : index
    %c0_162 = arith.constant 0 : index
    %c0_163 = arith.constant 0 : index
    %164 = vector.load %arg6[%c1_161, %c0_162, %c0_163] : memref<9x8x128xbf16, #tpu.memory_space<vmem>>, vector<1x8x128xbf16>
    %165 = vector.shape_cast %164 : vector<1x8x128xbf16> to vector<8x128xbf16>
    %cst_164 = arith.constant dense<0.000000e+00> : vector<256x128xf32>
    %166 = tpu.matmul %163, %165, %cst_164 {dimension_numbers = #tpu.dot_dimension_numbers<[1], [0], [0], [1], [0, 0, 1, 1], [], []>} : vector<256x8xbf16>, vector<8x128xbf16>, vector<256x128xf32> -> vector<256x128xf32>
    %167 = arith.addf %160, %166 : vector<256x128xf32>
    %c0_165 = arith.constant 0 : index
    %c2_166 = arith.constant 2 : index
    %c0_167 = arith.constant 0 : index
    %168 = vector.load %arg12[%c0_165, %c2_166, %c0_167] : memref<18x18x8xf32, #tpu.memory_space<vmem>>, vector<16x16x8xf32>
    %169 = vector.shape_cast %168 : vector<16x16x8xf32> to vector<256x8xf32>
    %170 = arith.truncf %169 : vector<256x8xf32> to vector<256x8xbf16>
    %c2_168 = arith.constant 2 : index
    %c0_169 = arith.constant 0 : index
    %c0_170 = arith.constant 0 : index
    %171 = vector.load %arg6[%c2_168, %c0_169, %c0_170] : memref<9x8x128xbf16, #tpu.memory_space<vmem>>, vector<1x8x128xbf16>
    %172 = vector.shape_cast %171 : vector<1x8x128xbf16> to vector<8x128xbf16>
    %cst_171 = arith.constant dense<0.000000e+00> : vector<256x128xf32>
    %173 = tpu.matmul %170, %172, %cst_171 {dimension_numbers = #tpu.dot_dimension_numbers<[1], [0], [0], [1], [0, 0, 1, 1], [], []>} : vector<256x8xbf16>, vector<8x128xbf16>, vector<256x128xf32> -> vector<256x128xf32>
    %174 = arith.addf %167, %173 : vector<256x128xf32>
    %c1_172 = arith.constant 1 : index
    %c0_173 = arith.constant 0 : index
    %c0_174 = arith.constant 0 : index
    %175 = vector.load %arg12[%c1_172, %c0_173, %c0_174] : memref<18x18x8xf32, #tpu.memory_space<vmem>>, vector<16x16x8xf32>
    %176 = vector.shape_cast %175 : vector<16x16x8xf32> to vector<256x8xf32>
    %177 = arith.truncf %176 : vector<256x8xf32> to vector<256x8xbf16>
    %c3_175 = arith.constant 3 : index
    %c0_176 = arith.constant 0 : index
    %c0_177 = arith.constant 0 : index
    %178 = vector.load %arg6[%c3_175, %c0_176, %c0_177] : memref<9x8x128xbf16, #tpu.memory_space<vmem>>, vector<1x8x128xbf16>
    %179 = vector.shape_cast %178 : vector<1x8x128xbf16> to vector<8x128xbf16>
    %cst_178 = arith.constant dense<0.000000e+00> : vector<256x128xf32>
    %180 = tpu.matmul %177, %179, %cst_178 {dimension_numbers = #tpu.dot_dimension_numbers<[1], [0], [0], [1], [0, 0, 1, 1], [], []>} : vector<256x8xbf16>, vector<8x128xbf16>, vector<256x128xf32> -> vector<256x128xf32>
    %181 = arith.addf %174, %180 : vector<256x128xf32>
    %c1_179 = arith.constant 1 : index
    %c1_180 = arith.constant 1 : index
    %c0_181 = arith.constant 0 : index
    %182 = vector.load %arg12[%c1_179, %c1_180, %c0_181] : memref<18x18x8xf32, #tpu.memory_space<vmem>>, vector<16x16x8xf32>
    %183 = vector.shape_cast %182 : vector<16x16x8xf32> to vector<256x8xf32>
    %184 = arith.truncf %183 : vector<256x8xf32> to vector<256x8xbf16>
    %c4_182 = arith.constant 4 : index
    %c0_183 = arith.constant 0 : index
    %c0_184 = arith.constant 0 : index
    %185 = vector.load %arg6[%c4_182, %c0_183, %c0_184] : memref<9x8x128xbf16, #tpu.memory_space<vmem>>, vector<1x8x128xbf16>
    %186 = vector.shape_cast %185 : vector<1x8x128xbf16> to vector<8x128xbf16>
    %cst_185 = arith.constant dense<0.000000e+00> : vector<256x128xf32>
    %187 = tpu.matmul %184, %186, %cst_185 {dimension_numbers = #tpu.dot_dimension_numbers<[1], [0], [0], [1], [0, 0, 1, 1], [], []>} : vector<256x8xbf16>, vector<8x128xbf16>, vector<256x128xf32> -> vector<256x128xf32>
    %188 = arith.addf %181, %187 : vector<256x128xf32>
    %c1_186 = arith.constant 1 : index
    %c2_187 = arith.constant 2 : index
    %c0_188 = arith.constant 0 : index
    %189 = vector.load %arg12[%c1_186, %c2_187, %c0_188] : memref<18x18x8xf32, #tpu.memory_space<vmem>>, vector<16x16x8xf32>
    %190 = vector.shape_cast %189 : vector<16x16x8xf32> to vector<256x8xf32>
    %191 = arith.truncf %190 : vector<256x8xf32> to vector<256x8xbf16>
    %c5_189 = arith.constant 5 : index
    %c0_190 = arith.constant 0 : index
    %c0_191 = arith.constant 0 : index
    %192 = vector.load %arg6[%c5_189, %c0_190, %c0_191] : memref<9x8x128xbf16, #tpu.memory_space<vmem>>, vector<1x8x128xbf16>
    %193 = vector.shape_cast %192 : vector<1x8x128xbf16> to vector<8x128xbf16>
    %cst_192 = arith.constant dense<0.000000e+00> : vector<256x128xf32>
    %194 = tpu.matmul %191, %193, %cst_192 {dimension_numbers = #tpu.dot_dimension_numbers<[1], [0], [0], [1], [0, 0, 1, 1], [], []>} : vector<256x8xbf16>, vector<8x128xbf16>, vector<256x128xf32> -> vector<256x128xf32>
    %195 = arith.addf %188, %194 : vector<256x128xf32>
    %c2_193 = arith.constant 2 : index
    %c0_194 = arith.constant 0 : index
    %c0_195 = arith.constant 0 : index
    %196 = vector.load %arg12[%c2_193, %c0_194, %c0_195] : memref<18x18x8xf32, #tpu.memory_space<vmem>>, vector<16x16x8xf32>
    %197 = vector.shape_cast %196 : vector<16x16x8xf32> to vector<256x8xf32>
    %198 = arith.truncf %197 : vector<256x8xf32> to vector<256x8xbf16>
    %c6_196 = arith.constant 6 : index
    %c0_197 = arith.constant 0 : index
    %c0_198 = arith.constant 0 : index
    %199 = vector.load %arg6[%c6_196, %c0_197, %c0_198] : memref<9x8x128xbf16, #tpu.memory_space<vmem>>, vector<1x8x128xbf16>
    %200 = vector.shape_cast %199 : vector<1x8x128xbf16> to vector<8x128xbf16>
    %cst_199 = arith.constant dense<0.000000e+00> : vector<256x128xf32>
    %201 = tpu.matmul %198, %200, %cst_199 {dimension_numbers = #tpu.dot_dimension_numbers<[1], [0], [0], [1], [0, 0, 1, 1], [], []>} : vector<256x8xbf16>, vector<8x128xbf16>, vector<256x128xf32> -> vector<256x128xf32>
    %202 = arith.addf %195, %201 : vector<256x128xf32>
    %c2_200 = arith.constant 2 : index
    %c1_201 = arith.constant 1 : index
    %c0_202 = arith.constant 0 : index
    %203 = vector.load %arg12[%c2_200, %c1_201, %c0_202] : memref<18x18x8xf32, #tpu.memory_space<vmem>>, vector<16x16x8xf32>
    %204 = vector.shape_cast %203 : vector<16x16x8xf32> to vector<256x8xf32>
    %205 = arith.truncf %204 : vector<256x8xf32> to vector<256x8xbf16>
    %c7_203 = arith.constant 7 : index
    %c0_204 = arith.constant 0 : index
    %c0_205 = arith.constant 0 : index
    %206 = vector.load %arg6[%c7_203, %c0_204, %c0_205] : memref<9x8x128xbf16, #tpu.memory_space<vmem>>, vector<1x8x128xbf16>
    %207 = vector.shape_cast %206 : vector<1x8x128xbf16> to vector<8x128xbf16>
    %cst_206 = arith.constant dense<0.000000e+00> : vector<256x128xf32>
    %208 = tpu.matmul %205, %207, %cst_206 {dimension_numbers = #tpu.dot_dimension_numbers<[1], [0], [0], [1], [0, 0, 1, 1], [], []>} : vector<256x8xbf16>, vector<8x128xbf16>, vector<256x128xf32> -> vector<256x128xf32>
    %209 = arith.addf %202, %208 : vector<256x128xf32>
    %c2_207 = arith.constant 2 : index
    %c2_208 = arith.constant 2 : index
    %c0_209 = arith.constant 0 : index
    %210 = vector.load %arg12[%c2_207, %c2_208, %c0_209] : memref<18x18x8xf32, #tpu.memory_space<vmem>>, vector<16x16x8xf32>
    %211 = vector.shape_cast %210 : vector<16x16x8xf32> to vector<256x8xf32>
    %212 = arith.truncf %211 : vector<256x8xf32> to vector<256x8xbf16>
    %c8_210 = arith.constant 8 : index
    %c0_211 = arith.constant 0 : index
    %c0_212 = arith.constant 0 : index
    %213 = vector.load %arg6[%c8_210, %c0_211, %c0_212] : memref<9x8x128xbf16, #tpu.memory_space<vmem>>, vector<1x8x128xbf16>
    %214 = vector.shape_cast %213 : vector<1x8x128xbf16> to vector<8x128xbf16>
    %cst_213 = arith.constant dense<0.000000e+00> : vector<256x128xf32>
    %215 = tpu.matmul %212, %214, %cst_213 {dimension_numbers = #tpu.dot_dimension_numbers<[1], [0], [0], [1], [0, 0, 1, 1], [], []>} : vector<256x8xbf16>, vector<8x128xbf16>, vector<256x128xf32> -> vector<256x128xf32>
    %216 = arith.addf %209, %215 : vector<256x128xf32>
    %217 = vector.shape_cast %216 : vector<256x128xf32> to vector<16x16x128xf32>
    %c0_214 = arith.constant 0 : index
    %c0_215 = arith.constant 0 : index
    %c0_216 = arith.constant 0 : index
    %c0_217 = arith.constant 0 : index
    %218 = vector.load %arg9[%c0_214, %c0_215, %c0_216, %c0_217] : memref<1x16x16x128xf32, #tpu.memory_space<vmem>>, vector<1x16x16x128xf32>
    %219 = vector.shape_cast %218 : vector<1x16x16x128xf32> to vector<16x16x128xf32>
    %220 = vector.shape_cast %217 : vector<16x16x128xf32> to vector<1x16x16x128xf32>
    tpu.vector_store %arg9[%c0_214, %c0_215, %c0_216, %c0_217], %220 {strides = array<i32>} : memref<1x16x16x128xf32, #tpu.memory_space<vmem>>, vector<1x16x16x128xf32>,
    return
  }
  func.func @transform_0(%arg0: i32) -> (i32, i32, i32, i32) {
    %c0_i32 = arith.constant 0 : i32
    %c0_i32_0 = arith.constant 0 : i32
    %c0_i32_1 = arith.constant 0 : i32
    %c0_i32_2 = arith.constant 0 : i32
    return %arg0, %c0_i32, %c0_i32_0, %c0_i32_1 : i32, i32, i32, i32
  }
  func.func @transform_1(%arg0: i32) -> (i32, i32) {
    %c0_i32 = arith.constant 0 : i32
    %c0_i32_0 = arith.constant 0 : i32
    %c0_i32_1 = arith.constant 0 : i32
    return %c0_i32, %c0_i32_0 : i32, i32
  }
  func.func @transform_2(%arg0: i32) -> (i32, i32) {
    %c0_i32 = arith.constant 0 : i32
    %c0_i32_0 = arith.constant 0 : i32
    %c0_i32_1 = arith.constant 0 : i32
    return %c0_i32, %c0_i32_0 : i32, i32
  }
  func.func @transform_3(%arg0: i32) -> (i32, i32, i32) {
    %c0_i32 = arith.constant 0 : i32
    %c0_i32_0 = arith.constant 0 : i32
    %c0_i32_1 = arith.constant 0 : i32
    %c0_i32_2 = arith.constant 0 : i32
    return %c0_i32, %c0_i32_0, %c0_i32_1 : i32, i32, i32
  }
  func.func @transform_4(%arg0: i32) -> (i32, i32) {
    %c0_i32 = arith.constant 0 : i32
    %c0_i32_0 = arith.constant 0 : i32
    %c0_i32_1 = arith.constant 0 : i32
    return %c0_i32, %c0_i32_0 : i32, i32
  }
  func.func @transform_5(%arg0: i32) -> (i32, i32, i32) {
    %c0_i32 = arith.constant 0 : i32
    %c0_i32_0 = arith.constant 0 : i32
    %c0_i32_1 = arith.constant 0 : i32
    %c0_i32_2 = arith.constant 0 : i32
    return %c0_i32, %c0_i32_0, %c0_i32_1 : i32, i32, i32
  }
  func.func @transform_6(%arg0: i32) -> (i32, i32, i32) {
    %c0_i32 = arith.constant 0 : i32
    %c0_i32_0 = arith.constant 0 : i32
    %c0_i32_1 = arith.constant 0 : i32
    %c0_i32_2 = arith.constant 0 : i32
    return %c0_i32, %c0_i32_0, %c0_i32_1 : i32, i32, i32
  }
  func.func @transform_7(%arg0: i32) -> (i32, i32) {
    %c0_i32 = arith.constant 0 : i32
    %c0_i32_0 = arith.constant 0 : i32
    %c0_i32_1 = arith.constant 0 : i32
    return %c0_i32, %c0_i32_0 : i32, i32
  }
  func.func @transform_8(%arg0: i32) -> (i32, i32, i32, i32) {
    %c0_i32 = arith.constant 0 : i32
    %c0_i32_0 = arith.constant 0 : i32
    %c0_i32_1 = arith.constant 0 : i32
    %c0_i32_2 = arith.constant 0 : i32
    return %arg0, %c0_i32, %c0_i32_0, %c0_i32_1 : i32, i32, i32, i32
  }
}

</mosaic_0001>

<bundles_post_ra>
// kernel: residual_conv_forward.1
= control target key start
LH: loop header
LB: loop body
LE: loop exit
PB: predicated region body
PF: predicated region fallthrough
CT: control target
= control target key end

     0   :  { %s11595_s27 = smov 0   ;;  %s13625_s0 = inlined_call_operand.vmem [shape: f32[2,16,16,4], index: 0, kind: input, shape index: {}]   ;;  %s13626_s1 = inlined_call_operand.vmem [shape: f32[1,4], index: 1, kind: input, shape index: {}]   ;;  %s13627_s2 = inlined_call_operand.vmem [shape: f32[1,4], index: 2, kind: input, shape index: {}]   ;;  %s13628_s3 = inlined_call_operand.vmem [shape: bf16[9,4,8], index: 3, kind: input, shape index: {}]   ;;  %s13629_s4 = inlined_call_operand.vmem [shape: f32[1,8], index: 4, kind: input, shape index: {}]   ;;  %s13630_s5 = inlined_call_operand.vmem [shape: bf16[9,8,128], index: 5, kind: input, shape index: {}]   ;;  %s13631_s6 = inlined_call_operand.vmem [shape: bf16[9,4,128], index: 6, kind: input, shape index: {}]   ;;  %s13632_s7 = inlined_call_operand.vmem [shape: f32[1,128], index: 7, kind: input, shape index: {}]   ;;  %s13633_s8 = inlined_call_operand.vmem [shape: f32[2,16,16,128], index: 8, kind: output, shape index: {}]  }
   0x1 LB: > { %s8787_s28 = sadd.s32 4294967295, %s11547_s27   ;;  %p8791_p0 = scmp.ge.s32.totalorder %s11547_s27, 1  ;;  %s11547_s27 = sphi %s11595_s27, %s18_s27  }
   0x2   : > { %p262_p1 = scmp.lt.s32.totalorder %s11547_s27, 3 }
   0x4   : > { %p263_p2 = pnand %p8791_p0, %p262_p1 }
   0x6   : > { %266 = sbr.rel (%p263_p2) target bundleno = 1613 (0x64d), region = 52 }
   0xd   : > { %v674_v0 = vld [vmem:[%s13628_s3] sm:$0x3]  ;;  %vm723_vm0 = vcmask 1041408   ;;  %vm339_vm1 = vcmask 31744   ;;  %p11608_p3 = scmp.lt.s32.totalorder %s8787_s28, 1  ;;  %v13634_v2 = vmov 0.0  }
   0xe   : > { %11503 = vmatprep.subr.msk.bf16.mxu0 %vm723_vm0, %v674_v0  ;;  %v11614_v1 = vsel %vm723_vm0, %v674_v0, 0  ;;  %428 = vst.msk [vmem:[#allocation2] sm:$0xff] %vm339_vm1, %v13634_v2  ;;  %429 = vst.msk [vmem:[#allocation2 + $0x8] sm:$0xff] %vm339_vm1, %v13634_v2  ;;  %v8815_v3 = vld [vmem:[%s13628_s3 + $0x2] sm:$0x3]  ;;  %vm342_vm2 = vcmask 25600  }
   0xf   : > { %340 = vst.msk [vmem:[#allocation3] sm:$0xff] %vm339_vm1, %v13634_v2  ;;  %341 = vst.msk [vmem:[#allocation3 + $0x8] sm:$0xff] %vm339_vm1, %v13634_v2  ;;  %9720 = vmatpush3.bf16.msra.mxu0 %v11614_v1  ;;  %s13648_s28 = smov (!%p11608_p3, %s8787_s28), 1  ;;  %v11847_v4 = vld [vmem:[%s13626_s1] ss:$0 sm:$0xff]  ;;  %v11874_v17 = vsel %vm723_vm0, %v8815_v3, 0 }
  0x10   : > { %344 = vst.msk [vmem:[#allocation3 + $0x18] sm:$0xff] %vm339_vm1, %v13634_v2  ;;  %345 = vst.msk [vmem:[#allocation3 + $0x20] sm:$0xff] %vm339_vm1, %v13634_v2  ;;  %11504 = vmatprep.subr.msk.bf16.mxu0 %vm723_vm0, %v8815_v3  ;;  %s9258_s12 = sshll.u32 %s13648_s28, 8  ;;  %v11859_v5 = vld [vmem:[%s13627_s2] ss:$0 sm:$0xff]  ;;  %vm6150_vm3 = vcmask 1043456  }
  0x11   : > { %347 = vst.msk [vmem:[#allocation3 + $0x30] sm:$0xff] %vm339_vm1, %v13634_v2  ;;  %348 = vst.msk [vmem:[#allocation3 + $0x38] sm:$0xff] %vm339_vm1, %v13634_v2  ;;  %s11854_s17 = scalar_lea.vmem %s13625_s0, %s9258_s12  ;;  %vm3311_vm4 = vcmask 64512   ;;  %vm3314_vm5 = vcmask 58368   ;;  %s13528_s21 = scalar_lea.vmem %s13633_s8, %s9258_s12 }
  0x12   : > { %350 = vst.msk [vmem:[#allocation3 + $0x48] sm:$0xff] %vm339_vm1, %v13634_v2  ;;  %351 = vst.msk [vmem:[#allocation3 + $0x50] sm:$0xff] %vm339_vm1, %v13634_v2  ;;  %v307_v6 = vld [vmem:[%s11854_s17] sm:$0xff]  ;;  %v308_v7 = vld [vmem:[%s11854_s17 + $0x8] sm:$0xff] }
  0x13   : > { %353 = vst.msk [vmem:[#allocation3 + $0x60] sm:$0xff] %vm339_vm1, %v13634_v2  ;;  %354 = vst.msk [vmem:[#allocation3 + $0x68] sm:$0xff] %vm339_vm1, %v13634_v2  ;;  %v309_v8 = vld [vmem:[%s11854_s17 + $0x10] sm:$0xff]  ;;  %v489_v9 = vmul.f32 %v11847_v4, %v307_v6  ;;  %v490_v10 = vmul.f32 %v11847_v4, %v308_v7  ;;  %v310_v11 = vld [vmem:[%s11854_s17 + $0x18] sm:$0xff] }
  0x14   : > { %356 = vst.msk [vmem:[#allocation3 + $0x78] sm:$0xff] %vm339_vm1, %v13634_v2  ;;  %357 = vst.msk [vmem:[#allocation3 + $0x80] sm:$0xff] %vm339_vm1, %v13634_v2  ;;  %v491_v12 = vmul.f32 %v11847_v4, %v309_v8  ;;  %v311_v13 = vld [vmem:[%s11854_s17 + $0x20] sm:$0xff]  ;;  %v312_v14 = vld [vmem:[%s11854_s17 + $0x28] sm:$0xff]  ;;  %v492_v18 = vmul.f32 %v11847_v4, %v310_v11 }
  0x15   : > { %359 = vst.msk [vmem:[#allocation3 + $0x90] sm:$0xff] %vm339_vm1, %v13634_v2  ;;  %360 = vst.msk [vmem:[#allocation3 + $0x98] sm:$0xff] %vm339_vm1, %v13634_v2  ;;  %v626_v15 = vld [vmem:[#allocation2] sm:$0xff]  ;;  %v627_v16 = vld [vmem:[#allocation2 + $0x8] sm:$0xff]  ;;  %v493_v19 = vmul.f32 %v11847_v4, %v311_v13  ;;  %v494_v20 = vmul.f32 %v11847_v4, %v312_v14  ;;  %v528_v23 = vadd.f32 %v11859_v5, %v489_v9 }
  0x16   : > { %362 = vst.msk [vmem:[#allocation3 + $0xa8] sm:$0xff] %vm339_vm1, %v13634_v2  ;;  %363 = vst.msk [vmem:[#allocation3 + $0xb0] sm:$0xff] %vm339_vm1, %v13634_v2  ;;  %v313_v21 = vld [vmem:[%s11854_s17 + $0x30] sm:$0xff]  ;;  %v658_v22 = vpack.c.bf16 %v627_v16, %v626_v15  ;;  %v529_v24 = vadd.f32 %v11859_v5, %v490_v10  ;;  %v530_v25 = vadd.f32 %v11859_v5, %v491_v12  ;;  %v314_v26 = vld [vmem:[%s11854_s17 + $0x38] sm:$0xff] }
  0x17   : > { %365 = vst.msk [vmem:[#allocation3 + $0xc0] sm:$0xff] %vm339_vm1, %v13634_v2  ;;  %366 = vst.msk [vmem:[#allocation3 + $0xc8] sm:$0xff] %vm339_vm1, %v13634_v2  ;;  %v315_v27 = vld [vmem:[%s11854_s17 + $0x40] sm:$0xff]  ;;  %v316_v28 = vld [vmem:[%s11854_s17 + $0x48] sm:$0xff]  ;;  %v531_v29 = vadd.f32 %v11859_v5, %v492_v18  ;;  %v532_v30 = vadd.f32 %v11859_v5, %v493_v19  ;;  %v533_v31 = vadd.f32 %v11859_v5, %v494_v20  ;;  %v560_v36 = vmax.f32 %v528_v23, 0.0 }
  0x18   : > { %368 = vst.msk [vmem:[#allocation3 + $0xd8] sm:$0xff] %vm339_vm1, %v13634_v2  ;;  %369 = vst.msk [vmem:[#allocation3 + $0xe0] sm:$0xff] %vm339_vm1, %v13634_v2  ;;  %v495_v32 = vmul.f32 %v11847_v4, %v313_v21  ;;  %v317_v33 = vld [vmem:[%s11854_s17 + $0x50] sm:$0xff]  ;;  %v318_v34 = vld [vmem:[%s11854_s17 + $0x58] sm:$0xff]  ;;  %9721 = vmatprep.mubr.msk.bf16.mxu0 %vm339_vm1, %v658_v22  ;;  %v561_v37 = vmax.f32 %v529_v24, 0.0  ;;  %v562_v38 = vmax.f32 %v530_v25, 0.0  ;;  %v496_v39 = vmul.f32 %v11847_v4, %v314_v26 }
  0x19   : > { %371 = vst.msk [vmem:[#allocation3 + $0xf0] sm:$0xff] %vm339_vm1, %v13634_v2  ;;  %372 = vst.msk [vmem:[#allocation3 + $0xf8] sm:$0xff] %vm339_vm1, %v13634_v2  ;;  %v319_v35 = vld [vmem:[%s11854_s17 + $0x60] sm:$0xff]  ;;  %v320_v40 = vld [vmem:[%s11854_s17 + $0x68] sm:$0xff]  ;;  %v563_v43 = vmax.f32 %v531_v29, 0.0  ;;  %v564_v44 = vmax.f32 %v532_v30, 0.0  ;;  %v497_v51 = vmul.f32 %v11847_v4, %v315_v27  ;;  %v498_v52 = vmul.f32 %v11847_v4, %v316_v28 }
  0x1a   : > { %374 = vst.msk [vmem:[#allocation3 + $0x108] sm:$0xff] %vm339_vm1, %v13634_v2  ;;  %375 = vst.msk [vmem:[#allocation3 + $0x110] sm:$0xff] %vm339_vm1, %v13634_v2  ;;  %v321_v41 = vld [vmem:[%s11854_s17 + $0x70] sm:$0xff]  ;;  %v322_v42 = vld [vmem:[%s11854_s17 + $0x78] sm:$0xff]  ;;  %v565_v45 = vmax.f32 %v533_v31, 0.0  ;;  %v534_v46 = vadd.f32 %v11859_v5, %v495_v32  ;;  %v535_v50 = vadd.f32 %v11859_v5, %v496_v39  ;;  %v499_v53 = vmul.f32 %v11847_v4, %v317_v33 }
  0x1b   : > { %377 = vst.msk [vmem:[#allocation3 + $0x120] sm:$0xff] %vm339_vm1, %v13634_v2  ;;  %378 = vst.msk [vmem:[#allocation3 + $0x128] sm:$0xff] %vm339_vm1, %v13634_v2  ;;  %v11913_v47 = vld [vmem:[%s11854_s17 + $0x80] sm:$0xff]  ;;  %v11916_v48 = vld [vmem:[%s11854_s17 + $0x88] sm:$0xff]  ;;  %v500_v58 = vmul.f32 %v11847_v4, %v318_v34  ;;  %v501_v59 = vmul.f32 %v11847_v4, %v319_v35  ;;  %v502_v60 = vmul.f32 %v11847_v4, %v320_v40 }
  0x1c   : > { %380 = vst.msk [vmem:[#allocation3 + $0x138] sm:$0xff] %vm339_vm1, %v13634_v2  ;;  %381 = vst.msk [vmem:[#allocation3 + $0x140] sm:$0xff] %vm339_vm1, %v13634_v2  ;;  %v11919_v49 = vld [vmem:[%s11854_s17 + $0x90] sm:$0xff]  ;;  %v326_v54 = vld [vmem:[%s11854_s17 + $0x98] sm:$0xff]  ;;  %v566_v57 = vmax.f32 %v534_v46, 0.0  ;;  %v567_v0 = vmax.f32 %v535_v50, 0.0  ;;  %v536_v1 = vadd.f32 %v11859_v5, %v497_v51  ;;  %v537_v3 = vadd.f32 %v11859_v5, %v498_v52 }
  0x1d   : > { %383 = vst.msk [vmem:[#allocation3 + $0x150] sm:$0xff] %vm339_vm1, %v13634_v2  ;;  %384 = vst.msk [vmem:[#allocation3 + $0x158] sm:$0xff] %vm339_vm1, %v13634_v2  ;;  %v327_v55 = vld [vmem:[%s11854_s17 + $0xa0] sm:$0xff]  ;;  %v328_v56 = vld [vmem:[%s11854_s17 + $0xa8] sm:$0xff]  ;;  %v539_v10 = vadd.f32 %v11859_v5, %v500_v58  ;;  %v541_v12 = vadd.f32 %v11859_v5, %v502_v60  ;;  %v504_v20 = vmul.f32 %v11847_v4, %v322_v42 }
  0x1e   : > { %386 = vst.msk [vmem:[#allocation3 + $0x168] sm:$0xff] %vm339_vm1, %v13634_v2  ;;  %387 = vst.msk [vmem:[#allocation3 + $0x170] sm:$0xff] %vm339_vm1, %v13634_v2  ;;  %v11947_v61 = vld [vmem:[%s11854_s17 + $0xb0] sm:$0xff]  ;;  %v11950_v62 = vld [vmem:[%s11854_s17 + $0xb8] sm:$0xff]  ;;  %v568_v16 = vmax.f32 %v536_v1, 0.0  ;;  %v569_v18 = vmax.f32 %v537_v3, 0.0 }
  0x1f   : > { %389 = vst.msk [vmem:[#allocation3 + $0x180] sm:$0xff] %vm339_vm1, %v13634_v2  ;;  %390 = vst.msk [vmem:[#allocation3 + $0x188] sm:$0xff] %vm339_vm1, %v13634_v2  ;;  %v11953_v63 = vld [vmem:[%s11854_s17 + $0xc0] sm:$0xff]  ;;  %v11971_v9 = vld [vmem:[%s11854_s17 + $0xd8] sm:$0xff]  ;;  %v573_v23 = vmax.f32 %v541_v12, 0.0  ;;  %v543_v25 = vadd.f32 %v11859_v5, %v504_v20 }
  0x20   : > { %392 = vst.msk [vmem:[#allocation3 + $0x198] sm:$0xff] %vm339_vm1, %v13634_v2  ;;  %393 = vst.msk [vmem:[#allocation3 + $0x1a0] sm:$0xff] %vm339_vm1, %v13634_v2  ;;  %v11988_v15 = vld [vmem:[%s11854_s17 + $0xe8] sm:$0xff]  ;;  %v513_v58 = vmul.f32 %v11847_v4, %v11953_v63  ;;  %v516_v1 = vmul.f32 %v11847_v4, %v11971_v9 }
  0x21   : > { %431 = vst.msk [vmem:[#allocation2 + $0x18] sm:$0xff] %vm339_vm1, %v13634_v2  ;;  %432 = vst.msk [vmem:[#allocation2 + $0x20] sm:$0xff] %vm339_vm1, %v13634_v2 }
  0x22   : > { %434 = vst.msk [vmem:[#allocation2 + $0x30] sm:$0xff] %vm339_vm1, %v13634_v2  ;;  %435 = vst.msk [vmem:[#allocation2 + $0x38] sm:$0xff] %vm339_vm1, %v13634_v2 }
  0x23   : > { %437 = vst.msk [vmem:[#allocation2 + $0x48] sm:$0xff] %vm339_vm1, %v13634_v2  ;;  %438 = vst.msk [vmem:[#allocation2 + $0x50] sm:$0xff] %vm339_vm1, %v13634_v2 }
  0x24   : > { %440 = vst.msk [vmem:[#allocation2 + $0x60] sm:$0xff] %vm339_vm1, %v13634_v2  ;;  %441 = vst.msk [vmem:[#allocation2 + $0x68] sm:$0xff] %vm339_vm1, %v13634_v2 }
  0x25   : > { %443 = vst.msk [vmem:[#allocation2 + $0x78] sm:$0xff] %vm339_vm1, %v13634_v2  ;;  %444 = vst.msk [vmem:[#allocation2 + $0x80] sm:$0xff] %vm339_vm1, %v13634_v2 }
  0x26   : > { %446 = vst.msk [vmem:[#allocation2 + $0x90] sm:$0xff] %vm339_vm1, %v13634_v2  ;;  %447 = vst.msk [vmem:[#allocation2 + $0x98] sm:$0xff] %vm339_vm1, %v13634_v2 }
  0x27   : > { %449 = vst.msk [vmem:[#allocation2 + $0xa8] sm:$0xff] %vm339_vm1, %v13634_v2  ;;  %450 = vst.msk [vmem:[#allocation2 + $0xb0] sm:$0xff] %vm339_vm1, %v13634_v2 }
  0x28   : > { %452 = vst.msk [vmem:[#allocation2 + $0xc0] sm:$0xff] %vm339_vm1, %v13634_v2  ;;  %453 = vst.msk [vmem:[#allocation2 + $0xc8] sm:$0xff] %vm339_vm1, %v13634_v2 }
  0x29   : > { %455 = vst.msk [vmem:[#allocation2 + $0xd8] sm:$0xff] %vm339_vm1, %v13634_v2  ;;  %456 = vst.msk [vmem:[#allocation2 + $0xe0] sm:$0xff] %vm339_vm1, %v13634_v2 }
  0x2a   : > { %458 = vst.msk [vmem:[#allocation2 + $0xf0] sm:$0xff] %vm339_vm1, %v13634_v2  ;;  %459 = vst.msk [vmem:[#allocation2 + $0xf8] sm:$0xff] %vm339_vm1, %v13634_v2 }
  0x2b   : > { %461 = vst.msk [vmem:[#allocation2 + $0x108] sm:$0xff] %vm339_vm1, %v13634_v2  ;;  %462 = vst.msk [vmem:[#allocation2 + $0x110] sm:$0xff] %vm339_vm1, %v13634_v2 }
  0x2c   : > { %464 = vst.msk [vmem:[#allocation2 + $0x120] sm:$0xff] %vm339_vm1, %v13634_v2  ;;  %465 = vst.msk [vmem:[#allocation2 + $0x128] sm:$0xff] %vm339_vm1, %v13634_v2 }
  0x2d   : > { %467 = vst.msk [vmem:[#allocation2 + $0x138] sm:$0xff] %vm339_vm1, %v13634_v2  ;;  %468 = vst.msk [vmem:[#allocation2 + $0x140] sm:$0xff] %vm339_vm1, %v13634_v2 }
  0x2e   : > { %470 = vst.msk [vmem:[#allocation2 + $0x150] sm:$0xff] %vm339_vm1, %v13634_v2  ;;  %471 = vst.msk [vmem:[#allocation2 + $0x158] sm:$0xff] %vm339_vm1, %v13634_v2 }
  0x2f   : > { %473 = vst.msk [vmem:[#allocation2 + $0x168] sm:$0xff] %vm339_vm1, %v13634_v2  ;;  %474 = vst.msk [vmem:[#allocation2 + $0x170] sm:$0xff] %vm339_vm1, %v13634_v2 }
  0x30   : > { %476 = vst.msk [vmem:[#allocation2 + $0x180] sm:$0xff] %vm339_vm1, %v13634_v2  ;;  %477 = vst.msk [vmem:[#allocation2 + $0x188] sm:$0xff] %vm339_vm1, %v13634_v2 }
  0x31   : > { %479 = vst.msk [vmem:[#allocation2 + $0x198] sm:$0xff] %vm339_vm1, %v13634_v2  ;;  %480 = vst.msk [vmem:[#allocation2 + $0x1a0] sm:$0xff] %vm339_vm1, %v13634_v2 }
  0x32   : > { %433 = vst.msk [vmem:[#allocation2 + $0x28] sm:$0x3] %vm342_vm2, %v13634_v2  ;;  %343 = vst.msk [vmem:[#allocation3 + $0x10] sm:$0x3] %vm342_vm2, %v13634_v2 }
  0x33   : > { %346 = vst.msk [vmem:[#allocation3 + $0x28] sm:$0x3] %vm342_vm2, %v13634_v2  ;;  %349 = vst.msk [vmem:[#allocation3 + $0x40] sm:$0x3] %vm342_vm2, %v13634_v2 }
  0x34   : > { %352 = vst.msk [vmem:[#allocation3 + $0x58] sm:$0x3] %vm342_vm2, %v13634_v2  ;;  %355 = vst.msk [vmem:[#allocation3 + $0x70] sm:$0x3] %vm342_vm2, %v13634_v2 }
  0x35   : > { %358 = vst.msk [vmem:[#allocation3 + $0x88] sm:$0x3] %vm342_vm2, %v13634_v2  ;;  %361 = vst.msk [vmem:[#allocation3 + $0xa0] sm:$0x3] %vm342_vm2, %v13634_v2 }
  0x36   : > { %364 = vst.msk [vmem:[#allocation3 + $0xb8] sm:$0x3] %vm342_vm2, %v13634_v2  ;;  %367 = vst.msk [vmem:[#allocation3 + $0xd0] sm:$0x3] %vm342_vm2, %v13634_v2 }
  0x37   : > { %370 = vst.msk [vmem:[#allocation3 + $0xe8] sm:$0x3] %vm342_vm2, %v13634_v2  ;;  %373 = vst.msk [vmem:[#allocation3 + $0x100] sm:$0x3] %vm342_vm2, %v13634_v2 }
  0x38   : > { %376 = vst.msk [vmem:[#allocation3 + $0x118] sm:$0x3] %vm342_vm2, %v13634_v2  ;;  %379 = vst.msk [vmem:[#allocation3 + $0x130] sm:$0x3] %vm342_vm2, %v13634_v2 }
  0x39   : > { %382 = vst.msk [vmem:[#allocation3 + $0x148] sm:$0x3] %vm342_vm2, %v13634_v2  ;;  %385 = vst.msk [vmem:[#allocation3 + $0x160] sm:$0x3] %vm342_vm2, %v13634_v2 }
  0x3a   : > { %388 = vst.msk [vmem:[#allocation3 + $0x178] sm:$0x3] %vm342_vm2, %v13634_v2  ;;  %391 = vst.msk [vmem:[#allocation3 + $0x190] sm:$0x3] %vm342_vm2, %v13634_v2 }
  0x3b   : > { %394 = vst.msk [vmem:[#allocation3 + $0x1a8] sm:$0x3] %vm342_vm2, %v13634_v2  ;;  %430 = vst.msk [vmem:[#allocation2 + $0x10] sm:$0x3] %vm342_vm2, %v13634_v2 }
  0x3c   : > { %436 = vst.msk [vmem:[#allocation2 + $0x40] sm:$0x3] %vm342_vm2, %v13634_v2  ;;  %439 = vst.msk [vmem:[#allocation2 + $0x58] sm:$0x3] %vm342_vm2, %v13634_v2 }
  0x3d   : > { %442 = vst.msk [vmem:[#allocation2 + $0x70] sm:$0x3] %vm342_vm2, %v13634_v2  ;;  %445 = vst.msk [vmem:[#allocation2 + $0x88] sm:$0x3] %vm342_vm2, %v13634_v2 }
  0x3e   : > { %448 = vst.msk [vmem:[#allocation2 + $0xa0] sm:$0x3] %vm342_vm2, %v13634_v2  ;;  %451 = vst.msk [vmem:[#allocation2 + $0xb8] sm:$0x3] %vm342_vm2, %v13634_v2 }
  0x3f   : > { %454 = vst.msk [vmem:[#allocation2 + $0xd0] sm:$0x3] %vm342_vm2, %v13634_v2  ;;  %457 = vst.msk [vmem:[#allocation2 + $0xe8] sm:$0x3] %vm342_vm2, %v13634_v2 }
  0x40   : > { %460 = vst.msk [vmem:[#allocation2 + $0x100] sm:$0x3] %vm342_vm2, %v13634_v2  ;;  %463 = vst.msk [vmem:[#allocation2 + $0x118] sm:$0x3] %vm342_vm2, %v13634_v2 }
  0x41   : > { %466 = vst.msk [vmem:[#allocation2 + $0x130] sm:$0x3] %vm342_vm2, %v13634_v2  ;;  %469 = vst.msk [vmem:[#allocation2 + $0x148] sm:$0x3] %vm342_vm2, %v13634_v2 }
  0x42   : > { %472 = vst.msk [vmem:[#allocation2 + $0x160] sm:$0x3] %vm342_vm2, %v13634_v2  ;;  %475 = vst.msk [vmem:[#allocation2 + $0x178] sm:$0x3] %vm342_vm2, %v13634_v2 }
  0x43   : > { %478 = vst.msk [vmem:[#allocation2 + $0x190] sm:$0x3] %vm342_vm2, %v13634_v2  ;;  %481 = vst.msk [vmem:[#allocation2 + $0x1a8] sm:$0x3] %vm342_vm2, %v13634_v2 }
  0x44   : > { %396 = vst.msk [vmem:[#allocation3 + $0x19] sm:$0xff] %vm339_vm1, %v307_v6  ;;  %397 = vst.msk [vmem:[#allocation3 + $0x21] sm:$0xff] %vm339_vm1, %v308_v7  ;;  %v538_v6 = vadd.f32 %v11859_v5, %v499_v53  ;;  %v11963_v7 = vld [vmem:[%s11854_s17 + $0xc8] sm:$0xff]  ;;  %v511_v53 = vmul.f32 %v11847_v4, %v11947_v61 }
  0x45   : > { %398 = vst.msk [vmem:[#allocation3 + $0x31] sm:$0xff] %vm339_vm1, %v309_v8  ;;  %399 = vst.msk [vmem:[#allocation3 + $0x39] sm:$0xff] %vm339_vm1, %v310_v11  ;;  %v11968_v8 = vld [vmem:[%s11854_s17 + $0xd0] sm:$0xff]  ;;  %v540_v11 = vadd.f32 %v11859_v5, %v501_v59 }
  0x46   : > { %400 = vst.msk [vmem:[#allocation3 + $0x49] sm:$0xff] %vm339_vm1, %v311_v13  ;;  %401 = vst.msk [vmem:[#allocation3 + $0x51] sm:$0xff] %vm339_vm1, %v312_v14  ;;  %v503_v13 = vmul.f32 %v11847_v4, %v321_v41  ;;  %v11985_v14 = vld [vmem:[%s11854_s17 + $0xe0] sm:$0xff]  ;;  %v570_v19 = vmax.f32 %v538_v6, 0.0  ;;  %v550_v59 = vadd.f32 %v11859_v5, %v511_v53 }
  0x47   : > { %402 = vst.msk [vmem:[#allocation3 + $0x61] sm:$0xff] %vm339_vm1, %v313_v21  ;;  %403 = vst.msk [vmem:[#allocation3 + $0x69] sm:$0xff] %vm339_vm1, %v314_v26  ;;  %v571_v21 = vmax.f32 %v539_v10, 0.0  ;;  %v572_v22 = vmax.f32 %v540_v11, 0.0  ;;  %v505_v26 = vmul.f32 %v11847_v4, %v11913_v47  ;;  %v517_v3 = vmul.f32 %v11847_v4, %v11985_v14 }
  0x48   : > { %404 = vst.msk [vmem:[#allocation3 + $0x79] sm:$0xff] %vm339_vm1, %v315_v27  ;;  %405 = vst.msk [vmem:[#allocation3 + $0x81] sm:$0xff] %vm339_vm1, %v316_v28  ;;  %v542_v24 = vadd.f32 %v11859_v5, %v503_v13  ;;  %v506_v27 = vmul.f32 %v11847_v4, %v11916_v48  ;;  %v507_v28 = vmul.f32 %v11847_v4, %v11919_v49 }
  0x49   : > { %406 = vst.msk [vmem:[#allocation3 + $0x91] sm:$0xff] %vm339_vm1, %v317_v33  ;;  %407 = vst.msk [vmem:[#allocation3 + $0x99] sm:$0xff] %vm339_vm1, %v318_v34  ;;  %v508_v33 = vmul.f32 %v11847_v4, %v326_v54  ;;  %v509_v34 = vmul.f32 %v11847_v4, %v327_v55  ;;  %v544_v39 = vadd.f32 %v11859_v5, %v505_v26 }
  0x4a   : > { %408 = vst.msk [vmem:[#allocation3 + $0xa9] sm:$0xff] %vm339_vm1, %v319_v35  ;;  %409 = vst.msk [vmem:[#allocation3 + $0xb1] sm:$0xff] %vm339_vm1, %v320_v40  ;;  %v574_v32 = vmax.f32 %v542_v24, 0.0  ;;  %v510_v35 = vmul.f32 %v11847_v4, %v328_v56  ;;  %v545_v40 = vadd.f32 %v11859_v5, %v506_v27  ;;  %v555_v13 = vadd.f32 %v11859_v5, %v516_v1 }
  0x4b   : > { %410 = vst.msk [vmem:[#allocation3 + $0xc1] sm:$0xff] %vm339_vm1, %v321_v41  ;;  %411 = vst.msk [vmem:[#allocation3 + $0xc9] sm:$0xff] %vm339_vm1, %v322_v42  ;;  %v546_v42 = vadd.f32 %v11859_v5, %v507_v28 }
  0x4c   : > { %593 = vst.msk [vmem:[#allocation2 + $0x19] sm:$0xff] %vm339_vm1, %v560_v36  ;;  %594 = vst.msk [vmem:[#allocation2 + $0x21] sm:$0xff] %vm339_vm1, %v561_v37  ;;  %v577_v46 = vmax.f32 %v545_v40, 0.0 }
  0x4d   : > { %595 = vst.msk [vmem:[#allocation2 + $0x31] sm:$0xff] %vm339_vm1, %v562_v38  ;;  %412 = vst.msk [vmem:[#allocation3 + $0xd9] sm:$0xff] %vm339_vm1, %v11913_v47  ;;  %v575_v38 = vmax.f32 %v543_v25, 0.0  ;;  %v548_v47 = vadd.f32 %v11859_v5, %v509_v34  ;;  %v578_v51 = vmax.f32 %v546_v42, 0.0 }
  0x4e   : > { %413 = vst.msk [vmem:[#allocation3 + $0xe1] sm:$0xff] %vm339_vm1, %v11916_v48  ;;  %414 = vst.msk [vmem:[#allocation3 + $0xf1] sm:$0xff] %vm339_vm1, %v11919_v49  ;;  %v549_v48 = vadd.f32 %v11859_v5, %v510_v35 }
  0x4f   : > { %596 = vst.msk [vmem:[#allocation2 + $0x39] sm:$0xff] %vm339_vm1, %v563_v43  ;;  %597 = vst.msk [vmem:[#allocation2 + $0x49] sm:$0xff] %vm339_vm1, %v564_v44  ;;  %v547_v43 = vadd.f32 %v11859_v5, %v508_v33  ;;  %v12025_v44 = vld [vmem:[%s13628_s3 + $0x4] sm:$0x3] }
  0x50   : > { %598 = vst.msk [vmem:[#allocation2 + $0x51] sm:$0xff] %vm339_vm1, %v565_v45  ;;  %415 = vst.msk [vmem:[#allocation3 + $0xf9] sm:$0xff] %vm339_vm1, %v326_v54  ;;  %v576_v45 = vmax.f32 %v544_v39, 0.0  ;;  %v512_v54 = vmul.f32 %v11847_v4, %v11950_v62 }
  0x51   : > { %416 = vst.msk [vmem:[#allocation3 + $0x109] sm:$0xff] %vm339_vm1, %v327_v55  ;;  %417 = vst.msk [vmem:[#allocation3 + $0x111] sm:$0xff] %vm339_vm1, %v328_v56  ;;  %v579_v52 = vmax.f32 %v547_v43, 0.0 }
  0x52   : > { %418 = vst.msk [vmem:[#allocation3 + $0x121] sm:$0xff] %vm339_vm1, %v11947_v61  ;;  %419 = vst.msk [vmem:[#allocation3 + $0x129] sm:$0xff] %vm339_vm1, %v11950_v62  ;;  %v551_v60 = vadd.f32 %v11859_v5, %v512_v54  ;;  %v514_v61 = vmul.f32 %v11847_v4, %v11963_v7  ;;  %v515_v62 = vmul.f32 %v11847_v4, %v11968_v8 }
  0x53   : > { %420 = vst.msk [vmem:[#allocation3 + $0x139] sm:$0xff] %vm339_vm1, %v11953_v63  ;;  %599 = vst.msk [vmem:[#allocation2 + $0x61] sm:$0xff] %vm339_vm1, %v566_v57  ;;  %v628_v29 = vld [vmem:[#allocation2 + $0x18] sm:$0xff]  ;;  %v629_v30 = vld [vmem:[#allocation2 + $0x20] sm:$0xff]  ;;  %v581_v57 = vmax.f32 %v549_v48, 0.0  ;;  %v552_v63 = vadd.f32 %v11859_v5, %v513_v58 }
  0x54   : > { %421 = vst.msk [vmem:[#allocation3 + $0x141] sm:$0xff] %vm339_vm1, %v11963_v7  ;;  %422 = vst.msk [vmem:[#allocation3 + $0x151] sm:$0xff] %vm339_vm1, %v11968_v8  ;;  %v630_v31 = vld [vmem:[#allocation2 + $0x30] sm:$0xff]  ;;  %v12013_v36 = vpack.c.bf16 %v629_v30, %v628_v29  ;;  %v582_v7 = vmax.f32 %v550_v59, 0.0  ;;  %v583_v10 = vmax.f32 %v551_v60, 0.0  ;;  %v553_v8 = vadd.f32 %v11859_v5, %v514_v61  ;;  %v928_v60 = vld [vmem:[#allocation2 + $0x19] sm:$0xff] }
  0x55   : > { %423 = vst.msk [vmem:[#allocation3 + $0x159] sm:$0xff] %vm339_vm1, %v11971_v9  ;;  %600 = vst.msk [vmem:[#allocation2 + $0x69] sm:$0xff] %vm339_vm1, %v567_v0  ;;  %v584_v11 = vmax.f32 %v552_v63, 0.0  ;;  %v554_v12 = vadd.f32 %v11859_v5, %v515_v62  ;;  %v518_v9 = vmul.f32 %v11847_v4, %v11988_v15  ;;  %v929_v61 = vld [vmem:[#allocation2 + $0x21] sm:$0xff]  ;;  %v930_v62 = vld [vmem:[#allocation2 + $0x31] sm:$0xff] }
  0x56   : > { %424 = vst.msk [vmem:[#allocation3 + $0x169] sm:$0xff] %vm339_vm1, %v11985_v14  ;;  %425 = vst.msk [vmem:[#allocation3 + $0x171] sm:$0xff] %vm339_vm1, %v11988_v15  ;;  %v631_v37 = vld [vmem:[#allocation2 + $0x38] sm:$0xff]  ;;  %9722 = vmatmul.mubr.msk.bf16.vlgmr.msra.gmra.mrb[0].mxu0 %vm339_vm1, %v12013_v36  ;;  %v632_v49 = vld [vmem:[#allocation2 + $0x48] sm:$0xff]  ;;  %v556_v14 = vadd.f32 %v11859_v5, %v517_v3  ;;  %v12128_v1 = vpack.c.bf16 %v929_v61, %v928_v60 }
  0x57   : > { %601 = vst.msk [vmem:[#allocation2 + $0x79] sm:$0xff] %vm339_vm1, %v568_v16  ;;  %602 = vst.msk [vmem:[#allocation2 + $0x81] sm:$0xff] %vm339_vm1, %v569_v18  ;;  %v12017_v41 = vpack.c.bf16 %v631_v37, %v630_v31  ;;  %9754 = vmatpush3.bf16.msra.mxu0 %v11874_v17  ;;  %v633_v50 = vld [vmem:[#allocation2 + $0x50] sm:$0xff]  ;;  %v580_v17 = vmax.f32 %v548_v47, 0.0  ;;  %v585_v16 = vmax.f32 %v553_v8, 0.0  ;;  %v586_v18 = vmax.f32 %v554_v12, 0.0 }
  0x58   : > { %603 = vst.msk [vmem:[#allocation2 + $0x91] sm:$0xff] %vm339_vm1, %v570_v19  ;;  %604 = vst.msk [vmem:[#allocation2 + $0x99] sm:$0xff] %vm339_vm1, %v571_v21  ;;  %11505 = vmatprep.subr.msk.bf16.mxu0 %vm723_vm0, %v12025_v44  ;;  %v12053_v0 = vpack.c.bf16 %v633_v50, %v632_v49  ;;  %v587_v19 = vmax.f32 %v555_v13, 0.0  ;;  %v931_v63 = vld [vmem:[#allocation2 + $0x39] sm:$0xff]  ;;  %v932_v8 = vld [vmem:[#allocation2 + $0x49] sm:$0xff] }
  0x59   : > { %605 = vst.msk [vmem:[#allocation2 + $0xa9] sm:$0xff] %vm339_vm1, %v572_v22  ;;  %606 = vst.msk [vmem:[#allocation2 + $0xb1] sm:$0xff] %vm339_vm1, %v573_v23  ;;  %9725 = vmatprep.mubr.msk.bf16.mxu0 %vm339_vm1, %v12017_v41  ;;  %v557_v22 = vadd.f32 %v11859_v5, %v518_v9  ;;  %v588_v23 = vmax.f32 %v556_v14, 0.0  ;;  %v12130_v3 = vpack.c.bf16 %v931_v63, %v930_v62 }
  0x5a   : > { %607 = vst.msk [vmem:[#allocation2 + $0xc1] sm:$0xff] %vm339_vm1, %v574_v32  ;;  %608 = vst.msk [vmem:[#allocation2 + $0xc9] sm:$0xff] %vm339_vm1, %v575_v38  ;;  %v634_v55 = vld [vmem:[#allocation2 + $0x60] sm:$0xff] }
  0x5b   : > { %609 = vst.msk [vmem:[#allocation2 + $0xd9] sm:$0xff] %vm339_vm1, %v576_v45  ;;  %610 = vst.msk [vmem:[#allocation2 + $0xe1] sm:$0xff] %vm339_vm1, %v577_v46  ;;  %v589_v25 = vmax.f32 %v557_v22, 0.0  ;;  %v934_v12 = vld [vmem:[#allocation2 + $0x61] sm:$0xff] }
  0x5c   : > { %v635_v56 = vld [vmem:[#allocation2 + $0x68] sm:$0xff]  ;;  %611 = vst.msk [vmem:[#allocation2 + $0xf1] sm:$0xff] %vm339_vm1, %v578_v51  ;;  %612 = vst.msk [vmem:[#allocation2 + $0xf9] sm:$0xff] %vm339_vm1, %v579_v52 }
  0x5d   : > { %613 = vst.msk [vmem:[#allocation2 + $0x109] sm:$0xff] %vm339_vm1, %v580_v17  ;;  %614 = vst.msk [vmem:[#allocation2 + $0x111] sm:$0xff] %vm339_vm1, %v581_v57  ;;  %v12062_v6 = vpack.c.bf16 %v635_v56, %v634_v55  ;;  %v926_v17 = vld [vmem:[#allocation2 + $0x1] sm:$0xff]  ;;  %v927_v57 = vld [vmem:[#allocation2 + $0x9] sm:$0xff] }
  0x5e   : > { %615 = vst.msk [vmem:[#allocation2 + $0x121] sm:$0xff] %vm339_vm1, %v582_v7  ;;  %616 = vst.msk [vmem:[#allocation2 + $0x129] sm:$0xff] %vm339_vm1, %v583_v10  ;;  %9726 = vmatmul.mubr.msk.bf16.gmra.mrb[4].mxu0 %vm339_vm1, %v12053_v0  ;;  %v636_v20 = vld [vmem:[#allocation2 + $0x78] sm:$0xff]  ;;  %v637_v21 = vld [vmem:[#allocation2 + $0x80] sm:$0xff]  ;;  %v958_v59 = vpack.c.bf16 %v927_v57, %v926_v17  ;;  %v1319_v7 = vsel %vm723_vm0, %v12025_v44, 0 }
  0x5f   : > { %617 = vst.msk [vmem:[#allocation2 + $0x139] sm:$0xff] %vm339_vm1, %v584_v11  ;;  %9729 = vmatprep.mubr.msk.bf16.mxu0 %vm339_vm1, %v12062_v6  ;;  %v638_v24 = vld [vmem:[#allocation2 + $0x90] sm:$0xff]  ;;  %v639_v15 = vld [vmem:[#allocation2 + $0x98] sm:$0xff]  ;;  %618 = vst.msk [vmem:[#allocation2 + $0x141] sm:$0xff] %vm339_vm1, %v585_v16  ;;  %v12082_v26 = vpack.c.bf16 %v637_v21, %v636_v20 }
  0x60   : > { %619 = vst.msk [vmem:[#allocation2 + $0x151] sm:$0xff] %vm339_vm1, %v586_v18  ;;  %620 = vst.msk [vmem:[#allocation2 + $0x159] sm:$0xff] %vm339_vm1, %v587_v19  ;;  %v12084_v27 = vpack.c.bf16 %v639_v15, %v638_v24  ;;  %v640_v28 = vld [vmem:[#allocation2 + $0xa8] sm:$0xff]  ;;  %v641_v29 = vld [vmem:[#allocation2 + $0xb0] sm:$0xff] }
  0x61   : > { %621 = vst.msk [vmem:[#allocation2 + $0x169] sm:$0xff] %vm339_vm1, %v588_v23  ;;  %622 = vst.msk [vmem:[#allocation2 + $0x171] sm:$0xff] %vm339_vm1, %v589_v25  ;;  %v642_v30 = vld [vmem:[#allocation2 + $0xc0] sm:$0xff]  ;;  %v643_v31 = vld [vmem:[#allocation2 + $0xc8] sm:$0xff]  ;;  %v12091_v32 = vpack.c.bf16 %v641_v29, %v640_v28 }
  0x62   : > { %v12093_v33 = vpack.c.bf16 %v643_v31, %v642_v30  ;;  %v644_v34 = vld [vmem:[#allocation2 + $0xd8] sm:$0xff]  ;;  %v645_v35 = vld [vmem:[#allocation2 + $0xe0] sm:$0xff]  ;;  %v935_v13 = vld [vmem:[#allocation2 + $0x69] sm:$0xff] }
  0x63   : > { %v646_v37 = vld [vmem:[#allocation2 + $0xf0] sm:$0xff]  ;;  %v647_v38 = vld [vmem:[#allocation2 + $0xf8] sm:$0xff]  ;;  %v12099_v39 = vpack.c.bf16 %v645_v35, %v644_v34  ;;  %v12137_v10 = vld [vmem:[%s13628_s3 + $0x6] sm:$0x3]  ;;  %v12147_v9 = vpack.c.bf16 %v935_v13, %v934_v12 }
  0x64   : > { %v12101_v40 = vpack.c.bf16 %v647_v38, %v646_v37  ;;  %v648_v42 = vld [vmem:[#allocation2 + $0x108] sm:$0xff]  ;;  %v649_v43 = vld [vmem:[#allocation2 + $0x110] sm:$0xff]  ;;  %v936_v14 = vld [vmem:[#allocation2 + $0x79] sm:$0xff] }
  0x65   : > { %v650_v45 = vld [vmem:[#allocation2 + $0x120] sm:$0xff]  ;;  %v651_v46 = vld [vmem:[#allocation2 + $0x128] sm:$0xff]  ;;  %v12107_v47 = vpack.c.bf16 %v649_v43, %v648_v42  ;;  %v933_v11 = vld [vmem:[#allocation2 + $0x51] sm:$0xff] }
  0x66   : > { %9730 = vmatmul.mubr.msk.bf16.gmra.mrb[8].mxu0 %vm339_vm1, %v12082_v26  ;;  %v12109_v48 = vpack.c.bf16 %v651_v46, %v650_v45  ;;  %v652_v49 = vld [vmem:[#allocation2 + $0x138] sm:$0xff]  ;;  %v653_v50 = vld [vmem:[#allocation2 + $0x140] sm:$0xff]  ;;  %v12145_v44 = vpack.c.bf16 %v933_v11, %v932_v8  ;;  %v940_v22 = vld [vmem:[#allocation2 + $0xa9] sm:$0xff] }
  0x67   : > { %9733 = vmatprep.mubr.msk.bf16.mxu0 %vm339_vm1, %v12084_v27  ;;  %v654_v51 = vld [vmem:[#allocation2 + $0x150] sm:$0xff]  ;;  %v655_v52 = vld [vmem:[#allocation2 + $0x158] sm:$0xff]  ;;  %v12115_v53 = vpack.c.bf16 %v653_v50, %v652_v49  ;;  %v937_v16 = vld [vmem:[#allocation2 + $0x81] sm:$0xff] }
  0x68   : > { %v12117_v54 = vpack.c.bf16 %v655_v52, %v654_v51  ;;  %v656_v55 = vld [vmem:[#allocation2 + $0x168] sm:$0xff]  ;;  %v657_v56 = vld [vmem:[#allocation2 + $0x170] sm:$0xff]  ;;  %v939_v19 = vld [vmem:[#allocation2 + $0x99] sm:$0xff]  ;;  %v12153_v20 = vpack.c.bf16 %v937_v16, %v936_v14 }
  0x69   : > { %v12123_v58 = vpack.c.bf16 %v657_v56, %v656_v55  ;;  %v938_v18 = vld [vmem:[#allocation2 + $0x91] sm:$0xff]  ;;  %v942_v24 = vld [vmem:[#allocation2 + $0xc1] sm:$0xff]  ;;  %v943_v15 = vld [vmem:[#allocation2 + $0xc9] sm:$0xff] }
  0x6a   : > { %v12155_v21 = vpack.c.bf16 %v939_v19, %v938_v18  ;;  %v941_v23 = vld [vmem:[#allocation2 + $0xb1] sm:$0xff]  ;;  %v12163_v28 = vpack.c.bf16 %v943_v15, %v942_v24  ;;  %v944_v29 = vld [vmem:[#allocation2 + $0xd9] sm:$0xff]  ;;  %v945_v30 = vld [vmem:[#allocation2 + $0xe1] sm:$0xff]  ;;  %v1613_v15 = vsel %vm723_vm0, %v12137_v10, 0 }
  0x6b   : > { %v12161_v25 = vpack.c.bf16 %v941_v23, %v940_v22  ;;  %v946_v31 = vld [vmem:[#allocation2 + $0xf1] sm:$0xff]  ;;  %v947_v34 = vld [vmem:[#allocation2 + $0xf9] sm:$0xff]  ;;  %v12169_v35 = vpack.c.bf16 %v945_v30, %v944_v29  ;;  %v948_v38 = vld [vmem:[#allocation2 + $0x109] sm:$0xff] }
  0x6c   : > { %v12171_v37 = vpack.c.bf16 %v947_v34, %v946_v31  ;;  %v949_v42 = vld [vmem:[#allocation2 + $0x111] sm:$0xff]  ;;  %v950_v43 = vld [vmem:[#allocation2 + $0x121] sm:$0xff]  ;;  %v951_v45 = vld [vmem:[#allocation2 + $0x129] sm:$0xff] }
  0x6d   : > { %v12177_v46 = vpack.c.bf16 %v949_v42, %v948_v38  ;;  %v12179_v49 = vpack.c.bf16 %v951_v45, %v950_v43  ;;  %v337_v50 = vld [vmem:[%s11854_s17 + $0xf0] sm:$0xff]  ;;  %v338_v51 = vld [vmem:[%s11854_s17 + $0xf8] sm:$0xff]  ;;  %v953_v17 = vld [vmem:[#allocation2 + $0x141] sm:$0xff] }
  0x6e   : > { %9734 = vmatmul.mubr.msk.bf16.gmra.mrb[12].mxu0 %vm339_vm1, %v12091_v32  ;;  %v519_v52 = vmul.f32 %v11847_v4, %v337_v50  ;;  %v520_v55 = vmul.f32 %v11847_v4, %v338_v51  ;;  %426 = vst.msk [vmem:[#allocation3 + $0x181] sm:$0xff] %vm339_vm1, %v337_v50  ;;  %427 = vst.msk [vmem:[#allocation3 + $0x189] sm:$0xff] %vm339_vm1, %v338_v51  ;;  %v952_v56 = vld [vmem:[#allocation2 + $0x139] sm:$0xff]  ;;  %v954_v57 = vld [vmem:[#allocation2 + $0x151] sm:$0xff] }
  0x6f   : > { %9737 = vmatprep.mubr.msk.bf16.mxu0 %vm339_vm1, %v12093_v33  ;;  %v12193_v62 = vpack.c.bf16 %v953_v17, %v952_v56  ;;  %v956_v8 = vld [vmem:[#allocation2 + $0x169] sm:$0xff]  ;;  %v957_v11 = vld [vmem:[#allocation2 + $0x171] sm:$0xff]  ;;  %v1222_v16 = vld [vmem:[#allocation2 + $0x1a] sm:$0xff] }
  0x70   : > { %v558_v60 = vadd.f32 %v11859_v5, %v519_v52  ;;  %v559_v61 = vadd.f32 %v11859_v5, %v520_v55  ;;  %v1220_v12 = vld [vmem:[#allocation2 + $0x2] sm:$0xff]  ;;  %v1221_v5 = vld [vmem:[#allocation2 + $0xa] sm:$0xff]  ;;  %v12203_v13 = vpack.c.bf16 %v957_v11, %v956_v8  ;;  %v1224_v19 = vld [vmem:[#allocation2 + $0x32] sm:$0xff] }
  0x71   : > { %v1252_v14 = vpack.c.bf16 %v1221_v5, %v1220_v12  ;;  %v1223_v18 = vld [vmem:[#allocation2 + $0x22] sm:$0xff]  ;;  %v1225_v22 = vld [vmem:[#allocation2 + $0x3a] sm:$0xff]  ;;  %v1226_v30 = vld [vmem:[#allocation2 + $0x4a] sm:$0xff] }
  0x72   : > { %v590_v63 = vmax.f32 %v558_v60, 0.0  ;;  %v12208_v23 = vpack.c.bf16 %v1223_v18, %v1222_v16  ;;  %v12210_v24 = vpack.c.bf16 %v1225_v22, %v1224_v19  ;;  %v8866_v29 = vld [vmem:[%s13628_s3 + $0x8] sm:$0x3]  ;;  %v1227_v31 = vld [vmem:[#allocation2 + $0x52] sm:$0xff]  ;;  %v1229_v38 = vld [vmem:[#allocation2 + $0x6a] sm:$0xff] }
  0x73   : > { %v1228_v34 = vld [vmem:[#allocation2 + $0x62] sm:$0xff]  ;;  %v12222_v42 = vpack.c.bf16 %v1227_v31, %v1226_v30  ;;  %v1230_v43 = vld [vmem:[#allocation2 + $0x7a] sm:$0xff]  ;;  %v1232_v50 = vld [vmem:[#allocation2 + $0x92] sm:$0xff] }
  0x74   : > { %623 = vst.msk [vmem:[#allocation2 + $0x181] sm:$0xff] %vm339_vm1, %v590_v63  ;;  %v1231_v45 = vld [vmem:[#allocation2 + $0x82] sm:$0xff]  ;;  %v1233_v51 = vld [vmem:[#allocation2 + $0x9a] sm:$0xff]  ;;  %v1234_v56 = vld [vmem:[#allocation2 + $0xaa] sm:$0xff] }
  0x75   : > { %v12230_v52 = vpack.c.bf16 %v1231_v45, %v1230_v43  ;;  %v12232_v55 = vpack.c.bf16 %v1233_v51, %v1232_v50  ;;  %v1235_v17 = vld [vmem:[#allocation2 + $0xb2] sm:$0xff]  ;;  %v1238_v63 = vld [vmem:[#allocation2 + $0xda] sm:$0xff]  ;;  %v1244_v18 = vld [vmem:[#allocation2 + $0x122] sm:$0xff] }
  0x76   : > { %9738 = vmatmul.mubr.msk.bf16.gmra.mrb[16].mxu0 %vm339_vm1, %v12099_v39  ;;  %v12238_v60 = vpack.c.bf16 %v1235_v17, %v1234_v56  ;;  %v1240_v8 = vld [vmem:[#allocation2 + $0xf2] sm:$0xff]  ;;  %v1241_v11 = vld [vmem:[#allocation2 + $0xfa] sm:$0xff]  ;;  %v1245_v19 = vld [vmem:[#allocation2 + $0x12a] sm:$0xff]  ;;  %v1907_v17 = vsel %vm723_vm0, %v8866_v29, 0 }
  0x77   : > { %9741 = vmatprep.mubr.msk.bf16.mxu0 %vm339_vm1, %v12101_v40  ;;  %v12248_v5 = vpack.c.bf16 %v1241_v11, %v1240_v8  ;;  %v1243_v16 = vld [vmem:[#allocation2 + $0x112] sm:$0xff]  ;;  %v1246_v30 = vld [vmem:[#allocation2 + $0x13a] sm:$0xff]  ;;  %v1247_v31 = vld [vmem:[#allocation2 + $0x142] sm:$0xff] }
  0x78   : > { %v12262_v43 = vpack.c.bf16 %v1247_v31, %v1246_v30  ;;  %v1250_v50 = vld [vmem:[#allocation2 + $0x16a] sm:$0xff]  ;;  %v1251_v51 = vld [vmem:[#allocation2 + $0x172] sm:$0xff] }
  0x79   : > { %v12270_v56 = vpack.c.bf16 %v1251_v51, %v1250_v50  ;;  %v4598_v8 = vld [vmem:[#allocation3 + $0xd9] sm:$0xff]  ;;  %v4599_v11 = vld [vmem:[#allocation3 + $0xe1] sm:$0xff] }
  0x7a   : > { %v4604_v50 = vld [vmem:[#allocation3 + $0x121] sm:$0xff] }
  0x7e   : > { %9742 = vmatmul.mubr.msk.bf16.gmra.mrb[20].mxu0 %vm339_vm1, %v12107_v47 }
  0x7f   : > { %9745 = vmatprep.mubr.msk.bf16.mxu0 %vm339_vm1, %v12109_v48 }
  0x86   : > { %9746 = vmatmul.mubr.msk.bf16.gmra.mrb[24].mxu0 %vm339_vm1, %v12115_v53 }
  0x87   : > { %9749 = vmatprep.mubr.msk.bf16.mxu0 %vm339_vm1, %v12117_v54 }
  0x8e   : > { %9750 = vmatmul.mubr.msk.bf16.gmra.mrb[28].mxu0 %vm339_vm1, %v12123_v58 }
  0x8f   : > { %9755 = vmatprep.mubr.msk.bf16.mxu0 %vm339_vm1, %v958_v59  ;;  %v955_v59 = vld [vmem:[#allocation2 + $0x159] sm:$0xff] }
  0x90   : > { %v12195_v4 = vpack.c.bf16 %v955_v59, %v954_v57  ;;  %v1236_v57 = vld [vmem:[#allocation2 + $0xc2] sm:$0xff]  ;;  %v1237_v59 = vld [vmem:[#allocation2 + $0xca] sm:$0xff] }
  0x96   : > { %9756 = vmatmul.mubr.msk.bf16.vlgmr.msra.gmra.mrb[0].mxu0 %vm339_vm1, %v12128_v1 }
  0x97   : > { %9788 = vmatpush3.bf16.msra.mxu0 %v1319_v7  ;;  %9759 = vmatprep.mubr.msk.bf16.mxu0 %vm339_vm1, %v12130_v3  ;;  %v591_v7 = vmax.f32 %v559_v61, 0.0  ;;  %v12240_v61 = vpack.c.bf16 %v1237_v59, %v1236_v57  ;;  %v8883_v57 = vld [vmem:[%s13628_s3 + $0xa] sm:$0x3] }
  0x98   : > { %11506 = vmatprep.subr.msk.bf16.mxu0 %vm723_vm0, %v12137_v10  ;;  %v12224_v10 = vpack.c.bf16 %v1229_v38, %v1228_v34  ;;  %v1248_v34 = vld [vmem:[#allocation2 + $0x152] sm:$0xff]  ;;  %v1249_v38 = vld [vmem:[#allocation2 + $0x15a] sm:$0xff] }
  0x99   : > { %624 = vst.msk [vmem:[#allocation2 + $0x189] sm:$0xff] %vm339_vm1, %v591_v7  ;;  %v1239_v7 = vld [vmem:[#allocation2 + $0xe2] sm:$0xff]  ;;  %v12264_v45 = vpack.c.bf16 %v1249_v38, %v1248_v34  ;;  %v4602_v34 = vld [vmem:[#allocation3 + $0x109] sm:$0xff] }
  0x9a   : > { %v12246_v12 = vpack.c.bf16 %v1239_v7, %v1238_v63  ;;  %v12358_v63 = vld [vmem:[%s13628_s3 + $0xe] sm:$0x3]  ;;  %v9019_v7 = vld [vmem:[%s13631_s6 + $0x8] sm:$0x3] }
  0x9b   : > { %11517 = vmatprep.subr.msk.bf16.mxu1 %vm723_vm0, %v9019_v7  ;;  %v4603_v38 = vld [vmem:[#allocation3 + $0x111] sm:$0xff] }
  0x9c   : > { %v12391_v51 = vpack.c.bf16 %v4603_v38, %v4602_v34  ;;  %v9053_v34 = vld [vmem:[%s13631_s6 + $0xc] sm:$0x3] }
  0x9e   : > { %9760 = vmatmul.mubr.msk.bf16.gmra.mrb[4].mxu0 %vm339_vm1, %v12145_v44 }
  0x9f   : > { %9763 = vmatprep.mubr.msk.bf16.mxu0 %vm339_vm1, %v12147_v9 }
  0xa6   : > { %9764 = vmatmul.mubr.msk.bf16.gmra.mrb[8].mxu0 %vm339_vm1, %v12153_v20 }
  0xa7   : > { %9767 = vmatprep.mubr.msk.bf16.mxu0 %vm339_vm1, %v12155_v21 }
  0xae   : > { %9768 = vmatmul.mubr.msk.bf16.gmra.mrb[12].mxu0 %vm339_vm1, %v12161_v25 }
  0xaf   : > { %9771 = vmatprep.mubr.msk.bf16.mxu0 %vm339_vm1, %v12163_v28 }
  0xb6   : > { %9772 = vmatmul.mubr.msk.bf16.gmra.mrb[16].mxu0 %vm339_vm1, %v12169_v35 }
  0xb7   : > { %9775 = vmatprep.mubr.msk.bf16.mxu0 %vm339_vm1, %v12171_v37 }
  0xbe   : > { %9776 = vmatmul.mubr.msk.bf16.gmra.mrb[20].mxu0 %vm339_vm1, %v12177_v46 }
  0xbf   : > { %9779 = vmatprep.mubr.msk.bf16.mxu0 %vm339_vm1, %v12179_v49 }
  0xc6   : > { %9780 = vmatmul.mubr.msk.bf16.gmra.mrb[24].mxu0 %vm339_vm1, %v12193_v62 }
  0xc7   : > { %9783 = vmatprep.mubr.msk.bf16.mxu0 %vm339_vm1, %v12195_v4 }
  0xce   : > { %9784 = vmatmul.mubr.msk.bf16.gmra.mrb[28].mxu0 %vm339_vm1, %v12203_v13 }
  0xcf   : > { %9789 = vmatprep.mubr.msk.bf16.mxu0 %vm339_vm1, %v1252_v14  ;;  %v1242_v14 = vld [vmem:[#allocation2 + $0x10a] sm:$0xff] }
  0xd0   : > { %v12254_v22 = vpack.c.bf16 %v1243_v16, %v1242_v14  ;;  %v9036_v14 = vld [vmem:[%s13631_s6 + $0xa] sm:$0x3]  ;;  %v12376_v16 = vpack.c.bf16 %v4599_v11, %v4598_v8  ;;  %v4612_v8 = vld [vmem:[#allocation3 + $0x181] sm:$0xff] }
  0xd1   : > { %v4975_v31 = vsel %vm723_vm0, %v9036_v14, 0 }
  0xd2   : > { %10179 = vmatprep.mubr.msk.bf16.mxu1 %vm339_vm1, %v12376_v16 }
  0xd6   : > { %9790 = vmatmul.mubr.msk.bf16.vlgmr.msra.gmra.mrb[0].mxu0 %vm339_vm1, %v12208_v23 }
  0xd7   : > { %9822 = vmatpush3.bf16.msra.mxu0 %v1613_v15  ;;  %9793 = vmatprep.mubr.msk.bf16.mxu0 %vm339_vm1, %v12210_v24  ;;  %v12256_v15 = vpack.c.bf16 %v1245_v19, %v1244_v18  ;;  %v4600_v18 = vld [vmem:[#allocation3 + $0xf1] sm:$0xff]  ;;  %v4601_v19 = vld [vmem:[#allocation3 + $0xf9] sm:$0xff] }
  0xd8   : > { %11507 = vmatprep.subr.msk.bf16.mxu0 %vm723_vm0, %v8866_v29  ;;  %v12379_v30 = vpack.c.bf16 %v4601_v19, %v4600_v18  ;;  %v4876_v19 = vld [vmem:[#allocation3 + $0x1a] sm:$0xff] }
  0xde   : > { %9794 = vmatmul.mubr.msk.bf16.gmra.mrb[4].mxu0 %vm339_vm1, %v12222_v42 }
  0xdf   : > { %9797 = vmatprep.mubr.msk.bf16.mxu0 %vm339_vm1, %v12224_v10 }
  0xe6   : > { %9798 = vmatmul.mubr.msk.bf16.gmra.mrb[8].mxu0 %vm339_vm1, %v12230_v52 }
  0xe7   : > { %9801 = vmatprep.mubr.msk.bf16.mxu0 %vm339_vm1, %v12232_v55 }
  0xee   : > { %9802 = vmatmul.mubr.msk.bf16.gmra.mrb[12].mxu0 %vm339_vm1, %v12238_v60 }
  0xef   : > { %9805 = vmatprep.mubr.msk.bf16.mxu0 %vm339_vm1, %v12240_v61 }
  0xf6   : > { %9806 = vmatmul.mubr.msk.bf16.gmra.mrb[16].mxu0 %vm339_vm1, %v12246_v12 }
  0xf7   : > { %9809 = vmatprep.mubr.msk.bf16.mxu0 %vm339_vm1, %v12248_v5 }
  0xfe   : > { %9810 = vmatmul.mubr.msk.bf16.gmra.mrb[20].mxu0 %vm339_vm1, %v12254_v22 }
  0xff   : > { %9813 = vmatprep.mubr.msk.bf16.mxu0 %vm339_vm1, %v12256_v15 }
 0x106   : > { %9814 = vmatmul.mubr.msk.bf16.gmra.mrb[24].mxu0 %vm339_vm1, %v12262_v43 }
 0x107   : > { %9817 = vmatprep.mubr.msk.bf16.mxu0 %vm339_vm1, %v12264_v45 }
 0x10e   : > { %9818 = vmatmul.mubr.msk.bf16.gmra.mrb[28].mxu0 %vm339_vm1, %v12270_v56 }
 0x10f   : > { %9823 = vmatprep.mubr.msk.bf16.mxu0 %vm339_vm1, %v12013_v36  ;;  %v1544_v36 = vld [vmem:[#allocation2 + $0x180] sm:$0xff] }
 0x116   : > { %9824 = vmatmul.mubr.msk.bf16.vlgmr.msra.gmra.mrb[0].mxu0 %vm339_vm1, %v12017_v41  ;;  %v1545_v41 = vld [vmem:[#allocation2 + $0x188] sm:$0xff] }
 0x117   : > { %9856 = vmatpush3.bf16.msra.mxu0 %v1907_v17  ;;  %9827 = vmatprep.mubr.msk.bf16.mxu0 %vm339_vm1, %v12053_v0  ;;  %v12309_v0 = vpack.c.bf16 %v1545_v41, %v1544_v36  ;;  %v4605_v17 = vld [vmem:[#allocation3 + $0x129] sm:$0xff]  ;;  %v4606_v36 = vld [vmem:[#allocation3 + $0x139] sm:$0xff]  ;;  %v4607_v41 = vld [vmem:[#allocation3 + $0x141] sm:$0xff] }
 0x118   : > { %11508 = vmatprep.subr.msk.bf16.mxu0 %vm723_vm0, %v8883_v57 }
 0x11e   : > { %9828 = vmatmul.mubr.msk.bf16.gmra.mrb[4].mxu0 %vm339_vm1, %v12062_v6  ;;  %v2201_v6 = vsel %vm723_vm0, %v8883_v57, 0  ;;  %v12393_v57 = vpack.c.bf16 %v4605_v17, %v4604_v50  ;;  %v4878_v50 = vld [vmem:[#allocation3 + $0x32] sm:$0xff]  ;;  %v4879_v17 = vld [vmem:[#allocation3 + $0x3a] sm:$0xff] }
 0x11f   : > { %9831 = vmatprep.mubr.msk.bf16.mxu0 %vm339_vm1, %v12082_v26  ;;  %v8900_v26 = vld [vmem:[%s13628_s3 + $0xc] sm:$0x3] }
 0x120   : > { %v2496_v59 = vsel %vm723_vm0, %v8900_v26, 0 }
 0x126   : > { %9832 = vmatmul.mubr.msk.bf16.gmra.mrb[8].mxu0 %vm339_vm1, %v12084_v27  ;;  %v1838_v27 = vld [vmem:[#allocation2 + $0x181] sm:$0xff] }
 0x127   : > { %9835 = vmatprep.mubr.msk.bf16.mxu0 %vm339_vm1, %v12091_v32 }
 0x12e   : > { %9836 = vmatmul.mubr.msk.bf16.gmra.mrb[12].mxu0 %vm339_vm1, %v12093_v33 }
 0x12f   : > { %9839 = vmatprep.mubr.msk.bf16.mxu0 %vm339_vm1, %v12099_v39 }
 0x136   : > { %9840 = vmatmul.mubr.msk.bf16.gmra.mrb[16].mxu0 %vm339_vm1, %v12101_v40 }
 0x137   : > { %9843 = vmatprep.mubr.msk.bf16.mxu0 %vm339_vm1, %v12107_v47 }
 0x13e   : > { %9844 = vmatmul.mubr.msk.bf16.gmra.mrb[20].mxu0 %vm339_vm1, %v12109_v48 }
 0x13f   : > { %9847 = vmatprep.mubr.msk.bf16.mxu0 %vm339_vm1, %v12115_v53 }
 0x146   : > { %9848 = vmatmul.mubr.msk.bf16.gmra.mrb[24].mxu0 %vm339_vm1, %v12117_v54 }
 0x147   : > { %9851 = vmatprep.mubr.msk.bf16.mxu0 %vm339_vm1, %v12123_v58 }
 0x14e   : > { %9852 = vmatmul.mubr.msk.bf16.gmra.mrb[28].mxu0 %vm339_vm1, %v12309_v0 }
 0x14f   : > { %9857 = vmatprep.mubr.msk.bf16.mxu0 %vm339_vm1, %v12128_v1  ;;  %v1839_v1 = vld [vmem:[#allocation2 + $0x189] sm:$0xff] }
 0x150   : > { %v12348_v29 = vpack.c.bf16 %v1839_v1, %v1838_v27  ;;  %v4609_v27 = vld [vmem:[#allocation3 + $0x159] sm:$0xff] }
 0x156   : > { %9858 = vmatmul.mubr.msk.bf16.vlgmr.msra.gmra.mrb[0].mxu0 %vm339_vm1, %v12130_v3 }
 0x157   : > { %9890 = vmatpush3.bf16.msra.mxu0 %v2201_v6  ;;  %9861 = vmatprep.mubr.msk.bf16.mxu0 %vm339_vm1, %v12145_v44  ;;  %v4608_v6 = vld [vmem:[#allocation3 + $0x151] sm:$0xff] }
 0x158   : > { %11509 = vmatprep.subr.msk.bf16.mxu0 %vm723_vm0, %v8900_v26  ;;  %v12403_v26 = vpack.c.bf16 %v4607_v41, %v4606_v36  ;;  %v12405_v1 = vpack.c.bf16 %v4609_v27, %v4608_v6  ;;  %v12431_v36 = vpack.c.bf16 %v4879_v17, %v4878_v50  ;;  %v4880_v41 = vld [vmem:[#allocation3 + $0x4a] sm:$0xff]  ;;  %v4882_v6 = vld [vmem:[#allocation3 + $0x62] sm:$0xff] }
 0x159   : > { %v2398_v50 = vld [vmem:[#allocation2 + $0x38] sm:$0xff] }
 0x15e   : > { %9862 = vmatmul.mubr.msk.bf16.gmra.mrb[4].mxu0 %vm339_vm1, %v12147_v9 }
 0x15f   : > { %9865 = vmatprep.mubr.msk.bf16.mxu0 %vm339_vm1, %v12153_v20 }
 0x166   : > { %9866 = vmatmul.mubr.msk.bf16.gmra.mrb[8].mxu0 %vm339_vm1, %v12155_v21 }
 0x167   : > { %9869 = vmatprep.mubr.msk.bf16.mxu0 %vm339_vm1, %v12161_v25 }
 0x16e   : > { %9870 = vmatmul.mubr.msk.bf16.gmra.mrb[12].mxu0 %vm339_vm1, %v12163_v28 }
 0x16f   : > { %9873 = vmatprep.mubr.msk.bf16.mxu0 %vm339_vm1, %v12169_v35 }
 0x176   : > { %9874 = vmatmul.mubr.msk.bf16.gmra.mrb[16].mxu0 %vm339_vm1, %v12171_v37 }
 0x177   : > { %9877 = vmatprep.mubr.msk.bf16.mxu0 %vm339_vm1, %v12177_v46 }
 0x17e   : > { %9878 = vmatmul.mubr.msk.bf16.gmra.mrb[20].mxu0 %vm339_vm1, %v12179_v49 }
 0x17f   : > { %9881 = vmatprep.mubr.msk.bf16.mxu0 %vm339_vm1, %v12193_v62 }
 0x186   : > { %9882 = vmatmul.mubr.msk.bf16.gmra.mrb[24].mxu0 %vm339_vm1, %v12195_v4 }
 0x187   : > { %9885 = vmatprep.mubr.msk.bf16.mxu0 %vm339_vm1, %v12203_v13 }
 0x18e   : > { %9886 = vmatmul.mubr.msk.bf16.gmra.mrb[28].mxu0 %vm339_vm1, %v12348_v29 }
 0x18f   : > { %9891 = vmatprep.mubr.msk.bf16.mxu0 %vm339_vm1, %v12208_v23  ;;  %v12368_v23 = vsel %vm723_vm0, %v9019_v7, 0  ;;  %v4611_v7 = vld [vmem:[#allocation3 + $0x171] sm:$0xff] }
 0x190   : > { %13640 = vst [vmem:[#allocation5_spill] sm:$0xff] %v12368_v23  ;;  %10638 = vmatpush3.bf16.msra.mxu1 %v12368_v23 }
 0x191   : > { %11518 = vmatprep.subr.msk.bf16.mxu1 %vm723_vm0, %v9036_v14  ;;  %v4613_v14 = vld [vmem:[#allocation3 + $0x189] sm:$0xff] }
 0x192   : > { %v12417_v18 = vpack.c.bf16 %v4613_v14, %v4612_v8  ;;  %v4885_v8 = vld [vmem:[#allocation3 + $0x82] sm:$0xff]  ;;  %v4886_v14 = vld [vmem:[#allocation3 + $0x92] sm:$0xff] }
 0x193   : > { %10180 = vmatmul.mubr.msk.bf16.vlgmr.msra.gmra.mrb[0].mxu1 %vm339_vm1, %v12379_v30 }
 0x194   : > { %10196 = vmatpush3.bf16.msra.mxu1 %v4975_v31  ;;  %10183 = vmatprep.mubr.msk.bf16.mxu1 %vm339_vm1, %v12391_v51  ;;  %v4877_v31 = vld [vmem:[#allocation3 + $0x22] sm:$0xff] }
 0x195   : > { %v4908_v38 = vpack.c.bf16 %v4877_v31, %v4876_v19  ;;  %11519 = vmatprep.subr.msk.bf16.mxu1 %vm723_vm0, %v9053_v34  ;;  %v2133_v19 = vld [vmem:[#allocation2 + $0x18a] sm:$0xff] }
 0x196   : > { %9892 = vmatmul.mubr.msk.bf16.vlgmr.msra.gmra.mrb[0].mxu0 %vm339_vm1, %v12210_v24 }
 0x197   : > { %9924 = vmatpush3.bf16.msra.mxu0 %v2496_v59  ;;  %9895 = vmatprep.mubr.msk.bf16.mxu0 %vm339_vm1, %v12222_v42  ;;  %v4610_v59 = vld [vmem:[#allocation3 + $0x169] sm:$0xff] }
 0x198   : > { %11510 = vmatprep.subr.msk.bf16.mxu0 %vm723_vm0, %v12358_v63  ;;  %v12415_v11 = vpack.c.bf16 %v4611_v7, %v4610_v59  ;;  %v4883_v59 = vld [vmem:[#allocation3 + $0x6a] sm:$0xff] }
 0x199   : > { %v12443_v7 = vpack.c.bf16 %v4883_v59, %v4882_v6  ;;  %v2399_v6 = vld [vmem:[#allocation2 + $0x48] sm:$0xff]  ;;  %v2400_v59 = vld [vmem:[#allocation2 + $0x50] sm:$0xff] }
 0x19b   : > { %10184 = vmatmul.mubr.msk.bf16.gmra.mrb[4].mxu1 %vm339_vm1, %v12393_v57 }
 0x19c   : > { %10187 = vmatprep.mubr.msk.bf16.mxu1 %vm339_vm1, %v12403_v26 }
 0x19e   : > { %9896 = vmatmul.mubr.msk.bf16.gmra.mrb[4].mxu0 %vm339_vm1, %v12224_v10 }
 0x19f   : > { %9899 = vmatprep.mubr.msk.bf16.mxu0 %vm339_vm1, %v12230_v52 }
 0x1a3   : > { %10188 = vmatmul.mubr.msk.bf16.gmra.mrb[8].mxu1 %vm339_vm1, %v12405_v1 }
 0x1a4   : > { %10191 = vmatprep.mubr.msk.bf16.mxu1 %vm339_vm1, %v12415_v11 }
 0x1a6   : > { %9900 = vmatmul.mubr.msk.bf16.gmra.mrb[8].mxu0 %vm339_vm1, %v12232_v55 }
 0x1a7   : > { %9903 = vmatprep.mubr.msk.bf16.mxu0 %vm339_vm1, %v12238_v60 }
 0x1ab   : > { %10192 = vmatmul.mubr.msk.bf16.gmra.mrb[12].mxu1 %vm339_vm1, %v12417_v18 }
 0x1ac   : > { %10197 = vmatprep.mubr.msk.bf16.mxu1 %vm339_vm1, %v4908_v38  ;;  %v2397_v38 = vld [vmem:[#allocation2 + $0x30] sm:$0xff] }
 0x1ae   : > { %9904 = vmatmul.mubr.msk.bf16.gmra.mrb[12].mxu0 %vm339_vm1, %v12240_v61 }
 0x1af   : > { %9907 = vmatprep.mubr.msk.bf16.mxu0 %vm339_vm1, %v12246_v12 }
 0x1b3   : > { %10198 = vmatmul.mubr.msk.bf16.vlgmr.msra.gmra.mrb[16].mxu1 %vm339_vm1, %v12431_v36 }
 0x1b6   : > { %9908 = vmatmul.mubr.msk.bf16.gmra.mrb[16].mxu0 %vm339_vm1, %v12248_v5  ;;  %v5270_v5 = vsel %vm723_vm0, %v9053_v34, 0  ;;  %v4887_v34 = vld [vmem:[#allocation3 + $0x9a] sm:$0xff] }
 0x1b7   : > { %9911 = vmatprep.mubr.msk.bf16.mxu0 %vm339_vm1, %v12254_v22  ;;  %10230 = vmatpush3.bf16.msra.mxu1 %v5270_v5  ;;  %v4881_v22 = vld [vmem:[#allocation3 + $0x52] sm:$0xff]  ;;  %v12455_v17 = vpack.c.bf16 %v4887_v34, %v4886_v14  ;;  %v2430_v34 = vpack.c.bf16 %v2400_v59, %v2399_v6  ;;  %v2403_v6 = vld [vmem:[#allocation2 + $0x78] sm:$0xff] }
 0x1b8   : > { %v12441_v27 = vpack.c.bf16 %v4881_v22, %v4880_v41  ;;  %v4889_v41 = vld [vmem:[#allocation3 + $0xb2] sm:$0xff]  ;;  %v4890_v22 = vld [vmem:[#allocation3 + $0xc2] sm:$0xff] }
 0x1b9   : > { %v2401_v14 = vld [vmem:[#allocation2 + $0x60] sm:$0xff] }
 0x1ba   : > { %10201 = vmatprep.mubr.msk.bf16.mxu1 %vm339_vm1, %v12441_v27  ;;  %v2404_v59 = vld [vmem:[#allocation2 + $0x80] sm:$0xff] }
 0x1bb   : > { %10202 = vmatmul.mubr.msk.bf16.gmra.mrb[20].mxu1 %vm339_vm1, %v12443_v7 }
 0x1be   : > { %9912 = vmatmul.mubr.msk.bf16.gmra.mrb[20].mxu0 %vm339_vm1, %v12256_v15  ;;  %v4884_v15 = vld [vmem:[#allocation3 + $0x7a] sm:$0xff] }
 0x1bf   : > { %9915 = vmatprep.mubr.msk.bf16.mxu0 %vm339_vm1, %v12262_v43  ;;  %v2132_v43 = vld [vmem:[#allocation2 + $0x182] sm:$0xff]  ;;  %v12453_v31 = vpack.c.bf16 %v4885_v8, %v4884_v15  ;;  %v4891_v8 = vld [vmem:[#allocation3 + $0xca] sm:$0xff] }
 0x1c0   : > { %v12459_v5 = vpack.c.bf16 %v2133_v19, %v2132_v43  ;;  %v2402_v43 = vld [vmem:[#allocation2 + $0x68] sm:$0xff]  ;;  %v12468_v19 = vpack.c.bf16 %v4891_v8, %v4890_v22 }
 0x1c1   : > { %10205 = vmatprep.mubr.msk.bf16.mxu1 %vm339_vm1, %v12453_v31  ;;  %v4894_v22 = vld [vmem:[#allocation3 + $0xf2] sm:$0xff] }
 0x1c2   : > { %13641 = vst [vmem:[#allocation6_spill] sm:$0xff] %v12468_v19 }
 0x1c3   : > { %10206 = vmatmul.mubr.msk.bf16.gmra.mrb[24].mxu1 %vm339_vm1, %v12455_v17 }
 0x1c6   : > { %9916 = vmatmul.mubr.msk.bf16.gmra.mrb[24].mxu0 %vm339_vm1, %v12264_v45  ;;  %v2429_v45 = vpack.c.bf16 %v2398_v50, %v2397_v38  ;;  %v2431_v38 = vpack.c.bf16 %v2402_v43, %v2401_v14  ;;  %v2790_v50 = vsel %vm723_vm0, %v12358_v63, 0  ;;  %v4895_v63 = vld [vmem:[#allocation3 + $0xfa] sm:$0xff]  ;;  %v2406_v43 = vld [vmem:[#allocation2 + $0x98] sm:$0xff] }
 0x1c7   : > { %9919 = vmatprep.mubr.msk.bf16.mxu0 %vm339_vm1, %v12270_v56  ;;  %v4888_v56 = vld [vmem:[#allocation3 + $0xaa] sm:$0xff]  ;;  %v2405_v14 = vld [vmem:[#allocation2 + $0x90] sm:$0xff]  ;;  %v12487_v2 = vpack.c.bf16 %v4895_v63, %v4894_v22  ;;  %v4902_v63 = vld [vmem:[#allocation3 + $0x152] sm:$0xff] }
 0x1c8   : > { %v12466_v15 = vpack.c.bf16 %v4889_v41, %v4888_v56  ;;  %v4892_v56 = vld [vmem:[#allocation3 + $0xda] sm:$0xff]  ;;  %v4893_v41 = vld [vmem:[#allocation3 + $0xe2] sm:$0xff]  ;;  %v2433_v23 = vpack.c.bf16 %v2406_v43, %v2405_v14  ;;  %v4905_v43 = vld [vmem:[#allocation3 + $0x172] sm:$0xff] }
 0x1c9   : > { %v12483_v8 = vpack.c.bf16 %v4893_v41, %v4892_v56  ;;  %v4898_v56 = vld [vmem:[#allocation3 + $0x122] sm:$0xff]  ;;  %v4903_v14 = vld [vmem:[#allocation3 + $0x15a] sm:$0xff] }
 0x1ca   : > { %10209 = vmatprep.mubr.msk.bf16.mxu1 %vm339_vm1, %v12466_v15 }
 0x1cb   : > { %10210 = vmatmul.mubr.msk.bf16.gmra.mrb[28].mxu1 %vm339_vm1, %v12468_v19  ;;  %v4899_v19 = vld [vmem:[#allocation3 + $0x12a] sm:$0xff] }
 0x1cc   : > { %10213 = vmatprep.mubr.msk.bf16.mxu1 %vm339_vm1, %v12483_v8  ;;  %v12497_v22 = vpack.c.bf16 %v4899_v19, %v4898_v56  ;;  %v12509_v19 = vpack.c.bf16 %v4903_v14, %v4902_v63  ;;  %v5172_v56 = vld [vmem:[#allocation3 + $0x38] sm:$0xff]  ;;  %v5174_v63 = vld [vmem:[#allocation3 + $0x50] sm:$0xff] }
 0x1ce   : > { %9920 = vmatmul.mubr.msk.bf16.gmra.mrb[28].mxu0 %vm339_vm1, %v12459_v5 }
 0x1cf   : > { %9925 = vmatprep.mubr.msk.bf16.mxu0 %vm339_vm1, %v2429_v45  ;;  %v12479_v45 = vld [vmem:[%s13628_s3 + $0x10] sm:$0x3] }
 0x1d3   : > { %10214 = vmatmul.mubr.msk.bf16.gmra.mrb[0].mxu1 %vm339_vm1, %v12487_v2 }
 0x1d6   : > { %9926 = vmatmul.mubr.msk.bf16.vlgmr.msra.gmra.mrb[0].mxu0 %vm339_vm1, %v2430_v34  ;;  %v2432_v34 = vpack.c.bf16 %v2404_v59, %v2403_v6  ;;  %v4900_v6 = vld [vmem:[#allocation3 + $0x13a] sm:$0xff]  ;;  %v4901_v59 = vld [vmem:[#allocation3 + $0x142] sm:$0xff] }
 0x1d7   : > { %9958 = vmatpush3.bf16.msra.mxu0 %v2790_v50  ;;  %9929 = vmatprep.mubr.msk.bf16.mxu0 %vm339_vm1, %v2431_v38  ;;  %v4896_v38 = vld [vmem:[#allocation3 + $0x10a] sm:$0xff]  ;;  %v4897_v50 = vld [vmem:[#allocation3 + $0x112] sm:$0xff] }
 0x1d8   : > { %11511 = vmatprep.subr.msk.bf16.mxu0 %vm723_vm0, %v12479_v45  ;;  %v12495_v41 = vpack.c.bf16 %v4897_v50, %v4896_v38  ;;  %v4907_v38 = vld [vmem:[#allocation3 + $0x18a] sm:$0xff] }
 0x1da   : > { %10217 = vmatprep.mubr.msk.bf16.mxu1 %vm339_vm1, %v12495_v41 }
 0x1db   : > { %10218 = vmatmul.mubr.msk.bf16.gmra.mrb[4].mxu1 %vm339_vm1, %v12497_v22 }
 0x1de   : > { %9930 = vmatmul.mubr.msk.bf16.gmra.mrb[4].mxu0 %vm339_vm1, %v2432_v34  ;;  %v4906_v34 = vld [vmem:[#allocation3 + $0x182] sm:$0xff] }
 0x1df   : > { %9933 = vmatprep.mubr.msk.bf16.mxu0 %vm339_vm1, %v2433_v23  ;;  %v12507_v23 = vpack.c.bf16 %v4901_v59, %v4900_v6  ;;  %v12521_v50 = vpack.c.bf16 %v4907_v38, %v4906_v34  ;;  %v5173_v59 = vld [vmem:[#allocation3 + $0x48] sm:$0xff]  ;;  %v5178_v38 = vld [vmem:[#allocation3 + $0x80] sm:$0xff] }
 0x1e0   : > { %v12537_v14 = vpack.c.bf16 %v5174_v63, %v5173_v59  ;;  %v2428_v59 = vld [vmem:[#allocation2 + $0x1a0] sm:$0xff] }
 0x1e1   : > { %10221 = vmatprep.mubr.msk.bf16.mxu1 %vm339_vm1, %v12507_v23 }
 0x1e3   : > { %10222 = vmatmul.mubr.msk.bf16.gmra.mrb[8].mxu1 %vm339_vm1, %v12509_v19 }
 0x1e6   : > { %9934 = vmatmul.mubr.msk.bf16.gmra.mrb[8].mxu0 %vm339_vm1, %v12091_v32  ;;  %v4904_v32 = vld [vmem:[#allocation3 + $0x16a] sm:$0xff] }
 0x1e7   : > { %9937 = vmatprep.mubr.msk.bf16.mxu0 %vm339_vm1, %v12093_v33  ;;  %v12519_v33 = vpack.c.bf16 %v4905_v43, %v4904_v32  ;;  %v5176_v32 = vld [vmem:[#allocation3 + $0x68] sm:$0xff]  ;;  %v5177_v43 = vld [vmem:[#allocation3 + $0x78] sm:$0xff] }
 0x1e9   : > { %10225 = vmatprep.mubr.msk.bf16.mxu1 %vm339_vm1, %v12519_v33 }
 0x1eb   : > { %10226 = vmatmul.mubr.msk.bf16.gmra.mrb[12].mxu1 %vm339_vm1, %v12521_v50 }
 0x1ee   : > { %9938 = vmatmul.mubr.msk.bf16.gmra.mrb[12].mxu0 %vm339_vm1, %v12099_v39  ;;  %v5171_v39 = vld [vmem:[#allocation3 + $0x30] sm:$0xff] }
 0x1ef   : > { %9941 = vmatprep.mubr.msk.bf16.mxu0 %vm339_vm1, %v12101_v40  ;;  %v9070_v40 = vld [vmem:[%s13631_s6 + $0xe] sm:$0x3]  ;;  %v12534_v6 = vpack.c.bf16 %v5172_v56, %v5171_v39  ;;  %v12550_v39 = vpack.c.bf16 %v5178_v38, %v5177_v43  ;;  %v5184_v43 = vld [vmem:[#allocation3 + $0xc8] sm:$0xff] }
 0x1f0   : > { %11520 = vmatprep.subr.msk.bf16.mxu1 %vm723_vm0, %v9070_v40  ;;  %v5180_v56 = vld [vmem:[#allocation3 + $0x98] sm:$0xff] }
 0x1f1   : > { %10231 = vmatprep.mubr.msk.bf16.mxu1 %vm339_vm1, %v12534_v6  ;;  %v5185_v38 = vld [vmem:[#allocation3 + $0xd8] sm:$0xff] }
 0x1f3   : > { %10232 = vmatmul.mubr.msk.bf16.vlgmr.msra.gmra.mrb[16].mxu1 %vm339_vm1, %v12537_v14 }
 0x1f6   : > { %9942 = vmatmul.mubr.msk.bf16.gmra.mrb[16].mxu0 %vm339_vm1, %v12107_v47  ;;  %v5564_v47 = vsel %vm723_vm0, %v9070_v40, 0  ;;  %v5181_v40 = vld [vmem:[#allocation3 + $0xa8] sm:$0xff] }
 0x1f7   : > { %9945 = vmatprep.mubr.msk.bf16.mxu0 %vm339_vm1, %v12109_v48  ;;  %10264 = vmatpush3.bf16.msra.mxu1 %v5564_v47  ;;  %v5175_v48 = vld [vmem:[#allocation3 + $0x60] sm:$0xff]  ;;  %v5182_v47 = vld [vmem:[#allocation3 + $0xb0] sm:$0xff] }
 0x1f8   : > { %v12548_v34 = vpack.c.bf16 %v5176_v32, %v5175_v48  ;;  %v12562_v48 = vpack.c.bf16 %v5182_v47, %v5181_v40  ;;  %v5188_v40 = vld [vmem:[#allocation3 + $0xf8] sm:$0xff] }
 0x1fa   : > { %10235 = vmatprep.mubr.msk.bf16.mxu1 %vm339_vm1, %v12548_v34 }
 0x1fb   : > { %10236 = vmatmul.mubr.msk.bf16.gmra.mrb[20].mxu1 %vm339_vm1, %v12550_v39 }
 0x1fe   : > { %9946 = vmatmul.mubr.msk.bf16.gmra.mrb[20].mxu0 %vm339_vm1, %v12115_v53  ;;  %v5179_v53 = vld [vmem:[#allocation3 + $0x90] sm:$0xff] }
 0x1ff   : > { %9949 = vmatprep.mubr.msk.bf16.mxu0 %vm339_vm1, %v12117_v54  ;;  %v2427_v54 = vld [vmem:[#allocation2 + $0x198] sm:$0xff]  ;;  %v12560_v63 = vpack.c.bf16 %v5180_v56, %v5179_v53  ;;  %v5186_v53 = vld [vmem:[#allocation3 + $0xe0] sm:$0xff]  ;;  %v5187_v56 = vld [vmem:[#allocation3 + $0xf0] sm:$0xff] }
 0x200   : > { %v2444_v32 = vpack.c.bf16 %v2428_v59, %v2427_v54  ;;  %v12573_v47 = vpack.c.bf16 %v5186_v53, %v5185_v38  ;;  %v12577_v54 = vpack.c.bf16 %v5188_v40, %v5187_v56  ;;  %v3084_v59 = vsel %vm723_vm0, %v12479_v45, 0  ;;  %v5192_v38 = vld [vmem:[#allocation3 + $0x128] sm:$0xff]  ;;  %v5193_v56 = vld [vmem:[#allocation3 + $0x138] sm:$0xff]  ;;  %v5195_v40 = vld [vmem:[#allocation3 + $0x150] sm:$0xff] }
 0x201   : > { %10239 = vmatprep.mubr.msk.bf16.mxu1 %vm339_vm1, %v12560_v63 }
 0x203   : > { %10240 = vmatmul.mubr.msk.bf16.gmra.mrb[24].mxu1 %vm339_vm1, %v12562_v48 }
 0x206   : > { %9950 = vmatmul.mubr.msk.bf16.gmra.mrb[24].mxu0 %vm339_vm1, %v12123_v58  ;;  %v5183_v58 = vld [vmem:[#allocation3 + $0xc0] sm:$0xff] }
 0x207   : > { %9953 = vmatprep.mubr.msk.bf16.mxu0 %vm339_vm1, %v12309_v0  ;;  %v12571_v0 = vpack.c.bf16 %v5184_v43, %v5183_v58  ;;  %v9087_v58 = vld [vmem:[%s13631_s6 + $0x10] sm:$0x3] }
 0x208   : > { %v5191_v43 = vld [vmem:[#allocation3 + $0x120] sm:$0xff]  ;;  %11521 = vmatprep.subr.msk.bf16.mxu1 %vm723_vm0, %v9087_v58 }
 0x209   : > { %10243 = vmatprep.mubr.msk.bf16.mxu1 %vm339_vm1, %v12571_v0  ;;  %v12595_v53 = vpack.c.bf16 %v5192_v38, %v5191_v43  ;;  %v5198_v43 = vld [vmem:[#allocation3 + $0x170] sm:$0xff]  ;;  %v5200_v38 = vld [vmem:[#allocation3 + $0x188] sm:$0xff] }
 0x20b   : > { %10244 = vmatmul.mubr.msk.bf16.gmra.mrb[28].mxu1 %vm339_vm1, %v12573_v47 }
 0x20c   : > { %10247 = vmatprep.mubr.msk.bf16.mxu1 %vm339_vm1, %v12577_v54 }
 0x20e   : > { %9954 = vmatmul.mubr.msk.bf16.gmra.mrb[28].mxu0 %vm339_vm1, %v2444_v32  ;;  %v5190_v32 = vld [vmem:[#allocation3 + $0x110] sm:$0xff] }
 0x20f   : > { %9959 = vmatprep.mubr.msk.bf16.mxu0 %vm339_vm1, %v12130_v3  ;;  %v5189_v3 = vld [vmem:[#allocation3 + $0x108] sm:$0xff] }
 0x210   : > { %v12593_v45 = vpack.c.bf16 %v5190_v32, %v5189_v3  ;;  %v5197_v32 = vld [vmem:[#allocation3 + $0x168] sm:$0xff] }
 0x213   : > { %10248 = vmatmul.mubr.msk.bf16.gmra.mrb[0].mxu1 %vm339_vm1, %v12593_v45 }
 0x214   : > { %10251 = vmatprep.mubr.msk.bf16.mxu1 %vm339_vm1, %v12595_v53 }
 0x216   : > { %9960 = vmatmul.mubr.msk.bf16.vlgmr.msra.gmra.mrb[0].mxu0 %vm339_vm1, %v12145_v44  ;;  %v5194_v44 = vld [vmem:[#allocation3 + $0x140] sm:$0xff] }
 0x217   : > { %9992 = vmatpush3.bf16.msra.mxu0 %v3084_v59  ;;  %9963 = vmatprep.mubr.msk.bf16.mxu0 %vm339_vm1, %v12147_v9  ;;  %v5196_v59 = vld [vmem:[#allocation3 + $0x158] sm:$0xff]  ;;  %v12605_v9 = vpack.c.bf16 %v5194_v44, %v5193_v56 }
 0x218   : > { %v12607_v3 = vpack.c.bf16 %v5196_v59, %v5195_v40  ;;  %v5201_v44 = vld [vmem:[#allocation3 + $0x198] sm:$0xff]  ;;  %v5202_v40 = vld [vmem:[#allocation3 + $0x1a0] sm:$0xff] }
 0x219   : > { %v5465_v59 = vld [vmem:[#allocation3 + $0x31] sm:$0xff] }
 0x21a   : > { %13642 = vst [vmem:[#allocation7_spill] sm:$0xff] %v12607_v3 }
 0x21b   : > { %10252 = vmatmul.mubr.msk.bf16.gmra.mrb[4].mxu1 %vm339_vm1, %v12605_v9 }
 0x21c   : > { %10255 = vmatprep.mubr.msk.bf16.mxu1 %vm339_vm1, %v12607_v3  ;;  %v5218_v3 = vpack.c.bf16 %v5202_v40, %v5201_v44  ;;  %v5472_v44 = vld [vmem:[#allocation3 + $0x81] sm:$0xff]  ;;  %v5474_v40 = vld [vmem:[#allocation3 + $0x99] sm:$0xff] }
 0x21e   : > { %9964 = vmatmul.mubr.msk.bf16.gmra.mrb[4].mxu0 %vm339_vm1, %v12153_v20  ;;  %v5199_v20 = vld [vmem:[#allocation3 + $0x180] sm:$0xff] }
 0x21f   : > { %9967 = vmatprep.mubr.msk.bf16.mxu0 %vm339_vm1, %v12155_v21  ;;  %v12617_v21 = vpack.c.bf16 %v5198_v43, %v5197_v32  ;;  %v5217_v56 = vpack.c.bf16 %v5200_v38, %v5199_v20  ;;  %v5467_v32 = vld [vmem:[#allocation3 + $0x49] sm:$0xff]  ;;  %v5468_v43 = vld [vmem:[#allocation3 + $0x51] sm:$0xff]  ;;  %v5469_v20 = vld [vmem:[#allocation3 + $0x61] sm:$0xff] }
 0x220   : > { %v5470_v38 = vld [vmem:[#allocation3 + $0x69] sm:$0xff] }
 0x223   : > { %10256 = vmatmul.mubr.msk.bf16.gmra.mrb[8].mxu1 %vm339_vm1, %v12617_v21 }
 0x224   : > { %10259 = vmatprep.mubr.msk.bf16.mxu1 %vm339_vm1, %v5217_v56  ;;  %v5499_v56 = vpack.c.bf16 %v5470_v38, %v5469_v20  ;;  %v2722_v20 = vld [vmem:[#allocation2 + $0x1a1] sm:$0xff] }
 0x226   : > { %9968 = vmatmul.mubr.msk.bf16.gmra.mrb[8].mxu0 %vm339_vm1, %v12161_v25  ;;  %v5466_v25 = vld [vmem:[#allocation3 + $0x39] sm:$0xff] }
 0x227   : > { %9971 = vmatprep.mubr.msk.bf16.mxu0 %vm339_vm1, %v12163_v28  ;;  %v5497_v28 = vpack.c.bf16 %v5466_v25, %v5465_v59  ;;  %v5475_v25 = vld [vmem:[#allocation3 + $0xa9] sm:$0xff] }
 0x22b   : > { %10260 = vmatmul.mubr.msk.bf16.gmra.mrb[12].mxu1 %vm339_vm1, %v5218_v3  ;;  %v12636_v3 = vld [vmem:[%s13630_s5] sm:$0xf] }
 0x22c   : > { %10265 = vmatprep.mubr.msk.bf16.mxu1 %vm339_vm1, %v5497_v28  ;;  %v5476_v28 = vld [vmem:[#allocation3 + $0xb1] sm:$0xff] }
 0x22d   : > { %v5502_v38 = vpack.c.bf16 %v5476_v28, %v5475_v25  ;;  %v3706_v25 = vld [vmem:[#allocation3 + $0x49] sm:$0xff]  ;;  %v3707_v28 = vld [vmem:[#allocation3 + $0x51] sm:$0xff] }
 0x22e   : > { %9972 = vmatmul.mubr.msk.bf16.gmra.mrb[12].mxu0 %vm339_vm1, %v12169_v35  ;;  %v5498_v35 = vpack.c.bf16 %v5468_v43, %v5467_v32  ;;  %v5478_v32 = vld [vmem:[#allocation3 + $0xc9] sm:$0xff] }
 0x22f   : > { %9975 = vmatprep.mubr.msk.bf16.mxu0 %vm339_vm1, %v12171_v37  ;;  %v5858_v37 = vsel %vm723_vm0, %v9087_v58, 0  ;;  %v2721_v43 = vld [vmem:[#allocation2 + $0x199] sm:$0xff] }
 0x233   : > { %10266 = vmatmul.mubr.msk.bf16.vlgmr.msra.gmra.mrb[16].mxu1 %vm339_vm1, %v5498_v35  ;;  %v2738_v35 = vpack.c.bf16 %v2722_v20, %v2721_v43  ;;  %v3710_v20 = vld [vmem:[#allocation3 + $0x79] sm:$0xff] }
 0x234   : > { %10298 = vmatpush3.bf16.msra.mxu1 %v5858_v37  ;;  %10269 = vmatprep.mubr.msk.bf16.mxu1 %vm339_vm1, %v5499_v56  ;;  %v3012_v37 = vld [vmem:[#allocation2 + $0x172] sm:$0xff] }
 0x235   : > { %11522 = vmatprep.subr.msk.bf16.mxu1 %vm6150_vm3, %v12636_v3 }
 0x236   : > { %9976 = vmatmul.mubr.msk.bf16.gmra.mrb[16].mxu0 %vm339_vm1, %v12177_v46  ;;  %v5471_v46 = vld [vmem:[#allocation3 + $0x79] sm:$0xff] }
 0x237   : > { %9979 = vmatprep.mubr.msk.bf16.mxu0 %vm339_vm1, %v12179_v49  ;;  %v5473_v49 = vld [vmem:[#allocation3 + $0x91] sm:$0xff]  ;;  %v5500_v58 = vpack.c.bf16 %v5472_v44, %v5471_v46  ;;  %v13643_v44 = vld [vmem:[#allocation6_spill] sm:$0xff] }
 0x238   : > { %v5501_v59 = vpack.c.bf16 %v5474_v40, %v5473_v49  ;;  %v3403_v40 = vld [vmem:[#allocation3 + $0x18] sm:$0xff] }
 0x23b   : > { %10270 = vmatmul.mubr.msk.bf16.gmra.mrb[20].mxu1 %vm339_vm1, %v5500_v58  ;;  %v3404_v58 = vld [vmem:[#allocation3 + $0x20] sm:$0xff] }
 0x23c   : > { %10273 = vmatprep.mubr.msk.bf16.mxu1 %vm339_vm1, %v5501_v59  ;;  %v12851_v59 = vpack.c.bf16 %v3404_v58, %v3403_v40 }
 0x23e   : > { %9980 = vmatmul.mubr.msk.bf16.gmra.mrb[20].mxu0 %vm339_vm1, %v12193_v62  ;;  %v5477_v62 = vld [vmem:[#allocation3 + $0xc1] sm:$0xff] }
 0x23f   : > { %9983 = vmatprep.mubr.msk.bf16.mxu0 %vm339_vm1, %v12195_v4  ;;  %v5503_v4 = vpack.c.bf16 %v5478_v32, %v5477_v62  ;;  %v3708_v62 = vld [vmem:[#allocation3 + $0x61] sm:$0xff]  ;;  %v3709_v32 = vld [vmem:[#allocation3 + $0x69] sm:$0xff] }
 0x240   : > { %v12902_v43 = vpack.c.bf16 %v3709_v32, %v3708_v62  ;;  %v3721_v62 = vld [vmem:[#allocation3 + $0xf9] sm:$0xff]  ;;  %v3722_v32 = vld [vmem:[#allocation3 + $0x109] sm:$0xff] }
 0x243   : > { %10274 = vmatmul.mubr.msk.bf16.gmra.mrb[24].mxu1 %vm339_vm1, %v5502_v38  ;;  %v3711_v38 = vld [vmem:[#allocation3 + $0x81] sm:$0xff] }
 0x244   : > { %10277 = vmatprep.mubr.msk.bf16.mxu1 %vm339_vm1, %v5503_v4  ;;  %v12904_v4 = vpack.c.bf16 %v3711_v38, %v3710_v20 }
 0x246   : > { %9984 = vmatmul.mubr.msk.bf16.gmra.mrb[24].mxu0 %vm339_vm1, %v12203_v13  ;;  %v3001_v13 = vld [vmem:[#allocation2 + $0xf2] sm:$0xff] }
 0x247   : > { %9987 = vmatprep.mubr.msk.bf16.mxu0 %vm339_vm1, %v12348_v29  ;;  %v3005_v29 = vld [vmem:[#allocation2 + $0x122] sm:$0xff] }
 0x24b   : > { %10278 = vmatmul.mubr.msk.bf16.gmra.mrb[28].mxu1 %vm339_vm1, %v12376_v16 }
 0x24c   : > { %10281 = vmatprep.mubr.msk.bf16.mxu1 %vm339_vm1, %v12379_v30 }
 0x24e   : > { %9988 = vmatmul.mubr.msk.bf16.gmra.mrb[28].mxu0 %vm339_vm1, %v2738_v35  ;;  %v12913_v35 = vld [vmem:[%s13629_s4] ss:$0 sm:$0xff] }
 0x24f   : > { %9993 = vmatprep.mubr.msk.bf16.mxu0 %vm339_vm1, %v12210_v24  ;;  %v3002_v24 = vld [vmem:[#allocation2 + $0xfa] sm:$0xff] }
 0x253   : > { %10282 = vmatmul.mubr.msk.bf16.gmra.mrb[0].mxu1 %vm339_vm1, %v12391_v51 }
 0x254   : > { %10285 = vmatprep.mubr.msk.bf16.mxu1 %vm339_vm1, %v12393_v57  ;;  %v3007_v57 = vld [vmem:[#allocation2 + $0x13a] sm:$0xff] }
 0x256   : > { %9994 = vmatmul.mubr.msk.bf16.vlgmr.msra.gmra.mrb[0].mxu0 %vm339_vm1, %v12222_v42  ;;  %v3025_v42 = vpack.c.bf16 %v3002_v24, %v3001_v13 }
 0x257   : > { %9997 = vmatprep.mubr.msk.bf16.mxu0 %vm339_vm1, %v12224_v10  ;;  %v5495_v10 = vld [vmem:[#allocation3 + $0x199] sm:$0xff] }
 0x25b   : > { %10286 = vmatmul.mubr.msk.bf16.gmra.mrb[4].mxu1 %vm339_vm1, %v12403_v26  ;;  %v3009_v26 = vld [vmem:[#allocation2 + $0x152] sm:$0xff] }
 0x25c   : > { %10289 = vmatprep.mubr.msk.bf16.mxu1 %vm339_vm1, %v12405_v1  ;;  %v3010_v1 = vld [vmem:[#allocation2 + $0x15a] sm:$0xff] }
 0x25d   : > { %v3029_v56 = vpack.c.bf16 %v3010_v1, %v3009_v26 }
 0x25e   : > { %9998 = vmatmul.mubr.msk.bf16.gmra.mrb[4].mxu0 %vm339_vm1, %v12230_v52  ;;  %v5496_v52 = vld [vmem:[#allocation3 + $0x1a1] sm:$0xff] }
 0x25f   : > { %10001 = vmatprep.mubr.msk.bf16.mxu0 %vm339_vm1, %v12232_v55  ;;  %v3003_v55 = vld [vmem:[#allocation2 + $0x10a] sm:$0xff]  ;;  %v5512_v16 = vpack.c.bf16 %v5496_v52, %v5495_v10  ;;  %v3712_v10 = vld [vmem:[#allocation3 + $0x91] sm:$0xff] }
 0x260   : > { %v3713_v52 = vld [vmem:[#allocation3 + $0x99] sm:$0xff] }
 0x263   : > { %10290 = vmatmul.mubr.msk.bf16.gmra.mrb[8].mxu1 %vm339_vm1, %v12415_v11 }
 0x264   : > { %10293 = vmatprep.mubr.msk.bf16.mxu1 %vm339_vm1, %v12417_v18  ;;  %v6152_v18 = vsel %vm6150_vm3, %v12636_v3, 0 }
 0x266   : > { %10002 = vmatmul.mubr.msk.bf16.gmra.mrb[8].mxu0 %vm339_vm1, %v12238_v60  ;;  %v3004_v60 = vld [vmem:[#allocation2 + $0x112] sm:$0xff] }
 0x267   : > { %10005 = vmatprep.mubr.msk.bf16.mxu0 %vm339_vm1, %v12240_v61  ;;  %v3006_v61 = vld [vmem:[#allocation2 + $0x12a] sm:$0xff]  ;;  %v3026_v30 = vpack.c.bf16 %v3004_v60, %v3003_v55 }
 0x268   : > { %v3027_v51 = vpack.c.bf16 %v3006_v61, %v3005_v29  ;;  %v12917_v29 = vpack.c.bf16 %v3713_v52, %v3712_v10  ;;  %v3714_v61 = vld [vmem:[#allocation3 + $0xa9] sm:$0xff] }
 0x26b   : > { %10294 = vmatmul.mubr.msk.bf16.gmra.mrb[12].mxu1 %vm339_vm1, %v5512_v16  ;;  %v3715_v16 = vld [vmem:[#allocation3 + $0xb1] sm:$0xff] }
 0x26c   : > { %10299 = vmatprep.mubr.msk.bf16.mxu1 %vm339_vm1, %v12431_v36  ;;  %v3011_v36 = vld [vmem:[#allocation2 + $0x16a] sm:$0xff] }
 0x26d   : > { %v3030_v46 = vpack.c.bf16 %v3012_v37, %v3011_v36 }
 0x26e   : > { %10006 = vmatmul.mubr.msk.bf16.gmra.mrb[12].mxu0 %vm339_vm1, %v12246_v12  ;;  %v3008_v12 = vld [vmem:[#allocation2 + $0x142] sm:$0xff] }
 0x26f   : > { %10009 = vmatprep.mubr.msk.bf16.mxu0 %vm339_vm1, %v3025_v42  ;;  %v3028_v11 = vpack.c.bf16 %v3008_v12, %v3007_v57  ;;  %v12920_v12 = vpack.c.bf16 %v3715_v16, %v3714_v61 }
 0x273   : > { %10300 = vmatmul.mubr.msk.bf16.vlgmr.msra.gmra.mrb[16].mxu1 %vm339_vm1, %v12441_v27  ;;  %v3015_v27 = vld [vmem:[#allocation2 + $0x19a] sm:$0xff] }
 0x274   : > { %10332 = vmatpush3.bf16.msra.mxu1 %v6152_v18  ;;  %10303 = vmatprep.mubr.msk.bf16.mxu1 %vm339_vm1, %v12443_v7  ;;  %v3016_v7 = vld [vmem:[#allocation2 + $0x1a2] sm:$0xff] }
 0x275   : > { %v3032_v3 = vpack.c.bf16 %v3016_v7, %v3015_v27  ;;  %v3717_v27 = vld [vmem:[#allocation3 + $0xc9] sm:$0xff] }
 0x276   : > { %10010 = vmatmul.mubr.msk.bf16.gmra.mrb[16].mxu0 %vm339_vm1, %v3026_v30 }
 0x277   : > { %10013 = vmatprep.mubr.msk.bf16.mxu0 %vm339_vm1, %v3027_v51 }
 0x27b   : > { %10304 = vmatmul.mubr.msk.bf16.gmra.mrb[20].mxu1 %vm339_vm1, %v12453_v31  ;;  %v13644_v31 = vmov 0.0  }
 0x27c   : > { %10307 = vmatprep.mubr.msk.bf16.mxu1 %vm339_vm1, %v12455_v17  ;;  %3319 = vst.msk [vmem:[#allocation4 + $0x30] sm:$0xff] %vm3311_vm4, %v13644_v31  ;;  %3320 = vst.msk [vmem:[#allocation4 + $0x38] sm:$0xff] %vm3311_vm4, %v13644_v31  ;;  %v5790_v17 = vld [vmem:[#allocation3 + $0x1a2] sm:$0xff] }
 0x27d   : > { %3312 = vst.msk [vmem:[#allocation4] sm:$0xff] %vm3311_vm4, %v13644_v31  ;;  %3313 = vst.msk [vmem:[#allocation4 + $0x8] sm:$0xff] %vm3311_vm4, %v13644_v31 }
 0x27e   : > { %10014 = vmatmul.mubr.msk.bf16.gmra.mrb[20].mxu0 %vm339_vm1, %v3028_v11  ;;  %3316 = vst.msk [vmem:[#allocation4 + $0x18] sm:$0xff] %vm3311_vm4, %v13644_v31  ;;  %3317 = vst.msk [vmem:[#allocation4 + $0x20] sm:$0xff] %vm3311_vm4, %v13644_v31 }
 0x27f   : > { %10017 = vmatprep.mubr.msk.bf16.mxu0 %vm339_vm1, %v3029_v56  ;;  %3322 = vst.msk [vmem:[#allocation4 + $0x48] sm:$0xff] %vm3311_vm4, %v13644_v31  ;;  %3323 = vst.msk [vmem:[#allocation4 + $0x50] sm:$0xff] %vm3311_vm4, %v13644_v31 }
 0x280   : > { %3325 = vst.msk [vmem:[#allocation4 + $0x60] sm:$0xff] %vm3311_vm4, %v13644_v31  ;;  %3326 = vst.msk [vmem:[#allocation4 + $0x68] sm:$0xff] %vm3311_vm4, %v13644_v31 }
 0x281   : > { %3328 = vst.msk [vmem:[#allocation4 + $0x78] sm:$0xff] %vm3311_vm4, %v13644_v31  ;;  %3329 = vst.msk [vmem:[#allocation4 + $0x80] sm:$0xff] %vm3311_vm4, %v13644_v31 }
 0x282   : > { %3331 = vst.msk [vmem:[#allocation4 + $0x90] sm:$0xff] %vm3311_vm4, %v13644_v31  ;;  %3332 = vst.msk [vmem:[#allocation4 + $0x98] sm:$0xff] %vm3311_vm4, %v13644_v31 }
 0x283   : > { %10308 = vmatmul.mubr.msk.bf16.gmra.mrb[24].mxu1 %vm339_vm1, %v12466_v15  ;;  %3334 = vst.msk [vmem:[#allocation4 + $0xa8] sm:$0xff] %vm3311_vm4, %v13644_v31  ;;  %3335 = vst.msk [vmem:[#allocation4 + $0xb0] sm:$0xff] %vm3311_vm4, %v13644_v31 }
 0x284   : > { %10311 = vmatprep.mubr.msk.bf16.mxu1 %vm339_vm1, %v13643_v44  ;;  %3337 = vst.msk [vmem:[#allocation4 + $0xc0] sm:$0xff] %vm3311_vm4, %v13644_v31  ;;  %3338 = vst.msk [vmem:[#allocation4 + $0xc8] sm:$0xff] %vm3311_vm4, %v13644_v31  ;;  %v6053_v15 = vld [vmem:[#allocation4] sm:$0xff] }
 0x285   : > { %3340 = vst.msk [vmem:[#allocation4 + $0xd8] sm:$0xff] %vm3311_vm4, %v13644_v31  ;;  %3341 = vst.msk [vmem:[#allocation4 + $0xe0] sm:$0xff] %vm3311_vm4, %v13644_v31 }
 0x286   : > { %10018 = vmatmul.mubr.msk.bf16.gmra.mrb[24].mxu0 %vm339_vm1, %v3030_v46  ;;  %3343 = vst.msk [vmem:[#allocation4 + $0xf0] sm:$0xff] %vm3311_vm4, %v13644_v31  ;;  %3344 = vst.msk [vmem:[#allocation4 + $0xf8] sm:$0xff] %vm3311_vm4, %v13644_v31  ;;  %v3716_v46 = vld [vmem:[#allocation3 + $0xc1] sm:$0xff] }
 0x287   : > { %10021 = vmatprep.mubr.msk.bf16.mxu0 %vm339_vm1, %v12459_v5  ;;  %3346 = vst.msk [vmem:[#allocation4 + $0x108] sm:$0xff] %vm3311_vm4, %v13644_v31  ;;  %3347 = vst.msk [vmem:[#allocation4 + $0x110] sm:$0xff] %vm3311_vm4, %v13644_v31  ;;  %v12933_v44 = vpack.c.bf16 %v3717_v27, %v3716_v46  ;;  %v3724_v46 = vld [vmem:[#allocation3 + $0x121] sm:$0xff]  ;;  %v3725_v27 = vld [vmem:[#allocation3 + $0x129] sm:$0xff] }
 0x288   : > { %3349 = vst.msk [vmem:[#allocation4 + $0x120] sm:$0xff] %vm3311_vm4, %v13644_v31  ;;  %3350 = vst.msk [vmem:[#allocation4 + $0x128] sm:$0xff] %vm3311_vm4, %v13644_v31 }
 0x289   : > { %3352 = vst.msk [vmem:[#allocation4 + $0x138] sm:$0xff] %vm3311_vm4, %v13644_v31  ;;  %3353 = vst.msk [vmem:[#allocation4 + $0x140] sm:$0xff] %vm3311_vm4, %v13644_v31 }
 0x28a   : > { %3355 = vst.msk [vmem:[#allocation4 + $0x150] sm:$0xff] %vm3311_vm4, %v13644_v31  ;;  %3356 = vst.msk [vmem:[#allocation4 + $0x158] sm:$0xff] %vm3311_vm4, %v13644_v31 }
 0x28b   : > { %10312 = vmatmul.mubr.msk.bf16.gmra.mrb[28].mxu1 %vm339_vm1, %v12483_v8  ;;  %3358 = vst.msk [vmem:[#allocation4 + $0x168] sm:$0xff] %vm3311_vm4, %v13644_v31  ;;  %3359 = vst.msk [vmem:[#allocation4 + $0x170] sm:$0xff] %vm3311_vm4, %v13644_v31  ;;  %v6054_v8 = vld [vmem:[#allocation4 + $0x8] sm:$0xff] }
 0x28c   : > { %10315 = vmatprep.mubr.msk.bf16.mxu1 %vm339_vm1, %v12487_v2  ;;  %3361 = vst.msk [vmem:[#allocation4 + $0x180] sm:$0xff] %vm3311_vm4, %v13644_v31  ;;  %3362 = vst.msk [vmem:[#allocation4 + $0x188] sm:$0xff] %vm3311_vm4, %v13644_v31  ;;  %v5789_v2 = vld [vmem:[#allocation3 + $0x19a] sm:$0xff] }
 0x28d   : > { %3364 = vst.msk [vmem:[#allocation4 + $0x198] sm:$0xff] %vm3311_vm4, %v13644_v31  ;;  %3365 = vst.msk [vmem:[#allocation4 + $0x1a0] sm:$0xff] %vm3311_vm4, %v13644_v31  ;;  %v5806_v5 = vpack.c.bf16 %v5790_v17, %v5789_v2  ;;  %v3719_v2 = vld [vmem:[#allocation3 + $0xe1] sm:$0xff] }
 0x28e   : > { %10022 = vmatmul.mubr.msk.bf16.gmra.mrb[28].mxu0 %vm339_vm1, %v3032_v3  ;;  %3321 = vst.msk [vmem:[#allocation4 + $0x40] sm:$0x3] %vm3314_vm5, %v13644_v31  ;;  %3315 = vst.msk [vmem:[#allocation4 + $0x10] sm:$0x3] %vm3314_vm5, %v13644_v31 }
 0x28f   : > { %3318 = vst.msk [vmem:[#allocation4 + $0x28] sm:$0x3] %vm3314_vm5, %v13644_v31  ;;  %3324 = vst.msk [vmem:[#allocation4 + $0x58] sm:$0x3] %vm3314_vm5, %v13644_v31 }
 0x290   : > { %3327 = vst.msk [vmem:[#allocation4 + $0x70] sm:$0x3] %vm3314_vm5, %v13644_v31  ;;  %3330 = vst.msk [vmem:[#allocation4 + $0x88] sm:$0x3] %vm3314_vm5, %v13644_v31 }
 0x291   : > { %3333 = vst.msk [vmem:[#allocation4 + $0xa0] sm:$0x3] %vm3314_vm5, %v13644_v31  ;;  %3336 = vst.msk [vmem:[#allocation4 + $0xb8] sm:$0x3] %vm3314_vm5, %v13644_v31 }
 0x292   : > { %3339 = vst.msk [vmem:[#allocation4 + $0xd0] sm:$0x3] %vm3314_vm5, %v13644_v31  ;;  %3342 = vst.msk [vmem:[#allocation4 + $0xe8] sm:$0x3] %vm3314_vm5, %v13644_v31 }
 0x293   : > { %10316 = vmatmul.mubr.msk.bf16.gmra.mrb[0].mxu1 %vm339_vm1, %v12495_v41  ;;  %3345 = vst.msk [vmem:[#allocation4 + $0x100] sm:$0x3] %vm3314_vm5, %v13644_v31  ;;  %3348 = vst.msk [vmem:[#allocation4 + $0x118] sm:$0x3] %vm3314_vm5, %v13644_v31  ;;  %v6085_v41 = vpack.c.bf16 %v6054_v8, %v6053_v15 }
 0x294   : > { %10319 = vmatprep.mubr.msk.bf16.mxu1 %vm339_vm1, %v12497_v22  ;;  %3351 = vst.msk [vmem:[#allocation4 + $0x130] sm:$0x3] %vm3314_vm5, %v13644_v31  ;;  %3354 = vst.msk [vmem:[#allocation4 + $0x148] sm:$0x3] %vm3314_vm5, %v13644_v31  ;;  %v12842_v22 = vld [vmem:[%s13630_s5 + $0x4] sm:$0xf] }
 0x295   : > { %3357 = vst.msk [vmem:[#allocation4 + $0x160] sm:$0x3] %vm3314_vm5, %v13644_v31  ;;  %3360 = vst.msk [vmem:[#allocation4 + $0x178] sm:$0x3] %vm3314_vm5, %v13644_v31  ;;  %11523 = vmatprep.subr.msk.bf16.mxu1 %vm6150_vm3, %v12842_v22 }
 0x296   : > { %3363 = vst.msk [vmem:[#allocation4 + $0x190] sm:$0x3] %vm3314_vm5, %v13644_v31  ;;  %3366 = vst.msk [vmem:[#allocation4 + $0x1a8] sm:$0x3] %vm3314_vm5, %v13644_v31  ;;  %v3718_v31 = vld [vmem:[#allocation3 + $0xd9] sm:$0xff] }
 0x297   : > { %v3741_v8 = vpack.c.bf16 %v3719_v2, %v3718_v31  ;;  %v3744_v2 = vpack.c.bf16 %v3725_v27, %v3724_v46  ;;  %v3994_v27 = vld [vmem:[#allocation3 + $0x2] sm:$0xff] }
 0x29b   : > { %10320 = vmatmul.mubr.msk.bf16.gmra.mrb[4].mxu1 %vm339_vm1, %v12507_v23  ;;  %v3449_v23 = vld [vmem:[%s13631_s6] sm:$0x3] }
 0x29c   : > { %10323 = vmatprep.mubr.msk.bf16.mxu1 %vm339_vm1, %v12509_v19  ;;  %11512 = vmatprep.subr.msk.bf16.mxu0 %vm723_vm0, %v3449_v23  ;;  %v3499_v19 = vsel %vm723_vm0, %v3449_v23, 0 }
 0x29d   : > { %10026 = vmatpush3.bf16.msra.mxu0 %v3499_v19 }
 0x2a3   : > { %10324 = vmatmul.mubr.msk.bf16.gmra.mrb[8].mxu1 %vm339_vm1, %v12519_v33  ;;  %v3401_v33 = vld [vmem:[#allocation3] sm:$0xff] }
 0x2a4   : > { %10327 = vmatprep.mubr.msk.bf16.mxu1 %vm339_vm1, %v12521_v50  ;;  %v3402_v50 = vld [vmem:[#allocation3 + $0x8] sm:$0xff] }
 0x2a5   : > { %v3433_v49 = vpack.c.bf16 %v3402_v50, %v3401_v33 }
 0x2a7   : > { %10027 = vmatprep.mubr.msk.bf16.mxu0 %vm339_vm1, %v3433_v49 }
 0x2a8   : > { %10028 = vmatmul.mubr.msk.bf16.vlgmr.msra.gmra.mrb[32].mxu0 %vm339_vm1, %v12851_v59 }
 0x2a9   : > { %10031 = vmatprep.mubr.msk.bf16.mxu0 %vm339_vm1, %v12534_v6  ;;  %v13645_v6 = vld [vmem:[#allocation7_spill] sm:$0xff] }
 0x2ab   : > { %10328 = vmatmul.mubr.msk.bf16.gmra.mrb[12].mxu1 %vm339_vm1, %v5806_v5 }
 0x2ac   : > { %10333 = vmatprep.mubr.msk.bf16.mxu1 %vm3311_vm4, %v6085_v41 }
 0x2b0   : > { %10032 = vmatmul.mubr.msk.bf16.gmra.mrb[36].mxu0 %vm339_vm1, %v12537_v14  ;;  %v8968_v14 = vld [vmem:[%s13631_s6 + $0x2] sm:$0x3] }
 0x2b1   : > { %10035 = vmatprep.mubr.msk.bf16.mxu0 %vm339_vm1, %v12548_v34  ;;  %11513 = vmatprep.subr.msk.bf16.mxu0 %vm723_vm0, %v8968_v14  ;;  %v3799_v34 = vsel %vm723_vm0, %v8968_v14, 0  ;;  %v6446_v14 = vsel %vm6150_vm3, %v12842_v22, 0 }
 0x2b2   : > { %10060 = vmatpush3.bf16.msra.mxu0 %v3799_v34 }
 0x2b8   : > { %10036 = vmatmul.mubr.msk.bf16.gmra.mrb[40].mxu0 %vm339_vm1, %v12550_v39  ;;  %v3700_v39 = vld [vmem:[#allocation3 + $0x1] sm:$0xff] }
 0x2b9   : > { %10039 = vmatprep.mubr.msk.bf16.mxu0 %vm339_vm1, %v12560_v63  ;;  %v3701_v63 = vld [vmem:[#allocation3 + $0x9] sm:$0xff] }
 0x2c0   : > { %10040 = vmatmul.mubr.msk.bf16.gmra.mrb[44].mxu0 %vm339_vm1, %v12562_v48  ;;  %v3732_v48 = vpack.c.bf16 %v3701_v63, %v3700_v39 }
 0x2c1   : > { %10043 = vmatprep.mubr.msk.bf16.mxu0 %vm339_vm1, %v12571_v0  ;;  %v3702_v0 = vld [vmem:[#allocation3 + $0x19] sm:$0xff] }
 0x2c8   : > { %10044 = vmatmul.mubr.msk.bf16.gmra.mrb[48].mxu0 %vm339_vm1, %v12573_v47  ;;  %v3703_v47 = vld [vmem:[#allocation3 + $0x21] sm:$0xff] }
 0x2c9   : > { %10047 = vmatprep.mubr.msk.bf16.mxu0 %vm339_vm1, %v12577_v54  ;;  %v12889_v54 = vpack.c.bf16 %v3703_v47, %v3702_v0  ;;  %v12954_v0 = vld [vmem:[%s13630_s5 + $0x8] sm:$0xf] }
 0x2d0   : > { %10048 = vmatmul.mubr.msk.bf16.gmra.mrb[52].mxu0 %vm339_vm1, %v12593_v45  ;;  %v3704_v45 = vld [vmem:[#allocation3 + $0x31] sm:$0xff] }
 0x2d1   : > { %10051 = vmatprep.mubr.msk.bf16.mxu0 %vm339_vm1, %v12595_v53  ;;  %v3705_v53 = vld [vmem:[#allocation3 + $0x39] sm:$0xff] }
 0x2d8   : > { %10052 = vmatmul.mubr.msk.bf16.gmra.mrb[56].mxu0 %vm339_vm1, %v12605_v9  ;;  %v12894_v9 = vpack.c.bf16 %v3705_v53, %v3704_v45 }
 0x2d9   : > { %10055 = vmatprep.mubr.msk.bf16.mxu0 %vm339_vm1, %v13645_v6 }
 0x2e0   : > { %10056 = vmatmul.mubr.msk.bf16.gmra.mrb[60].mxu0 %vm339_vm1, %v12617_v21  ;;  %v12896_v21 = vpack.c.bf16 %v3707_v28, %v3706_v25  ;;  %v3720_v28 = vld [vmem:[#allocation3 + $0xf1] sm:$0xff] }
 0x2e1   : > { %10061 = vmatprep.mubr.msk.bf16.mxu0 %vm339_vm1, %v3732_v48 }
 0x2e8   : > { %10062 = vmatmul.mubr.msk.bf16.vlgmr.msra.gmra.mrb[32].mxu0 %vm339_vm1, %v12889_v54 }
 0x2e9   : > { %10065 = vmatprep.mubr.msk.bf16.mxu0 %vm339_vm1, %v12894_v9 }
 0x2f0   : > { %10066 = vmatmul.mubr.msk.bf16.gmra.mrb[36].mxu0 %vm339_vm1, %v12896_v21 }
 0x2f1   : > { %10069 = vmatprep.mubr.msk.bf16.mxu0 %vm339_vm1, %v12902_v43 }
 0x2f8   : > { %10070 = vmatmul.mubr.msk.bf16.gmra.mrb[40].mxu0 %vm339_vm1, %v12904_v4 }
 0x2f9   : > { %10073 = vmatprep.mubr.msk.bf16.mxu0 %vm339_vm1, %v12917_v29 }
 0x300   : > { %10074 = vmatmul.mubr.msk.bf16.gmra.mrb[44].mxu0 %vm339_vm1, %v12920_v12 }
 0x301   : > { %10077 = vmatprep.mubr.msk.bf16.mxu0 %vm339_vm1, %v12933_v44 }
 0x308   : > { %10078 = vmatmul.mubr.msk.bf16.gmra.mrb[48].mxu0 %vm339_vm1, %v3741_v8 }
 0x329   : > { %v9995_v13 = vpop.f32.mrb[0].mxu0 }
 0x32a   : > { %v10639_v24 = vadd.f32 %v9995_v13, %v12913_v35  ;;  %v3120_v42 = vpop.f32.mrb[1].mxu0  ;;  %v3742_v13 = vpack.c.bf16 %v3721_v62, %v3720_v28 }
 0x32b   : > { %v10640_v55 = vadd.f32 %v12913_v35, %v3120_v42  ;;  %v9996_v60 = vpop.f32.mrb[2].mxu0 }
 0x32c   : > { %v3281_v30 = vmax.f32 %v10639_v24, 0.0  ;;  %v10641_v51 = vadd.f32 %v9996_v60, %v12913_v35  ;;  %v3123_v57 = vpop.f32.mrb[3].mxu0  ;;  %v3723_v24 = vld [vmem:[#allocation3 + $0x111] sm:$0xff]  ;;  %10081 = vmatprep.mubr.msk.bf16.mxu0 %vm339_vm1, %v3742_v13 }
 0x32d   : > { %v3279_v26 = vmax.f32 %v10640_v55, 0.0  ;;  %v10642_v1 = vadd.f32 %v12913_v35, %v3123_v57  ;;  %v3743_v10 = vpack.c.bf16 %v3723_v24, %v3722_v32  ;;  %v8985_v24 = vld [vmem:[%s13631_s6 + $0x4] sm:$0x3] }
 0x32e   : > { %3370 = vst.msk [vmem:[#allocation4 + $0x31] sm:$0xff] %vm3311_vm4, %v3281_v30  ;;  %v3282_v11 = vmax.f32 %v10641_v51, 0.0  ;;  %11514 = vmatprep.subr.msk.bf16.mxu0 %vm723_vm0, %v8985_v24 }
 0x32f   : > { %3368 = vst.msk [vmem:[#allocation4 + $0x19] sm:$0xff] %vm3311_vm4, %v3279_v26  ;;  %v3280_v18 = vmax.f32 %v10642_v1, 0.0  ;;  %10082 = vmatmul.mubr.msk.bf16.gmra.mrb[52].mxu0 %vm339_vm1, %v3743_v10 }
 0x330   : > { %3371 = vst.msk [vmem:[#allocation4 + $0x39] sm:$0xff] %vm3311_vm4, %v3282_v11  ;;  %10085 = vmatprep.mubr.msk.bf16.mxu0 %vm339_vm1, %v3744_v2 }
 0x331   : > { %3369 = vst.msk [vmem:[#allocation4 + $0x21] sm:$0xff] %vm3311_vm4, %v3280_v18  ;;  %v9999_v56 = vpop.f32.mrb[4].mxu0 }
 0x332   : > { %v10643_v36 = vadd.f32 %v9999_v56, %v12913_v35  ;;  %v3136_v37 = vpop.f32.mrb[5].mxu0 }
 0x333   : > { %v10644_v7 = vadd.f32 %v12913_v35, %v3136_v37  ;;  %v10000_v3 = vpop.f32.mrb[6].mxu0 }
 0x334   : > { %v3285_v17 = vmax.f32 %v10643_v36, 0.0  ;;  %v10645_v5 = vadd.f32 %v10000_v3, %v12913_v35  ;;  %v3139_v15 = vpop.f32.mrb[7].mxu0 }
 0x335   : > { %v3283_v41 = vmax.f32 %v10644_v7, 0.0  ;;  %v10646_v23 = vadd.f32 %v12913_v35, %v3139_v15  ;;  %v6057_v34 = vld [vmem:[#allocation4 + $0x30] sm:$0xff] }
 0x336   : > { %3374 = vst.msk [vmem:[#allocation4 + $0x61] sm:$0xff] %vm3311_vm4, %v3285_v17  ;;  %v3286_v19 = vmax.f32 %v10645_v5, 0.0  ;;  %v6055_v49 = vld [vmem:[#allocation4 + $0x18] sm:$0xff]  ;;  %v3726_v7 = vld [vmem:[#allocation3 + $0x139] sm:$0xff] }
 0x337   : > { %3372 = vst.msk [vmem:[#allocation4 + $0x49] sm:$0xff] %vm3311_vm4, %v3283_v41  ;;  %v3284_v33 = vmax.f32 %v10646_v23, 0.0  ;;  %v6058_v50 = vld [vmem:[#allocation4 + $0x38] sm:$0xff] }
 0x338   : > { %3375 = vst.msk [vmem:[#allocation4 + $0x69] sm:$0xff] %vm3311_vm4, %v3286_v19  ;;  %v6056_v40 = vld [vmem:[#allocation4 + $0x20] sm:$0xff]  ;;  %v12949_v48 = vpack.c.bf16 %v6058_v50, %v6057_v34  ;;  %v3727_v17 = vld [vmem:[#allocation3 + $0x141] sm:$0xff] }
 0x339   : > { %3373 = vst.msk [vmem:[#allocation4 + $0x51] sm:$0xff] %vm3311_vm4, %v3284_v33  ;;  %v10003_v58 = vpop.f32.mrb[8].mxu0  ;;  %v12944_v6 = vpack.c.bf16 %v6056_v40, %v6055_v49  ;;  %v3745_v15 = vpack.c.bf16 %v3727_v17, %v3726_v7  ;;  %v3995_v7 = vld [vmem:[#allocation3 + $0xa] sm:$0xff] }
 0x33a   : > { %v10647_v39 = vadd.f32 %v10003_v58, %v12913_v35  ;;  %v3152_v63 = vpop.f32.mrb[9].mxu0  ;;  %v4026_v17 = vpack.c.bf16 %v3995_v7, %v3994_v27 }
 0x33b   : > { %v10648_v47 = vadd.f32 %v12913_v35, %v3152_v63  ;;  %v10004_v45 = vpop.f32.mrb[10].mxu0  ;;  %10334 = vmatmul.mubr.msk.bf16.vlgmr.msra.gmra.mrb[16].mxu1 %vm3311_vm4, %v12944_v6  ;;  %10086 = vmatmul.mubr.msk.bf16.gmra.mrb[56].mxu0 %vm339_vm1, %v3745_v15 }
 0x33c   : > { %v3289_v53 = vmax.f32 %v10647_v39, 0.0  ;;  %v10649_v22 = vadd.f32 %v10004_v45, %v12913_v35  ;;  %10366 = vmatpush3.bf16.msra.mxu1 %v6446_v14  ;;  %v3155_v25 = vpop.f32.mrb[11].mxu0  ;;  %10337 = vmatprep.mubr.msk.bf16.mxu1 %vm3311_vm4, %v12949_v48 }
 0x33d   : > { %v3287_v20 = vmax.f32 %v10648_v47, 0.0  ;;  %v10650_v38 = vadd.f32 %v12913_v35, %v3155_v25  ;;  %11524 = vmatprep.subr.msk.bf16.mxu1 %vm6150_vm3, %v12954_v0  ;;  %v6061_v51 = vld [vmem:[#allocation4 + $0x60] sm:$0xff] }
 0x33e   : > { %3378 = vst.msk [vmem:[#allocation4 + $0x91] sm:$0xff] %vm3311_vm4, %v3289_v53  ;;  %v3290_v42 = vmax.f32 %v10649_v22, 0.0  ;;  %v6059_v60 = vld [vmem:[#allocation4 + $0x48] sm:$0xff]  ;;  %v3730_v25 = vld [vmem:[#allocation3 + $0x169] sm:$0xff] }
 0x33f   : > { %3376 = vst.msk [vmem:[#allocation4 + $0x79] sm:$0xff] %vm3311_vm4, %v3287_v20  ;;  %v3288_v52 = vmax.f32 %v10650_v38, 0.0  ;;  %v6062_v55 = vld [vmem:[#allocation4 + $0x68] sm:$0xff] }
 0x340   : > { %3379 = vst.msk [vmem:[#allocation4 + $0x99] sm:$0xff] %vm3311_vm4, %v3290_v42  ;;  %v6060_v61 = vld [vmem:[#allocation4 + $0x50] sm:$0xff]  ;;  %v12974_v1 = vpack.c.bf16 %v6062_v55, %v6061_v51  ;;  %v3728_v53 = vld [vmem:[#allocation3 + $0x151] sm:$0xff] }
 0x341   : > { %3377 = vst.msk [vmem:[#allocation4 + $0x81] sm:$0xff] %vm3311_vm4, %v3288_v52  ;;  %v10007_v16 = vpop.f32.mrb[12].mxu0  ;;  %v12971_v30 = vpack.c.bf16 %v6060_v61, %v6059_v60  ;;  %v3729_v22 = vld [vmem:[#allocation3 + $0x159] sm:$0xff]  ;;  %v3731_v20 = vld [vmem:[#allocation3 + $0x171] sm:$0xff]  ;;  %v4093_v52 = vsel %vm723_vm0, %v8985_v24, 0 }
 0x342   : > { %v10651_v57 = vadd.f32 %v10007_v16, %v12913_v35  ;;  %v3168_v26 = vpop.f32.mrb[13].mxu0  ;;  %v3746_v32 = vpack.c.bf16 %v3729_v22, %v3728_v53  ;;  %v3747_v13 = vpack.c.bf16 %v3731_v20, %v3730_v25  ;;  %10094 = vmatpush3.bf16.msra.mxu0 %v4093_v52  ;;  %v4001_v24 = vld [vmem:[#allocation3 + $0x52] sm:$0xff] }
 0x343   : > { %v10652_v11 = vadd.f32 %v12913_v35, %v3168_v26  ;;  %v10008_v18 = vpop.f32.mrb[14].mxu0  ;;  %10338 = vmatmul.mubr.msk.bf16.gmra.mrb[20].mxu1 %vm3311_vm4, %v12971_v30 }
 0x344   : > { %v3293_v56 = vmax.f32 %v10651_v57, 0.0  ;;  %v10653_v36 = vadd.f32 %v10008_v18, %v12913_v35  ;;  %v3171_v37 = vpop.f32.mrb[15].mxu0  ;;  %10341 = vmatprep.mubr.msk.bf16.mxu1 %vm3311_vm4, %v12974_v1  ;;  %10089 = vmatprep.mubr.msk.bf16.mxu0 %vm339_vm1, %v3746_v32  ;;  %v4000_v32 = vld [vmem:[#allocation3 + $0x4a] sm:$0xff] }
 0x345   : > { %v3291_v3 = vmax.f32 %v10652_v11, 0.0  ;;  %v10654_v31 = vadd.f32 %v12913_v35, %v3171_v37  ;;  %v6065_v49 = vld [vmem:[#allocation4 + $0x90] sm:$0xff]  ;;  %10090 = vmatmul.mubr.msk.bf16.gmra.mrb[60].mxu0 %vm339_vm1, %v3747_v13 }
 0x346   : > { %3382 = vst.msk [vmem:[#allocation4 + $0xc1] sm:$0xff] %vm3311_vm4, %v3293_v56  ;;  %v3294_v5 = vmax.f32 %v10653_v36, 0.0  ;;  %v6063_v23 = vld [vmem:[#allocation4 + $0x78] sm:$0xff]  ;;  %10095 = vmatprep.mubr.msk.bf16.mxu0 %vm339_vm1, %v4026_v17  ;;  %v4004_v17 = vld [vmem:[#allocation3 + $0x7a] sm:$0xff] }
 0x347   : > { %3380 = vst.msk [vmem:[#allocation4 + $0xa9] sm:$0xff] %vm3311_vm4, %v3291_v3  ;;  %v3292_v8 = vmax.f32 %v10654_v31, 0.0  ;;  %v6066_v41 = vld [vmem:[#allocation4 + $0x98] sm:$0xff]  ;;  %v3996_v3 = vld [vmem:[#allocation3 + $0x1a] sm:$0xff] }
 0x348   : > { %3383 = vst.msk [vmem:[#allocation4 + $0xc9] sm:$0xff] %vm3311_vm4, %v3294_v5  ;;  %v6064_v19 = vld [vmem:[#allocation4 + $0x80] sm:$0xff]  ;;  %v12992_v14 = vpack.c.bf16 %v6066_v41, %v6065_v49  ;;  %v3997_v5 = vld [vmem:[#allocation3 + $0x22] sm:$0xff] }
 0x349   : > { %3381 = vst.msk [vmem:[#allocation4 + $0xb1] sm:$0xff] %vm3311_vm4, %v3292_v8  ;;  %v10011_v33 = vpop.f32.mrb[16].mxu0  ;;  %v12989_v50 = vpack.c.bf16 %v6064_v19, %v6063_v23  ;;  %v4027_v8 = vpack.c.bf16 %v3997_v5, %v3996_v3 }
 0x34a   : > { %v10655_v40 = vadd.f32 %v10011_v33, %v12913_v35  ;;  %v3184_v58 = vpop.f32.mrb[17].mxu0 }
 0x34b   : > { %v10656_v34 = vadd.f32 %v12913_v35, %v3184_v58  ;;  %v10012_v39 = vpop.f32.mrb[18].mxu0  ;;  %10342 = vmatmul.mubr.msk.bf16.gmra.mrb[24].mxu1 %vm3311_vm4, %v12989_v50 }
 0x34c   : > { %v3297_v63 = vmax.f32 %v10655_v40, 0.0  ;;  %v10657_v47 = vadd.f32 %v10012_v39, %v12913_v35  ;;  %v3187_v45 = vpop.f32.mrb[19].mxu0  ;;  %10345 = vmatprep.mubr.msk.bf16.mxu1 %vm3311_vm4, %v12992_v14 }
 0x34d   : > { %v3295_v28 = vmax.f32 %v10656_v34, 0.0  ;;  %v10658_v62 = vadd.f32 %v12913_v35, %v3187_v45  ;;  %v6069_v51 = vld [vmem:[#allocation4 + $0xc0] sm:$0xff]  ;;  %10096 = vmatmul.mubr.msk.bf16.vlgmr.msra.gmra.mrb[32].mxu0 %vm339_vm1, %v4027_v8 }
 0x34e   : > { %3386 = vst.msk [vmem:[#allocation4 + $0xf1] sm:$0xff] %vm3311_vm4, %v3297_v63  ;;  %v3298_v38 = vmax.f32 %v10657_v47, 0.0  ;;  %v6067_v55 = vld [vmem:[#allocation4 + $0xa8] sm:$0xff] }
 0x34f   : > { %3384 = vst.msk [vmem:[#allocation4 + $0xd9] sm:$0xff] %vm3311_vm4, %v3295_v28  ;;  %v3296_v42 = vmax.f32 %v10658_v62, 0.0  ;;  %v6070_v10 = vld [vmem:[#allocation4 + $0xc8] sm:$0xff] }
 0x350   : > { %3387 = vst.msk [vmem:[#allocation4 + $0xf9] sm:$0xff] %vm3311_vm4, %v3298_v38  ;;  %v6068_v60 = vld [vmem:[#allocation4 + $0xb0] sm:$0xff]  ;;  %v13015_v11 = vpack.c.bf16 %v6070_v10, %v6069_v51  ;;  %v3998_v28 = vld [vmem:[#allocation3 + $0x32] sm:$0xff]  ;;  %v4029_v10 = vpack.c.bf16 %v4001_v24, %v4000_v32 }
 0x351   : > { %3385 = vst.msk [vmem:[#allocation4 + $0xe1] sm:$0xff] %vm3311_vm4, %v3296_v42  ;;  %v10015_v61 = vpop.f32.mrb[20].mxu0  ;;  %v13012_v16 = vpack.c.bf16 %v6068_v60, %v6067_v55  ;;  %v3999_v62 = vld [vmem:[#allocation3 + $0x3a] sm:$0xff]  ;;  %v4009_v32 = vld [vmem:[#allocation3 + $0xb2] sm:$0xff] }
 0x352   : > { %v10659_v57 = vadd.f32 %v10015_v61, %v12913_v35  ;;  %v3200_v26 = vpop.f32.mrb[21].mxu0  ;;  %v4028_v13 = vpack.c.bf16 %v3999_v62, %v3998_v28  ;;  %v6348_v28 = vld [vmem:[#allocation4 + $0x9] sm:$0xff] }
 0x353   : > { %v10660_v18 = vadd.f32 %v12913_v35, %v3200_v26  ;;  %v10016_v56 = vpop.f32.mrb[22].mxu0  ;;  %10346 = vmatmul.mubr.msk.bf16.gmra.mrb[28].mxu1 %vm3311_vm4, %v13012_v16 }
 0x354   : > { %v3301_v36 = vmax.f32 %v10659_v57, 0.0  ;;  %v10661_v37 = vadd.f32 %v10016_v56, %v12913_v35  ;;  %v3203_v46 = vpop.f32.mrb[23].mxu0  ;;  %10349 = vmatprep.mubr.msk.bf16.mxu1 %vm3311_vm4, %v13015_v11  ;;  %10099 = vmatprep.mubr.msk.bf16.mxu0 %vm339_vm1, %v4028_v13 }
 0x355   : > { %v3299_v31 = vmax.f32 %v10660_v18, 0.0  ;;  %v10662_v2 = vadd.f32 %v12913_v35, %v3203_v46  ;;  %v6073_v58 = vld [vmem:[#allocation4 + $0xf0] sm:$0xff]  ;;  %10100 = vmatmul.mubr.msk.bf16.gmra.mrb[36].mxu0 %vm339_vm1, %v4029_v10 }
 0x356   : > { %3390 = vst.msk [vmem:[#allocation4 + $0x121] sm:$0xff] %vm3311_vm4, %v3301_v36  ;;  %v3302_v15 = vmax.f32 %v10661_v37, 0.0  ;;  %v6071_v19 = vld [vmem:[#allocation4 + $0xd8] sm:$0xff] }
 0x357   : > { %3388 = vst.msk [vmem:[#allocation4 + $0x109] sm:$0xff] %vm3311_vm4, %v3299_v31  ;;  %v3300_v41 = vmax.f32 %v10662_v2, 0.0  ;;  %v6074_v23 = vld [vmem:[#allocation4 + $0xf8] sm:$0xff] }
 0x358   : > { %3391 = vst.msk [vmem:[#allocation4 + $0x129] sm:$0xff] %vm3311_vm4, %v3302_v15  ;;  %v6072_v33 = vld [vmem:[#allocation4 + $0xe0] sm:$0xff]  ;;  %v13033_v63 = vpack.c.bf16 %v6074_v23, %v6073_v58  ;;  %v4002_v31 = vld [vmem:[#allocation3 + $0x62] sm:$0xff] }
 0x359   : > { %3389 = vst.msk [vmem:[#allocation4 + $0x111] sm:$0xff] %vm3311_vm4, %v3300_v41  ;;  %v10019_v49 = vpop.f32.mrb[24].mxu0  ;;  %v13030_v40 = vpack.c.bf16 %v6072_v33, %v6071_v19  ;;  %v4003_v2 = vld [vmem:[#allocation3 + $0x6a] sm:$0xff]  ;;  %v4005_v41 = vld [vmem:[#allocation3 + $0x82] sm:$0xff] }
 0x35a   : > { %v10663_v34 = vadd.f32 %v10019_v49, %v12913_v35  ;;  %v3216_v39 = vpop.f32.mrb[25].mxu0  ;;  %v4030_v8 = vpack.c.bf16 %v4003_v2, %v4002_v31  ;;  %v4031_v19 = vpack.c.bf16 %v4005_v41, %v4004_v17  ;;  %v4010_v10 = vld [vmem:[#allocation3 + $0xc2] sm:$0xff]  ;;  %v4014_v31 = vld [vmem:[#allocation3 + $0xf2] sm:$0xff]  ;;  %v4015_v2 = vld [vmem:[#allocation3 + $0xfa] sm:$0xff] }
 0x35b   : > { %v10664_v47 = vadd.f32 %v12913_v35, %v3216_v39  ;;  %v10020_v45 = vpop.f32.mrb[26].mxu0  ;;  %10350 = vmatmul.mubr.msk.bf16.gmra.mrb[0].mxu1 %vm3311_vm4, %v13030_v40  ;;  %v4016_v17 = vld [vmem:[#allocation3 + $0x10a] sm:$0xff]  ;;  %v6356_v41 = vld [vmem:[#allocation4 + $0x69] sm:$0xff] }
 0x35c   : > { %v3305_v53 = vmax.f32 %v10663_v34, 0.0  ;;  %v10665_v22 = vadd.f32 %v10020_v45, %v12913_v35  ;;  %v3219_v25 = vpop.f32.mrb[27].mxu0  ;;  %10353 = vmatprep.mubr.msk.bf16.mxu1 %vm3311_vm4, %v13033_v63  ;;  %10103 = vmatprep.mubr.msk.bf16.mxu0 %vm339_vm1, %v4030_v8  ;;  %v4006_v45 = vld [vmem:[#allocation3 + $0x92] sm:$0xff] }
 0x35d   : > { %v3303_v20 = vmax.f32 %v10664_v47, 0.0  ;;  %v10666_v38 = vadd.f32 %v12913_v35, %v3219_v25  ;;  %v6077_v26 = vld [vmem:[#allocation4 + $0x120] sm:$0xff]  ;;  %10104 = vmatmul.mubr.msk.bf16.gmra.mrb[40].mxu0 %vm339_vm1, %v4031_v19 }
 0x35e   : > { %3394 = vst.msk [vmem:[#allocation4 + $0x151] sm:$0xff] %vm3311_vm4, %v3305_v53  ;;  %v3306_v42 = vmax.f32 %v10665_v22, 0.0  ;;  %v6075_v60 = vld [vmem:[#allocation4 + $0x108] sm:$0xff]  ;;  %v4008_v22 = vld [vmem:[#allocation3 + $0xaa] sm:$0xff] }
 0x35f   : > { %3392 = vst.msk [vmem:[#allocation4 + $0x139] sm:$0xff] %vm3311_vm4, %v3303_v20  ;;  %v3304_v52 = vmax.f32 %v10666_v38, 0.0  ;;  %v6078_v55 = vld [vmem:[#allocation4 + $0x128] sm:$0xff]  ;;  %v4033_v20 = vpack.c.bf16 %v4009_v32, %v4008_v22 }
 0x360   : > { %3395 = vst.msk [vmem:[#allocation4 + $0x159] sm:$0xff] %vm3311_vm4, %v3306_v42  ;;  %v6076_v61 = vld [vmem:[#allocation4 + $0x110] sm:$0xff]  ;;  %v13051_v36 = vpack.c.bf16 %v6078_v55, %v6077_v26  ;;  %v6347_v25 = vld [vmem:[#allocation4 + $0x1] sm:$0xff] }
 0x361   : > { %3393 = vst.msk [vmem:[#allocation4 + $0x141] sm:$0xff] %vm3311_vm4, %v3304_v52  ;;  %v10023_v51 = vpop.f32.mrb[28].mxu0  ;;  %v13048_v57 = vpack.c.bf16 %v6076_v61, %v6075_v60  ;;  %v4007_v53 = vld [vmem:[#allocation3 + $0x9a] sm:$0xff]  ;;  %v6379_v24 = vpack.c.bf16 %v6348_v28, %v6347_v25  ;;  %v4011_v52 = vld [vmem:[#allocation3 + $0xca] sm:$0xff]  ;;  %v4013_v61 = vld [vmem:[#allocation3 + $0xe2] sm:$0xff] }
 0x362   : > { %v10667_v18 = vadd.f32 %v10023_v51, %v12913_v35  ;;  %v3232_v56 = vpop.f32.mrb[29].mxu0  ;;  %v4032_v62 = vpack.c.bf16 %v4007_v53, %v4006_v45  ;;  %v4012_v55 = vld [vmem:[#allocation3 + $0xda] sm:$0xff]  ;;  %v4034_v60 = vpack.c.bf16 %v4011_v52, %v4010_v10  ;;  %v6350_v51 = vld [vmem:[#allocation4 + $0x21] sm:$0xff]  ;;  %v4021_v53 = vld [vmem:[#allocation3 + $0x142] sm:$0xff] }
 0x363   : > { %v10668_v37 = vadd.f32 %v12913_v35, %v3232_v56  ;;  %v10024_v46 = vpop.f32.mrb[30].mxu0  ;;  %10354 = vmatmul.mubr.msk.bf16.gmra.mrb[4].mxu1 %vm3311_vm4, %v13048_v57  ;;  %v4035_v26 = vpack.c.bf16 %v4013_v61, %v4012_v55  ;;  %v6349_v56 = vld [vmem:[#allocation4 + $0x19] sm:$0xff]  ;;  %v6358_v22 = vld [vmem:[#allocation4 + $0x81] sm:$0xff]  ;;  %v6362_v61 = vld [vmem:[#allocation4 + $0xb1] sm:$0xff] }
 0x364   : > { %v3309_v27 = vmax.f32 %v10667_v18, 0.0  ;;  %v10669_v7 = vadd.f32 %v10024_v46, %v12913_v35  ;;  %v3235_v3 = vpop.f32.mrb[31].mxu0  ;;  %10357 = vmatprep.mubr.msk.bf16.mxu1 %vm3311_vm4, %v13051_v36  ;;  %10107 = vmatprep.mubr.msk.bf16.mxu0 %vm339_vm1, %v4032_v62  ;;  %v6352_v18 = vld [vmem:[#allocation4 + $0x39] sm:$0xff]  ;;  %v6740_v46 = vsel %vm6150_vm3, %v12954_v0, 0  ;;  %v4036_v0 = vpack.c.bf16 %v4015_v2, %v4014_v31  ;;  %v4025_v55 = vld [vmem:[#allocation3 + $0x172] sm:$0xff] }
 0x365   : > { %v3307_v5 = vmax.f32 %v10668_v37, 0.0  ;;  %v10670_v15 = vadd.f32 %v12913_v35, %v3235_v3  ;;  %v6081_v39 = vld [vmem:[#allocation4 + $0x150] sm:$0xff]  ;;  %10108 = vmatmul.mubr.msk.bf16.gmra.mrb[44].mxu0 %vm339_vm1, %v4033_v20  ;;  %v13083_v37 = vpack.c.bf16 %v6350_v51, %v6349_v56  ;;  %v13092_v3 = vld [vmem:[%s13630_s5 + $0xc] sm:$0xf]  ;;  %v6360_v28 = vld [vmem:[#allocation4 + $0x99] sm:$0xff] }
 0x366   : > { %3398 = vst.msk [vmem:[#allocation4 + $0x181] sm:$0xff] %vm3311_vm4, %v3309_v27  ;;  %v3310_v23 = vmax.f32 %v10669_v7, 0.0  ;;  %v6079_v58 = vld [vmem:[#allocation4 + $0x138] sm:$0xff]  ;;  %10111 = vmatprep.mubr.msk.bf16.mxu0 %vm339_vm1, %v4034_v60  ;;  %v9002_v60 = vld [vmem:[%s13631_s6 + $0x6] sm:$0x3]  ;;  %v6361_v56 = vld [vmem:[#allocation4 + $0xa9] sm:$0xff] }
 0x367   : > { %3396 = vst.msk [vmem:[#allocation4 + $0x169] sm:$0xff] %vm3311_vm4, %v3307_v5  ;;  %v3308_v33 = vmax.f32 %v10670_v15, 0.0  ;;  %v6082_v49 = vld [vmem:[#allocation4 + $0x158] sm:$0xff]  ;;  %v4017_v5 = vld [vmem:[#allocation3 + $0x112] sm:$0xff]  ;;  %11515 = vmatprep.subr.msk.bf16.mxu0 %vm723_vm0, %v9002_v60 }
 0x368   : > { %3399 = vst.msk [vmem:[#allocation4 + $0x189] sm:$0xff] %vm3311_vm4, %v3310_v23  ;;  %v6080_v34 = vld [vmem:[#allocation4 + $0x140] sm:$0xff]  ;;  %v13068_v47 = vpack.c.bf16 %v6082_v49, %v6081_v39  ;;  %v6351_v27 = vld [vmem:[#allocation4 + $0x31] sm:$0xff]  ;;  %v4037_v8 = vpack.c.bf16 %v4017_v5, %v4016_v17  ;;  %v6353_v23 = vld [vmem:[#allocation4 + $0x49] sm:$0xff] }
 0x369   : > { %3397 = vst.msk [vmem:[#allocation4 + $0x171] sm:$0xff] %vm3311_vm4, %v3308_v33  ;;  %v13066_v35 = vpack.c.bf16 %v6080_v34, %v6079_v58  ;;  %v13087_v7 = vpack.c.bf16 %v6352_v18, %v6351_v27  ;;  %v6354_v15 = vld [vmem:[#allocation4 + $0x51] sm:$0xff]  ;;  %v6355_v33 = vld [vmem:[#allocation4 + $0x61] sm:$0xff]  ;;  %v6357_v62 = vld [vmem:[#allocation4 + $0x79] sm:$0xff]  ;;  %v13131_v27 = vpack.c.bf16 %v6362_v61, %v6361_v56 }
 0x36a   : > { %v13102_v19 = vpack.c.bf16 %v6354_v15, %v6353_v23  ;;  %v13104_v49 = vpack.c.bf16 %v6356_v41, %v6355_v33  ;;  %v4018_v58 = vld [vmem:[#allocation3 + $0x122] sm:$0xff]  ;;  %v4019_v34 = vld [vmem:[#allocation3 + $0x12a] sm:$0xff]  ;;  %v4020_v39 = vld [vmem:[#allocation3 + $0x13a] sm:$0xff]  ;;  %v13112_v32 = vpack.c.bf16 %v6358_v22, %v6357_v62 }
 0x36b   : > { %10358 = vmatmul.mubr.msk.bf16.gmra.mrb[8].mxu1 %vm3311_vm4, %v13066_v35  ;;  %v4038_v45 = vpack.c.bf16 %v4019_v34, %v4018_v58  ;;  %v4039_v25 = vpack.c.bf16 %v4021_v53, %v4020_v39  ;;  %v6359_v20 = vld [vmem:[#allocation4 + $0x91] sm:$0xff]  ;;  %v4024_v10 = vld [vmem:[#allocation3 + $0x16a] sm:$0xff]  ;;  %v6364_v18 = vld [vmem:[#allocation4 + $0xc9] sm:$0xff] }
 0x36c   : > { %10361 = vmatprep.mubr.msk.bf16.mxu1 %vm3311_vm4, %v13068_v47  ;;  %v4041_v51 = vpack.c.bf16 %v4025_v55, %v4024_v10  ;;  %v6363_v31 = vld [vmem:[#allocation4 + $0xc1] sm:$0xff]  ;;  %v6365_v41 = vld [vmem:[#allocation4 + $0xd9] sm:$0xff]  ;;  %v6367_v33 = vld [vmem:[#allocation4 + $0xf1] sm:$0xff] }
 0x36d   : > { %10112 = vmatmul.mubr.msk.bf16.gmra.mrb[48].mxu0 %vm339_vm1, %v4035_v26  ;;  %v4387_v26 = vsel %vm723_vm0, %v9002_v60, 0  ;;  %v13135_v2 = vpack.c.bf16 %v6364_v18, %v6363_v31  ;;  %v4290_v17 = vld [vmem:[#allocation3 + $0x30] sm:$0xff]  ;;  %v4292_v34 = vld [vmem:[#allocation3 + $0x48] sm:$0xff]  ;;  %v6372_v62 = vld [vmem:[#allocation4 + $0x129] sm:$0xff] }
 0x36e   : > { %v6083_v38 = vld [vmem:[#allocation4 + $0x168] sm:$0xff]  ;;  %10115 = vmatprep.mubr.msk.bf16.mxu0 %vm339_vm1, %v4036_v0  ;;  %10128 = vmatpush3.bf16.msra.mxu0 %v4387_v26  ;;  %v4293_v39 = vld [vmem:[#allocation3 + $0x50] sm:$0xff]  ;;  %v4295_v22 = vld [vmem:[#allocation3 + $0x68] sm:$0xff] }
 0x36f   : > { %v4291_v0 = vld [vmem:[#allocation3 + $0x38] sm:$0xff]  ;;  %v4322_v53 = vpack.c.bf16 %v4293_v39, %v4292_v34  ;;  %v4297_v55 = vld [vmem:[#allocation3 + $0x80] sm:$0xff]  ;;  %v4298_v60 = vld [vmem:[#allocation3 + $0x90] sm:$0xff] }
 0x370   : > { %v6084_v13 = vld [vmem:[#allocation4 + $0x170] sm:$0xff]  ;;  %v4321_v5 = vpack.c.bf16 %v4291_v0, %v4290_v17  ;;  %v6366_v15 = vld [vmem:[#allocation4 + $0xe1] sm:$0xff]  ;;  %v6376_v56 = vld [vmem:[#allocation4 + $0x159] sm:$0xff] }
 0x371   : > { %v13076_v42 = vpack.c.bf16 %v6084_v13, %v6083_v38  ;;  %v13114_v38 = vpack.c.bf16 %v6360_v28, %v6359_v20  ;;  %v4022_v13 = vld [vmem:[#allocation3 + $0x152] sm:$0xff]  ;;  %v13142_v23 = vpack.c.bf16 %v6366_v15, %v6365_v41  ;;  %v6375_v17 = vld [vmem:[#allocation4 + $0x151] sm:$0xff] }
 0x372   : > { %v6369_v20 = vld [vmem:[#allocation4 + $0x109] sm:$0xff]  ;;  %v6374_v26 = vld [vmem:[#allocation4 + $0x141] sm:$0xff]  ;;  %v13165_v0 = vpack.c.bf16 %v6376_v56, %v6375_v17  ;;  %v4303_v34 = vld [vmem:[#allocation3 + $0xc8] sm:$0xff]  ;;  %v7034_v56 = vsel %vm6150_vm3, %v13092_v3, 0 }
 0x373   : > { %10362 = vmatmul.mubr.msk.bf16.gmra.mrb[12].mxu1 %vm3311_vm4, %v13076_v42  ;;  %v4301_v15 = vld [vmem:[#allocation3 + $0xb0] sm:$0xff]  ;;  %v6378_v39 = vld [vmem:[#allocation4 + $0x171] sm:$0xff] }
 0x374   : > { %10367 = vmatprep.mubr.msk.bf16.mxu1 %vm3311_vm4, %v6379_v24  ;;  %v4023_v24 = vld [vmem:[#allocation3 + $0x15a] sm:$0xff]  ;;  %v6641_v41 = vld [vmem:[#allocation4 + $0x2] sm:$0xff] }
 0x375   : > { %10116 = vmatmul.mubr.msk.bf16.gmra.mrb[52].mxu0 %vm339_vm1, %v4037_v8  ;;  %v4040_v52 = vpack.c.bf16 %v4023_v24, %v4022_v13  ;;  %v6368_v8 = vld [vmem:[#allocation4 + $0xf9] sm:$0xff]  ;;  %v6371_v24 = vld [vmem:[#allocation4 + $0x121] sm:$0xff]  ;;  %v13189_v17 = vld [vmem:[%s13630_s5 + $0x10] sm:$0xf] }
 0x376   : > { %10119 = vmatprep.mubr.msk.bf16.mxu0 %vm339_vm1, %v4038_v45  ;;  %v13145_v58 = vpack.c.bf16 %v6368_v8, %v6367_v33  ;;  %v4294_v45 = vld [vmem:[#allocation3 + $0x60] sm:$0xff]  ;;  %v13155_v10 = vpack.c.bf16 %v6372_v62, %v6371_v24 }
 0x377   : > { %v4323_v28 = vpack.c.bf16 %v4295_v22, %v4294_v45  ;;  %v4302_v8 = vld [vmem:[#allocation3 + $0xc0] sm:$0xff] }
 0x378   : > { %v6642_v33 = vld [vmem:[#allocation4 + $0xa] sm:$0xff]  ;;  %v4327_v45 = vpack.c.bf16 %v4303_v34, %v4302_v8 }
 0x379   : > { %v6673_v22 = vpack.c.bf16 %v6642_v33, %v6641_v41  ;;  %v4305_v62 = vld [vmem:[#allocation3 + $0xe0] sm:$0xff]  ;;  %v4311_v41 = vld [vmem:[#allocation3 + $0x128] sm:$0xff] }
 0x37a   : > { %v4310_v8 = vld [vmem:[#allocation3 + $0x120] sm:$0xff] }
 0x37b   : > { %10368 = vmatmul.mubr.msk.bf16.vlgmr.msra.gmra.mrb[16].mxu1 %vm3311_vm4, %v13083_v37  ;;  %v6647_v33 = vld [vmem:[#allocation4 + $0x4a] sm:$0xff]  ;;  %v4331_v34 = vpack.c.bf16 %v4311_v41, %v4310_v8  ;;  %v4317_v8 = vld [vmem:[#allocation3 + $0x170] sm:$0xff] }
 0x37c   : > { %10400 = vmatpush3.bf16.msra.mxu1 %v6740_v46  ;;  %10371 = vmatprep.mubr.msk.bf16.mxu1 %vm3311_vm4, %v13087_v7  ;;  %v11540_v46 = vld [vmem:[%s13631_s6 + $0x8] sm:$0x3] }
 0x37d   : > { %11525 = vmatprep.subr.msk.bf16.mxu1 %vm6150_vm3, %v13092_v3  ;;  %10120 = vmatmul.mubr.msk.bf16.gmra.mrb[56].mxu0 %vm339_vm1, %v4039_v25  ;;  %v6370_v25 = vld [vmem:[#allocation4 + $0x111] sm:$0xff] }
 0x37e   : > { %10123 = vmatprep.mubr.msk.bf16.mxu0 %vm339_vm1, %v4040_v52  ;;  %11516 = vmatprep.subr.msk.bf16.mxu0 %vm723_vm0, %v11540_v46  ;;  %v13153_v13 = vpack.c.bf16 %v6370_v25, %v6369_v20  ;;  %v4296_v52 = vld [vmem:[#allocation3 + $0x78] sm:$0xff]  ;;  %v6373_v46 = vld [vmem:[#allocation4 + $0x139] sm:$0xff] }
 0x37f   : > { %v4324_v61 = vpack.c.bf16 %v4297_v55, %v4296_v52  ;;  %v13163_v31 = vpack.c.bf16 %v6374_v26, %v6373_v46  ;;  %v4306_v20 = vld [vmem:[#allocation3 + $0xf0] sm:$0xff]  ;;  %v4307_v52 = vld [vmem:[#allocation3 + $0xf8] sm:$0xff] }
 0x380   : > { %v6643_v55 = vld [vmem:[#allocation4 + $0x1a] sm:$0xff] }
 0x381   : > { %v6646_v26 = vld [vmem:[#allocation4 + $0x3a] sm:$0xff] }
 0x383   : > { %10372 = vmatmul.mubr.msk.bf16.gmra.mrb[20].mxu1 %vm3311_vm4, %v13102_v19 }
 0x384   : > { %10375 = vmatprep.mubr.msk.bf16.mxu1 %vm3311_vm4, %v13104_v49 }
 0x385   : > { %10124 = vmatmul.mubr.msk.bf16.gmra.mrb[60].mxu0 %vm339_vm1, %v4041_v51  ;;  %v4299_v51 = vld [vmem:[#allocation3 + $0x98] sm:$0xff] }
 0x386   : > { %10129 = vmatprep.mubr.msk.bf16.mxu0 %vm339_vm1, %v12851_v59  ;;  %v13646_v59 = vld [vmem:[#allocation5_spill] sm:$0xff]  ;;  %v4325_v18 = vpack.c.bf16 %v4299_v51, %v4298_v60  ;;  %v6644_v60 = vld [vmem:[#allocation4 + $0x22] sm:$0xff] }
 0x387   : > { %v6645_v51 = vld [vmem:[#allocation4 + $0x32] sm:$0xff] }
 0x388   : > { %v13184_v46 = vpack.c.bf16 %v6646_v26, %v6645_v51  ;;  %v6653_v51 = vld [vmem:[#allocation4 + $0x92] sm:$0xff]  ;;  %v6654_v26 = vld [vmem:[#allocation4 + $0x9a] sm:$0xff] }
 0x38b   : > { %10376 = vmatmul.mubr.msk.bf16.gmra.mrb[24].mxu1 %vm3311_vm4, %v13112_v32 }
 0x38c   : > { %10379 = vmatprep.mubr.msk.bf16.mxu1 %vm3311_vm4, %v13114_v38 }
 0x38d   : > { %10130 = vmatmul.mubr.msk.bf16.vlgmr.msra.gmra.mrb[32].mxu0 %vm339_vm1, %v4321_v5  ;;  %v4300_v5 = vld [vmem:[#allocation3 + $0xa8] sm:$0xff] }
 0x38e   : > { %10162 = vmatpush3.bf16.msra.mxu0 %v13646_v59  ;;  %10133 = vmatprep.mubr.msk.bf16.mxu0 %vm339_vm1, %v4322_v53  ;;  %v4326_v59 = vpack.c.bf16 %v4301_v15, %v4300_v5  ;;  %v6377_v53 = vld [vmem:[#allocation4 + $0x169] sm:$0xff]  ;;  %v4308_v5 = vld [vmem:[#allocation3 + $0x108] sm:$0xff]  ;;  %v4309_v15 = vld [vmem:[#allocation3 + $0x110] sm:$0xff] }
 0x38f   : > { %v13173_v25 = vpack.c.bf16 %v6378_v39, %v6377_v53  ;;  %v4330_v3 = vpack.c.bf16 %v4309_v15, %v4308_v5  ;;  %v6649_v39 = vld [vmem:[#allocation4 + $0x62] sm:$0xff]  ;;  %v13211_v5 = vpack.c.bf16 %v6654_v26, %v6653_v51  ;;  %v4316_v15 = vld [vmem:[#allocation3 + $0x168] sm:$0xff]  ;;  %v6663_v51 = vld [vmem:[#allocation4 + $0x10a] sm:$0xff] }
 0x390   : > { %v4334_v41 = vpack.c.bf16 %v4317_v8, %v4316_v15  ;;  %v6664_v26 = vld [vmem:[#allocation4 + $0x112] sm:$0xff]  ;;  %v6665_v15 = vld [vmem:[#allocation4 + $0x122] sm:$0xff]  ;;  %v6666_v8 = vld [vmem:[#allocation4 + $0x12a] sm:$0xff] }
 0x393   : > { %10380 = vmatmul.mubr.msk.bf16.gmra.mrb[28].mxu1 %vm3311_vm4, %v13131_v27 }
 0x394   : > { %10383 = vmatprep.mubr.msk.bf16.mxu1 %vm3311_vm4, %v13135_v2 }
 0x395   : > { %10134 = vmatmul.mubr.msk.bf16.gmra.mrb[36].mxu0 %vm339_vm1, %v4323_v28  ;;  %v4304_v28 = vld [vmem:[#allocation3 + $0xd8] sm:$0xff] }
 0x396   : > { %10137 = vmatprep.mubr.msk.bf16.mxu0 %vm339_vm1, %v4324_v61  ;;  %v4328_v24 = vpack.c.bf16 %v4305_v62, %v4304_v28  ;;  %v4329_v61 = vpack.c.bf16 %v4307_v52, %v4306_v20  ;;  %v4312_v28 = vld [vmem:[#allocation3 + $0x138] sm:$0xff]  ;;  %v4313_v62 = vld [vmem:[#allocation3 + $0x140] sm:$0xff]  ;;  %v4314_v20 = vld [vmem:[#allocation3 + $0x150] sm:$0xff] }
 0x397   : > { %v4315_v52 = vld [vmem:[#allocation3 + $0x158] sm:$0xff] }
 0x39b   : > { %10384 = vmatmul.mubr.msk.bf16.gmra.mrb[0].mxu1 %vm3311_vm4, %v13142_v23 }
 0x39c   : > { %10387 = vmatprep.mubr.msk.bf16.mxu1 %vm3311_vm4, %v13145_v58 }
 0x39d   : > { %10138 = vmatmul.mubr.msk.bf16.gmra.mrb[40].mxu0 %vm339_vm1, %v4325_v18  ;;  %v13180_v18 = vpack.c.bf16 %v6644_v60, %v6643_v55  ;;  %v6651_v55 = vld [vmem:[#allocation4 + $0x7a] sm:$0xff]  ;;  %v6652_v60 = vld [vmem:[#allocation4 + $0x82] sm:$0xff] }
 0x39e   : > { %10141 = vmatprep.mubr.msk.bf16.mxu0 %vm339_vm1, %v4326_v59  ;;  %v6648_v59 = vld [vmem:[#allocation4 + $0x52] sm:$0xff] }
 0x39f   : > { %v13199_v53 = vpack.c.bf16 %v6648_v59, %v6647_v33  ;;  %v4319_v33 = vld [vmem:[#allocation3 + $0x188] sm:$0xff]  ;;  %v6655_v59 = vld [vmem:[#allocation4 + $0xaa] sm:$0xff] }
 0x3a3   : > { %10388 = vmatmul.mubr.msk.bf16.gmra.mrb[4].mxu1 %vm3311_vm4, %v13153_v13 }
 0x3a4   : > { %10391 = vmatprep.mubr.msk.bf16.mxu1 %vm3311_vm4, %v13155_v10 }
 0x3a5   : > { %10142 = vmatmul.mubr.msk.bf16.gmra.mrb[44].mxu0 %vm339_vm1, %v4327_v45  ;;  %v6650_v45 = vld [vmem:[#allocation4 + $0x6a] sm:$0xff] }
 0x3a6   : > { %10145 = vmatprep.mubr.msk.bf16.mxu0 %vm339_vm1, %v4328_v24  ;;  %v4332_v24 = vpack.c.bf16 %v4313_v62, %v4312_v28  ;;  %v6658_v28 = vld [vmem:[#allocation4 + $0xca] sm:$0xff] }
 0x3ab   : > { %10392 = vmatmul.mubr.msk.bf16.gmra.mrb[8].mxu1 %vm3311_vm4, %v13163_v31 }
 0x3ac   : > { %10395 = vmatprep.mubr.msk.bf16.mxu1 %vm3311_vm4, %v13165_v0 }
 0x3ad   : > { %10146 = vmatmul.mubr.msk.bf16.gmra.mrb[48].mxu0 %vm339_vm1, %v4329_v61  ;;  %v4333_v61 = vpack.c.bf16 %v4315_v52, %v4314_v20  ;;  %v6660_v52 = vld [vmem:[#allocation4 + $0xe2] sm:$0xff] }
 0x3ae   : > { %10149 = vmatprep.mubr.msk.bf16.mxu0 %vm339_vm1, %v4330_v3  ;;  %v4318_v3 = vld [vmem:[#allocation3 + $0x180] sm:$0xff] }
 0x3b3   : > { %10396 = vmatmul.mubr.msk.bf16.gmra.mrb[12].mxu1 %vm3311_vm4, %v13173_v25 }
 0x3b4   : > { %10401 = vmatprep.mubr.msk.bf16.mxu1 %vm3311_vm4, %v6673_v22  ;;  %v13201_v22 = vpack.c.bf16 %v6650_v45, %v6649_v39  ;;  %v4335_v39 = vpack.c.bf16 %v4319_v33, %v4318_v3  ;;  %v6657_v45 = vld [vmem:[#allocation4 + $0xc2] sm:$0xff]  ;;  %v6667_v3 = vld [vmem:[#allocation4 + $0x13a] sm:$0xff]  ;;  %v6669_v33 = vld [vmem:[#allocation4 + $0x152] sm:$0xff] }
 0x3b5   : > { %10150 = vmatmul.mubr.msk.bf16.gmra.mrb[52].mxu0 %vm339_vm1, %v4331_v34  ;;  %v6656_v34 = vld [vmem:[#allocation4 + $0xb2] sm:$0xff]  ;;  %v13223_v20 = vpack.c.bf16 %v6658_v28, %v6657_v45 }
 0x3b6   : > { %10153 = vmatprep.mubr.msk.bf16.mxu0 %vm339_vm1, %v4332_v24  ;;  %v13219_v62 = vpack.c.bf16 %v6656_v34, %v6655_v59  ;;  %v6659_v24 = vld [vmem:[#allocation4 + $0xda] sm:$0xff]  ;;  %v6671_v34 = vld [vmem:[#allocation4 + $0x16a] sm:$0xff] }
 0x3b7   : > { %v6670_v59 = vld [vmem:[#allocation4 + $0x15a] sm:$0xff] }
 0x3bb   : > { %10402 = vmatmul.mubr.msk.bf16.vlgmr.msra.gmra.mrb[16].mxu1 %vm3311_vm4, %v13180_v18 }
 0x3bc   : > { %10434 = vmatpush3.bf16.msra.mxu1 %v7034_v56  ;;  %10405 = vmatprep.mubr.msk.bf16.mxu1 %vm3311_vm4, %v13184_v46  ;;  %v13209_v56 = vpack.c.bf16 %v6652_v60, %v6651_v55  ;;  %v6661_v55 = vld [vmem:[#allocation4 + $0xf2] sm:$0xff]  ;;  %v6662_v60 = vld [vmem:[#allocation4 + $0xfa] sm:$0xff] }
 0x3bd   : > { %11526 = vmatprep.subr.msk.bf16.mxu1 %vm6150_vm3, %v13189_v17  ;;  %10154 = vmatmul.mubr.msk.bf16.gmra.mrb[56].mxu0 %vm339_vm1, %v4333_v61  ;;  %v13231_v61 = vpack.c.bf16 %v6660_v52, %v6659_v24  ;;  %v7823_v24 = vld [vmem:[#allocation4 + $0x68] sm:$0xff] }
 0x3be   : > { %10157 = vmatprep.mubr.msk.bf16.mxu0 %vm339_vm1, %v4334_v41  ;;  %v6668_v41 = vld [vmem:[#allocation4 + $0x142] sm:$0xff] }
 0x3bf   : > { %v7820_v52 = vld [vmem:[#allocation4 + $0x48] sm:$0xff] }
 0x3c3   : > { %10406 = vmatmul.mubr.msk.bf16.gmra.mrb[20].mxu1 %vm3311_vm4, %v13199_v53 }
 0x3c4   : > { %10409 = vmatprep.mubr.msk.bf16.mxu1 %vm3311_vm4, %v13201_v22 }
 0x3c5   : > { %10158 = vmatmul.mubr.msk.bf16.gmra.mrb[60].mxu0 %vm339_vm1, %v4335_v39  ;;  %v6672_v39 = vld [vmem:[#allocation4 + $0x172] sm:$0xff] }
 0x3c6   : > { %10163 = vmatprep.mubr.msk.bf16.mxu0 %vm339_vm1, %v12889_v54  ;;  %v13235_v54 = vpack.c.bf16 %v6662_v60, %v6661_v55  ;;  %v13267_v45 = vpack.c.bf16 %v6672_v39, %v6671_v34 }
 0x3cb   : > { %10410 = vmatmul.mubr.msk.bf16.gmra.mrb[24].mxu1 %vm3311_vm4, %v13209_v56 }
 0x3cc   : > { %10413 = vmatprep.mubr.msk.bf16.mxu1 %vm3311_vm4, %v13211_v5 }
 0x3cd   : > { %10164 = vmatmul.mubr.msk.bf16.vlgmr.msra.gmra.mrb[32].mxu0 %vm339_vm1, %v12894_v9  ;;  %v13243_v9 = vpack.c.bf16 %v6664_v26, %v6663_v51  ;;  %v13442_v51 = vld [vmem:[%s13630_s5 + $0x20] sm:$0xf] }
 0x3ce   : > { %10167 = vmatprep.mubr.msk.bf16.mxu0 %vm339_vm1, %v12896_v21  ;;  %v13247_v21 = vpack.c.bf16 %v6666_v8, %v6665_v15 }
 0x3d3   : > { %10414 = vmatmul.mubr.msk.bf16.gmra.mrb[28].mxu1 %vm3311_vm4, %v13219_v62 }
 0x3d4   : > { %10417 = vmatprep.mubr.msk.bf16.mxu1 %vm3311_vm4, %v13223_v20 }
 0x3d5   : > { %10168 = vmatmul.mubr.msk.bf16.gmra.mrb[36].mxu0 %vm339_vm1, %v12902_v43  ;;  %v13255_v43 = vpack.c.bf16 %v6668_v41, %v6667_v3  ;;  %v7827_v3 = vld [vmem:[#allocation4 + $0x98] sm:$0xff] }
 0x3d6   : > { %10171 = vmatprep.mubr.msk.bf16.mxu0 %vm339_vm1, %v12904_v4  ;;  %v13259_v4 = vpack.c.bf16 %v6670_v59, %v6669_v33  ;;  %v7824_v41 = vld [vmem:[#allocation4 + $0x78] sm:$0xff]  ;;  %v7826_v59 = vld [vmem:[#allocation4 + $0x90] sm:$0xff] }
 0x3db   : > { %10418 = vmatmul.mubr.msk.bf16.gmra.mrb[0].mxu1 %vm3311_vm4, %v13231_v61 }
 0x3dc   : > { %10421 = vmatprep.mubr.msk.bf16.mxu1 %vm3311_vm4, %v13235_v54 }
 0x3dd   : > { %10172 = vmatmul.mubr.msk.bf16.gmra.mrb[40].mxu0 %vm339_vm1, %v12917_v29  ;;  %v7328_v29 = vsel %vm6150_vm3, %v13189_v17, 0 }
 0x3de   : > { %10175 = vmatprep.mubr.msk.bf16.mxu0 %vm339_vm1, %v12920_v12  ;;  %v9188_v12 = vld [vmem:[%s13630_s5 + $0x14] sm:$0xf] }
 0x3e3   : > { %10422 = vmatmul.mubr.msk.bf16.gmra.mrb[4].mxu1 %vm3311_vm4, %v13243_v9 }
 0x3e4   : > { %10425 = vmatprep.mubr.msk.bf16.mxu1 %vm3311_vm4, %v13247_v21 }
 0x3e5   : > { %10176 = vmatmul.mubr.msk.bf16.gmra.mrb[44].mxu0 %vm339_vm1, %v12933_v44  ;;  %v6966_v44 = vld [vmem:[#allocation4 + $0x188] sm:$0xff] }
 0x3eb   : > { %10426 = vmatmul.mubr.msk.bf16.gmra.mrb[8].mxu1 %vm3311_vm4, %v13255_v43 }
 0x3ec   : > { %10429 = vmatprep.mubr.msk.bf16.mxu1 %vm3311_vm4, %v13259_v4 }
 0x3f3   : > { %10430 = vmatmul.mubr.msk.bf16.gmra.mrb[12].mxu1 %vm3311_vm4, %v13267_v45 }
 0x3f4   : > { %10435 = vmatprep.mubr.msk.bf16.mxu1 %vm3311_vm4, %v12944_v6  ;;  %v6965_v6 = vld [vmem:[#allocation4 + $0x180] sm:$0xff] }
 0x3fb   : > { %10436 = vmatmul.mubr.msk.bf16.vlgmr.msra.gmra.mrb[16].mxu1 %vm3311_vm4, %v12949_v48  ;;  %v13307_v48 = vpack.c.bf16 %v6966_v44, %v6965_v6  ;;  %v7828_v44 = vld [vmem:[#allocation4 + $0xa8] sm:$0xff] }
 0x3fc   : > { %10468 = vmatpush3.bf16.msra.mxu1 %v7328_v29  ;;  %10439 = vmatprep.mubr.msk.bf16.mxu1 %vm3311_vm4, %v12971_v30  ;;  %v7622_v30 = vsel %vm6150_vm3, %v9188_v12, 0 }
 0x3fd   : > { %11527 = vmatprep.subr.msk.bf16.mxu1 %vm6150_vm3, %v9188_v12  ;;  %v7831_v12 = vld [vmem:[#allocation4 + $0xc8] sm:$0xff] }
 0x403   : > { %10440 = vmatmul.mubr.msk.bf16.gmra.mrb[20].mxu1 %vm3311_vm4, %v12974_v1  ;;  %v9205_v1 = vld [vmem:[%s13630_s5 + $0x18] sm:$0xf] }
 0x404   : > { %10443 = vmatprep.mubr.msk.bf16.mxu1 %vm3311_vm4, %v12989_v50  ;;  %v7260_v50 = vld [vmem:[#allocation4 + $0x189] sm:$0xff] }
 0x40b   : > { %10444 = vmatmul.mubr.msk.bf16.gmra.mrb[24].mxu1 %vm3311_vm4, %v12992_v14  ;;  %v7259_v14 = vld [vmem:[#allocation4 + $0x181] sm:$0xff] }
 0x40c   : > { %10447 = vmatprep.mubr.msk.bf16.mxu1 %vm3311_vm4, %v13012_v16  ;;  %v13346_v16 = vpack.c.bf16 %v7260_v50, %v7259_v14  ;;  %v7833_v50 = vld [vmem:[#allocation4 + $0xe0] sm:$0xff]  ;;  %v7835_v14 = vld [vmem:[#allocation4 + $0xf8] sm:$0xff] }
 0x413   : > { %10448 = vmatmul.mubr.msk.bf16.gmra.mrb[28].mxu1 %vm3311_vm4, %v13015_v11  ;;  %v7917_v11 = vsel %vm6150_vm3, %v9205_v1, 0 }
 0x414   : > { %10451 = vmatprep.mubr.msk.bf16.mxu1 %vm3311_vm4, %v13030_v40  ;;  %v9222_v40 = vld [vmem:[%s13630_s5 + $0x1c] sm:$0xf] }
 0x415   : > { %v8211_v60 = vsel %vm6150_vm3, %v9222_v40, 0 }
 0x41b   : > { %10452 = vmatmul.mubr.msk.bf16.gmra.mrb[0].mxu1 %vm3311_vm4, %v13033_v63 }
 0x41c   : > { %10455 = vmatprep.mubr.msk.bf16.mxu1 %vm3311_vm4, %v13048_v57 }
 0x423   : > { %10456 = vmatmul.mubr.msk.bf16.gmra.mrb[4].mxu1 %vm3311_vm4, %v13051_v36 }
 0x424   : > { %10459 = vmatprep.mubr.msk.bf16.mxu1 %vm3311_vm4, %v13066_v35 }
 0x42b   : > { %10460 = vmatmul.mubr.msk.bf16.gmra.mrb[8].mxu1 %vm3311_vm4, %v13068_v47 }
 0x42c   : > { %10463 = vmatprep.mubr.msk.bf16.mxu1 %vm3311_vm4, %v13076_v42 }
 0x433   : > { %10464 = vmatmul.mubr.msk.bf16.gmra.mrb[12].mxu1 %vm3311_vm4, %v13307_v48 }
 0x434   : > { %10469 = vmatprep.mubr.msk.bf16.mxu1 %vm3311_vm4, %v13083_v37 }
 0x43b   : > { %10470 = vmatmul.mubr.msk.bf16.vlgmr.msra.gmra.mrb[16].mxu1 %vm3311_vm4, %v13087_v7 }
 0x43c   : > { %10502 = vmatpush3.bf16.msra.mxu1 %v7622_v30  ;;  %10473 = vmatprep.mubr.msk.bf16.mxu1 %vm3311_vm4, %v13102_v19  ;;  %v7830_v30 = vld [vmem:[#allocation4 + $0xc0] sm:$0xff] }
 0x43d   : > { %11528 = vmatprep.subr.msk.bf16.mxu1 %vm6150_vm3, %v9205_v1  ;;  %v7856_v1 = vpack.c.bf16 %v7831_v12, %v7830_v30 }
 0x443   : > { %10474 = vmatmul.mubr.msk.bf16.gmra.mrb[20].mxu1 %vm3311_vm4, %v13104_v49 }
 0x444   : > { %10477 = vmatprep.mubr.msk.bf16.mxu1 %vm3311_vm4, %v13112_v32 }
 0x44b   : > { %10478 = vmatmul.mubr.msk.bf16.gmra.mrb[24].mxu1 %vm3311_vm4, %v13114_v38 }
 0x44c   : > { %10481 = vmatprep.mubr.msk.bf16.mxu1 %vm3311_vm4, %v13131_v27 }
 0x453   : > { %10482 = vmatmul.mubr.msk.bf16.gmra.mrb[28].mxu1 %vm3311_vm4, %v13135_v2 }
 0x454   : > { %10485 = vmatprep.mubr.msk.bf16.mxu1 %vm3311_vm4, %v13142_v23 }
 0x45b   : > { %10486 = vmatmul.mubr.msk.bf16.gmra.mrb[0].mxu1 %vm3311_vm4, %v13145_v58 }
 0x45c   : > { %10489 = vmatprep.mubr.msk.bf16.mxu1 %vm3311_vm4, %v13153_v13 }
 0x463   : > { %10490 = vmatmul.mubr.msk.bf16.gmra.mrb[4].mxu1 %vm3311_vm4, %v13155_v10 }
 0x464   : > { %10493 = vmatprep.mubr.msk.bf16.mxu1 %vm3311_vm4, %v13163_v31 }
 0x46b   : > { %10494 = vmatmul.mubr.msk.bf16.gmra.mrb[8].mxu1 %vm3311_vm4, %v13165_v0  ;;  %v7553_v0 = vld [vmem:[#allocation4 + $0x182] sm:$0xff] }
 0x46c   : > { %10497 = vmatprep.mubr.msk.bf16.mxu1 %vm3311_vm4, %v13173_v25  ;;  %v7554_v25 = vld [vmem:[#allocation4 + $0x18a] sm:$0xff] }
 0x46d   : > { %v13425_v17 = vpack.c.bf16 %v7554_v25, %v7553_v0  ;;  %v7834_v0 = vld [vmem:[#allocation4 + $0xf0] sm:$0xff] }
 0x46e   : > { %v7858_v25 = vpack.c.bf16 %v7835_v14, %v7834_v0  ;;  %v8114_v14 = vld [vmem:[#allocation4 + $0x49] sm:$0xff]  ;;  %v8116_v0 = vld [vmem:[#allocation4 + $0x61] sm:$0xff] }
 0x473   : > { %10498 = vmatmul.mubr.msk.bf16.gmra.mrb[12].mxu1 %vm3311_vm4, %v13346_v16 }
 0x474   : > { %10503 = vmatprep.mubr.msk.bf16.mxu1 %vm3311_vm4, %v13180_v18 }
 0x47b   : > { %10504 = vmatmul.mubr.msk.bf16.vlgmr.msra.gmra.mrb[16].mxu1 %vm3311_vm4, %v13184_v46  ;;  %v7819_v46 = vld [vmem:[#allocation4 + $0x38] sm:$0xff] }
 0x47c   : > { %10536 = vmatpush3.bf16.msra.mxu1 %v7917_v11  ;;  %10507 = vmatprep.mubr.msk.bf16.mxu1 %vm3311_vm4, %v13199_v53  ;;  %v7818_v53 = vld [vmem:[#allocation4 + $0x30] sm:$0xff]  ;;  %v7832_v11 = vld [vmem:[#allocation4 + $0xd8] sm:$0xff] }
 0x47d   : > { %11529 = vmatprep.subr.msk.bf16.mxu1 %vm6150_vm3, %v9222_v40  ;;  %v7857_v40 = vpack.c.bf16 %v7833_v50, %v7832_v11  ;;  %v8117_v50 = vld [vmem:[#allocation4 + $0x69] sm:$0xff] }
 0x480   : > { %v13373_v63 = vpop.f32.mrb[48].mxu0 }
 0x481   : > { %v13375_v57 = vpop.f32.mrb[49].mxu0 }
 0x482   : > { %v13377_v36 = vpop.f32.mrb[50].mxu0 }
 0x483   : > { %10508 = vmatmul.mubr.msk.bf16.gmra.mrb[20].mxu1 %vm3311_vm4, %v13201_v22  ;;  %v13381_v35 = vpop.f32.mrb[51].mxu0  ;;  %v7850_v22 = vpack.c.bf16 %v7819_v46, %v7818_v53  ;;  %v7837_v46 = vld [vmem:[#allocation4 + $0x110] sm:$0xff]  ;;  %v7839_v53 = vld [vmem:[#allocation4 + $0x128] sm:$0xff] }
 0x484   : > { %10511 = vmatprep.mubr.msk.bf16.mxu1 %vm3311_vm4, %v13209_v56 }
 0x488   : > { %v13385_v47 = vpop.f32.mrb[52].mxu0 }
 0x489   : > { %v13387_v42 = vpop.f32.mrb[53].mxu0 }
 0x48a   : > { %v13389_v37 = vpop.f32.mrb[54].mxu0 }
 0x48b   : > { %10512 = vmatmul.mubr.msk.bf16.gmra.mrb[24].mxu1 %vm3311_vm4, %v13211_v5  ;;  %v13391_v7 = vpop.f32.mrb[55].mxu0 }
 0x48c   : > { %10515 = vmatprep.mubr.msk.bf16.mxu1 %vm3311_vm4, %v13219_v62  ;;  %v7821_v62 = vld [vmem:[#allocation4 + $0x50] sm:$0xff] }
 0x48d   : > { %v7851_v55 = vpack.c.bf16 %v7821_v62, %v7820_v52 }
 0x490   : > { %v13393_v19 = vpop.f32.mrb[56].mxu0 }
 0x491   : > { %v13395_v49 = vpop.f32.mrb[57].mxu0 }
 0x492   : > { %v13397_v32 = vpop.f32.mrb[58].mxu0 }
 0x493   : > { %10516 = vmatmul.mubr.msk.bf16.gmra.mrb[28].mxu1 %vm3311_vm4, %v13223_v20  ;;  %v13401_v38 = vpop.f32.mrb[59].mxu0 }
 0x494   : > { %10519 = vmatprep.mubr.msk.bf16.mxu1 %vm3311_vm4, %v13231_v61  ;;  %v7822_v61 = vld [vmem:[#allocation4 + $0x60] sm:$0xff] }
 0x498   : > { %v13405_v27 = vpop.f32.mrb[60].mxu0 }
 0x499   : > { %v13407_v2 = vpop.f32.mrb[61].mxu0 }
 0x49a   : > { %v13409_v23 = vpop.f32.mrb[62].mxu0 }
 0x49b   : > { %10520 = vmatmul.mubr.msk.bf16.gmra.mrb[0].mxu1 %vm3311_vm4, %v13235_v54  ;;  %v13411_v58 = vpop.f32.mrb[63].mxu0  ;;  %v7852_v54 = vpack.c.bf16 %v7823_v24, %v7822_v61  ;;  %v7838_v24 = vld [vmem:[#allocation4 + $0x120] sm:$0xff]  ;;  %v7840_v61 = vld [vmem:[#allocation4 + $0x138] sm:$0xff] }
 0x49c   : > { %10523 = vmatprep.mubr.msk.bf16.mxu1 %vm3311_vm4, %v13243_v9  ;;  %v7825_v9 = vld [vmem:[#allocation4 + $0x80] sm:$0xff]  ;;  %v7860_v52 = vpack.c.bf16 %v7839_v53, %v7838_v24 }
 0x49d   : > { %v7853_v33 = vpack.c.bf16 %v7825_v9, %v7824_v41  ;;  %v7842_v9 = vld [vmem:[#allocation4 + $0x150] sm:$0xff]  ;;  %v8118_v53 = vld [vmem:[#allocation4 + $0x79] sm:$0xff] }
 0x49e   : > { %v7845_v41 = vld [vmem:[#allocation4 + $0x170] sm:$0xff] }
 0x4a0   : > { %v13415_v13 = vpop.f32.mrb[32].mxu0 }
 0x4a1   : > { %v13419_v10 = vpop.f32.mrb[33].mxu0 }
 0x4a2   : > { %v13421_v31 = vpop.f32.mrb[34].mxu0 }
 0x4a3   : > { %10524 = vmatmul.mubr.msk.bf16.gmra.mrb[4].mxu1 %vm3311_vm4, %v13247_v21  ;;  %v13423_v18 = vpop.f32.mrb[35].mxu0 }
 0x4a4   : > { %10527 = vmatprep.mubr.msk.bf16.mxu1 %vm3311_vm4, %v13255_v43  ;;  %v7854_v43 = vpack.c.bf16 %v7827_v3, %v7826_v59 }
 0x4a8   : > { %v13429_v56 = vpop.f32.mrb[36].mxu0 }
 0x4a9   : > { %v13432_v5 = vpop.f32.mrb[37].mxu0 }
 0x4aa   : > { %v13434_v28 = vpop.f32.mrb[38].mxu0 }
 0x4ab   : > { %10528 = vmatmul.mubr.msk.bf16.gmra.mrb[8].mxu1 %vm3311_vm4, %v13259_v4  ;;  %v13436_v20 = vpop.f32.mrb[39].mxu0 }
 0x4ac   : > { %10531 = vmatprep.mubr.msk.bf16.mxu1 %vm3311_vm4, %v13267_v45  ;;  %v7829_v45 = vld [vmem:[#allocation4 + $0xb0] sm:$0xff] }
 0x4ad   : > { %v7855_v6 = vpack.c.bf16 %v7829_v45, %v7828_v44  ;;  %v7849_v45 = vld [vmem:[#allocation4 + $0x1a0] sm:$0xff] }
 0x4ae   : > { %v8113_v44 = vld [vmem:[#allocation4 + $0x39] sm:$0xff] }
 0x4b0   : > { %v13445_v26 = vpop.f32.mrb[40].mxu0 }
 0x4b1   : > { %v13448_v15 = vpop.f32.mrb[41].mxu0 }
 0x4b2   : > { %v13452_v8 = vpop.f32.mrb[42].mxu0 }
 0x4b3   : > { %10532 = vmatmul.mubr.msk.bf16.gmra.mrb[12].mxu1 %vm3311_vm4, %v13425_v17  ;;  %v13454_v21 = vpop.f32.mrb[43].mxu0 }
 0x4b4   : > { %10537 = vmatprep.mubr.msk.bf16.mxu1 %vm3311_vm4, %v7850_v22  ;;  %v7836_v22 = vld [vmem:[#allocation4 + $0x108] sm:$0xff] }
 0x4b5   : > { %v7859_v62 = vpack.c.bf16 %v7837_v46, %v7836_v22  ;;  %v8121_v46 = vld [vmem:[#allocation4 + $0x99] sm:$0xff] }
 0x4b8   : > { %v13457_v4 = vpop.f32.mrb[44].mxu0 }
 0x4b9   : > { %v13460_v34 = vpop.f32.mrb[45].mxu0 }
 0x4ba   : > { %v13462_v39 = vpop.f32.mrb[46].mxu0 }
 0x4bb   : > { %10538 = vmatmul.mubr.msk.bf16.vlgmr.msra.gmra.mrb[16].mxu1 %vm3311_vm4, %v7851_v55  ;;  %v13464_v29 = vpop.f32.mrb[47].mxu0  ;;  %v7841_v55 = vld [vmem:[#allocation4 + $0x140] sm:$0xff] }
 0x4bc   : > { %10570 = vmatpush3.bf16.msra.mxu1 %v8211_v60  ;;  %10541 = vmatprep.mubr.msk.bf16.mxu1 %vm3311_vm4, %v7852_v54  ;;  %v7843_v60 = vld [vmem:[#allocation4 + $0x158] sm:$0xff]  ;;  %v7861_v54 = vpack.c.bf16 %v7841_v55, %v7840_v61  ;;  %v8125_v55 = vld [vmem:[#allocation4 + $0xc9] sm:$0xff]  ;;  %v8124_v61 = vld [vmem:[#allocation4 + $0xc1] sm:$0xff] }
 0x4bd   : > { %11530 = vmatprep.subr.msk.bf16.mxu1 %vm6150_vm3, %v13442_v51  ;;  %v7862_v3 = vpack.c.bf16 %v7843_v60, %v7842_v9  ;;  %v8127_v9 = vld [vmem:[#allocation4 + $0xe1] sm:$0xff] }
 0x4c3   : > { %10542 = vmatmul.mubr.msk.bf16.gmra.mrb[20].mxu1 %vm3311_vm4, %v7853_v33  ;;  %v7844_v33 = vld [vmem:[#allocation4 + $0x168] sm:$0xff] }
 0x4c4   : > { %10545 = vmatprep.mubr.msk.bf16.mxu1 %vm3311_vm4, %v7854_v43  ;;  %v7863_v59 = vpack.c.bf16 %v7845_v41, %v7844_v33  ;;  %v7848_v43 = vld [vmem:[#allocation4 + $0x198] sm:$0xff] }
 0x4c5   : > { %v7865_v12 = vpack.c.bf16 %v7849_v45, %v7848_v43  ;;  %v8126_v41 = vld [vmem:[#allocation4 + $0xd9] sm:$0xff]  ;;  %v8131_v45 = vld [vmem:[#allocation4 + $0x111] sm:$0xff] }
 0x4c6   : > { %v8151_v33 = vpack.c.bf16 %v8127_v9, %v8126_v41  ;;  %v8411_v9 = vld [vmem:[#allocation4 + $0x6a] sm:$0xff] }
 0x4cb   : > { %10546 = vmatmul.mubr.msk.bf16.gmra.mrb[24].mxu1 %vm3311_vm4, %v7855_v6  ;;  %v8112_v6 = vld [vmem:[#allocation4 + $0x31] sm:$0xff] }
 0x4cc   : > { %10549 = vmatprep.mubr.msk.bf16.mxu1 %vm3311_vm4, %v7856_v1  ;;  %v8144_v30 = vpack.c.bf16 %v8113_v44, %v8112_v6  ;;  %v8115_v1 = vld [vmem:[#allocation4 + $0x51] sm:$0xff]  ;;  %v8130_v44 = vld [vmem:[#allocation4 + $0x109] sm:$0xff] }
 0x4cd   : > { %v8145_v11 = vpack.c.bf16 %v8115_v1, %v8114_v14  ;;  %v8153_v6 = vpack.c.bf16 %v8131_v45, %v8130_v44  ;;  %v8137_v14 = vld [vmem:[#allocation4 + $0x159] sm:$0xff]  ;;  %v8416_v44 = vld [vmem:[#allocation4 + $0xaa] sm:$0xff] }
 0x4d3   : > { %10550 = vmatmul.mubr.msk.bf16.gmra.mrb[28].mxu1 %vm3311_vm4, %v7857_v40  ;;  %v8505_v40 = vsel %vm6150_vm3, %v13442_v51, 0  ;;  %v8122_v51 = vld [vmem:[#allocation4 + $0xa9] sm:$0xff] }
 0x4d4   : > { %10553 = vmatprep.mubr.msk.bf16.mxu1 %vm3311_vm4, %v7858_v25  ;;  %v8146_v25 = vpack.c.bf16 %v8117_v50, %v8116_v0  ;;  %v8135_v50 = vld [vmem:[#allocation4 + $0x141] sm:$0xff]  ;;  %v8136_v0 = vld [vmem:[#allocation4 + $0x151] sm:$0xff] }
 0x4db   : > { %10554 = vmatmul.mubr.msk.bf16.gmra.mrb[0].mxu1 %vm3311_vm4, %v7859_v62  ;;  %v8120_v62 = vld [vmem:[#allocation4 + $0x91] sm:$0xff] }
 0x4dc   : > { %10557 = vmatprep.mubr.msk.bf16.mxu1 %vm3311_vm4, %v7860_v52  ;;  %v8148_v24 = vpack.c.bf16 %v8121_v46, %v8120_v62  ;;  %v8123_v52 = vld [vmem:[#allocation4 + $0xb1] sm:$0xff]  ;;  %v8138_v46 = vld [vmem:[#allocation4 + $0x169] sm:$0xff]  ;;  %v8143_v62 = vld [vmem:[#allocation4 + $0x1a1] sm:$0xff] }
 0x4dd   : > { %v8149_v60 = vpack.c.bf16 %v8123_v52, %v8122_v51  ;;  %v8406_v52 = vld [vmem:[#allocation4 + $0x32] sm:$0xff] }
 0x4e3   : > { %10558 = vmatmul.mubr.msk.bf16.gmra.mrb[4].mxu1 %vm3311_vm4, %v7861_v54  ;;  %v8150_v54 = vpack.c.bf16 %v8125_v55, %v8124_v61  ;;  %v8407_v55 = vld [vmem:[#allocation4 + $0x3a] sm:$0xff]  ;;  %v8409_v61 = vld [vmem:[#allocation4 + $0x52] sm:$0xff] }
 0x4e4   : > { %10561 = vmatprep.mubr.msk.bf16.mxu1 %vm3311_vm4, %v7862_v3  ;;  %v8129_v3 = vld [vmem:[#allocation4 + $0xf9] sm:$0xff]  ;;  %v8438_v51 = vpack.c.bf16 %v8407_v55, %v8406_v52 }
 0x4eb   : > { %10562 = vmatmul.mubr.msk.bf16.gmra.mrb[8].mxu1 %vm3311_vm4, %v7863_v59  ;;  %v8128_v59 = vld [vmem:[#allocation4 + $0xf1] sm:$0xff] }
 0x4ec   : > { %10565 = vmatprep.mubr.msk.bf16.mxu1 %vm3311_vm4, %v13307_v48  ;;  %v8119_v48 = vld [vmem:[#allocation4 + $0x81] sm:$0xff]  ;;  %v8152_v43 = vpack.c.bf16 %v8129_v3, %v8128_v59  ;;  %v8414_v59 = vld [vmem:[#allocation4 + $0x92] sm:$0xff] }
 0x4ed   : > { %v8147_v22 = vpack.c.bf16 %v8119_v48, %v8118_v53  ;;  %v8139_v48 = vld [vmem:[#allocation4 + $0x171] sm:$0xff] }
 0x4ee   : > { %v8157_v53 = vpack.c.bf16 %v8139_v48, %v8138_v46 }
 0x4f3   : > { %10566 = vmatmul.mubr.msk.bf16.gmra.mrb[12].mxu1 %vm3311_vm4, %v7865_v12  ;;  %v8133_v12 = vld [vmem:[#allocation4 + $0x129] sm:$0xff] }
 0x4f4   : > { %10571 = vmatprep.mubr.msk.bf16.mxu1 %vm3311_vm4, %v8144_v30  ;;  %v8132_v30 = vld [vmem:[#allocation4 + $0x121] sm:$0xff] }
 0x4f5   : > { %v8154_v1 = vpack.c.bf16 %v8133_v12, %v8132_v30  ;;  %v8418_v30 = vld [vmem:[#allocation4 + $0xc2] sm:$0xff] }
 0x4fb   : > { %10572 = vmatmul.mubr.msk.bf16.vlgmr.msra.gmra.mrb[16].mxu1 %vm3311_vm4, %v8145_v11  ;;  %v8134_v11 = vld [vmem:[#allocation4 + $0x139] sm:$0xff] }
 0x4fc   : > { %10604 = vmatpush3.bf16.msra.mxu1 %v8505_v40  ;;  %10575 = vmatprep.mubr.msk.bf16.mxu1 %vm3311_vm4, %v8146_v25  ;;  %v8155_v40 = vpack.c.bf16 %v8135_v50, %v8134_v11  ;;  %v8156_v25 = vpack.c.bf16 %v8137_v14, %v8136_v0  ;;  %v8420_v11 = vld [vmem:[#allocation4 + $0xda] sm:$0xff]  ;;  %v8422_v0 = vld [vmem:[#allocation4 + $0xf2] sm:$0xff] }
 0x503   : > { %10576 = vmatmul.mubr.msk.bf16.gmra.mrb[20].mxu1 %vm3311_vm4, %v8147_v22  ;;  %v8142_v22 = vld [vmem:[#allocation4 + $0x199] sm:$0xff] }
 0x504   : > { %10579 = vmatprep.mubr.msk.bf16.mxu1 %vm3311_vm4, %v8148_v24  ;;  %v8159_v24 = vpack.c.bf16 %v8143_v62, %v8142_v22  ;;  %v8425_v22 = vld [vmem:[#allocation4 + $0x112] sm:$0xff]  ;;  %v8426_v62 = vld [vmem:[#allocation4 + $0x122] sm:$0xff] }
 0x50b   : > { %10580 = vmatmul.mubr.msk.bf16.gmra.mrb[24].mxu1 %vm3311_vm4, %v8149_v60  ;;  %v8408_v60 = vld [vmem:[#allocation4 + $0x4a] sm:$0xff] }
 0x50c   : > { %10583 = vmatprep.mubr.msk.bf16.mxu1 %vm3311_vm4, %v8150_v54  ;;  %v8410_v54 = vld [vmem:[#allocation4 + $0x62] sm:$0xff]  ;;  %v8439_v3 = vpack.c.bf16 %v8409_v61, %v8408_v60  ;;  %v8430_v61 = vld [vmem:[#allocation4 + $0x152] sm:$0xff] }
 0x50d   : > { %v8440_v41 = vpack.c.bf16 %v8411_v9, %v8410_v54  ;;  %v8429_v60 = vld [vmem:[#allocation4 + $0x142] sm:$0xff]  ;;  %v8431_v54 = vld [vmem:[#allocation4 + $0x15a] sm:$0xff] }
 0x513   : > { %10584 = vmatmul.mubr.msk.bf16.gmra.mrb[28].mxu1 %vm3311_vm4, %v8151_v33  ;;  %v8413_v33 = vld [vmem:[#allocation4 + $0x82] sm:$0xff] }
 0x514   : > { %10587 = vmatprep.mubr.msk.bf16.mxu1 %vm3311_vm4, %v8152_v43  ;;  %v8415_v43 = vld [vmem:[#allocation4 + $0x9a] sm:$0xff] }
 0x515   : > { %v8442_v12 = vpack.c.bf16 %v8415_v43, %v8414_v59  ;;  %v8436_v59 = vld [vmem:[#allocation4 + $0x19a] sm:$0xff]  ;;  %v8437_v43 = vld [vmem:[#allocation4 + $0x1a2] sm:$0xff] }
 0x51b   : > { %10588 = vmatmul.mubr.msk.bf16.gmra.mrb[0].mxu1 %vm3311_vm4, %v8153_v6  ;;  %v8417_v6 = vld [vmem:[#allocation4 + $0xb2] sm:$0xff] }
 0x51c   : > { %10591 = vmatprep.mubr.msk.bf16.mxu1 %vm3311_vm4, %v8154_v1  ;;  %v8419_v1 = vld [vmem:[#allocation4 + $0xca] sm:$0xff]  ;;  %v8443_v50 = vpack.c.bf16 %v8417_v6, %v8416_v44 }
 0x51d   : > { %v8444_v14 = vpack.c.bf16 %v8419_v1, %v8418_v30 }
 0x523   : > { %10592 = vmatmul.mubr.msk.bf16.gmra.mrb[4].mxu1 %vm3311_vm4, %v8155_v40  ;;  %v8421_v40 = vld [vmem:[#allocation4 + $0xe2] sm:$0xff] }
 0x524   : > { %10595 = vmatprep.mubr.msk.bf16.mxu1 %vm3311_vm4, %v8156_v25  ;;  %v8423_v25 = vld [vmem:[#allocation4 + $0xfa] sm:$0xff]  ;;  %v8445_v48 = vpack.c.bf16 %v8421_v40, %v8420_v11 }
 0x525   : > { %v8446_v46 = vpack.c.bf16 %v8423_v25, %v8422_v0 }
 0x52b   : > { %10596 = vmatmul.mubr.msk.bf16.gmra.mrb[8].mxu1 %vm3311_vm4, %v8157_v53  ;;  %v8424_v53 = vld [vmem:[#allocation4 + $0x10a] sm:$0xff] }
 0x52c   : > { %10599 = vmatprep.mubr.msk.bf16.mxu1 %vm3311_vm4, %v13346_v16  ;;  %v8412_v16 = vld [vmem:[#allocation4 + $0x7a] sm:$0xff]  ;;  %v8447_v52 = vpack.c.bf16 %v8425_v22, %v8424_v53 }
 0x52d   : > { %v8441_v45 = vpack.c.bf16 %v8413_v33, %v8412_v16  ;;  %v8433_v16 = vld [vmem:[#allocation4 + $0x172] sm:$0xff] }
 0x533   : > { %10600 = vmatmul.mubr.msk.bf16.gmra.mrb[12].mxu1 %vm3311_vm4, %v8159_v24  ;;  %v8427_v24 = vld [vmem:[#allocation4 + $0x12a] sm:$0xff] }
 0x534   : > { %10605 = vmatprep.mubr.msk.bf16.mxu1 %vm3311_vm4, %v8438_v51  ;;  %v8448_v55 = vpack.c.bf16 %v8427_v24, %v8426_v62  ;;  %v8428_v51 = vld [vmem:[#allocation4 + $0x13a] sm:$0xff] }
 0x535   : > { %v8449_v9 = vpack.c.bf16 %v8429_v60, %v8428_v51 }
 0x53b   : > { %10606 = vmatmul.mubr.msk.bf16.vlgmr.msra.gmra.mrb[16].mxu1 %vm3311_vm4, %v8439_v3  ;;  %v8450_v3 = vpack.c.bf16 %v8431_v54, %v8430_v61 }
 0x53c   : > { %10609 = vmatprep.mubr.msk.bf16.mxu1 %vm3311_vm4, %v8440_v41  ;;  %v8432_v41 = vld [vmem:[#allocation4 + $0x16a] sm:$0xff] }
 0x53d   : > { %v8451_v33 = vpack.c.bf16 %v8433_v16, %v8432_v41 }
 0x543   : > { %10610 = vmatmul.mubr.msk.bf16.gmra.mrb[20].mxu1 %vm3311_vm4, %v8441_v45  ;;  %v8453_v45 = vpack.c.bf16 %v8437_v43, %v8436_v59 }
 0x544   : > { %10613 = vmatprep.mubr.msk.bf16.mxu1 %vm3311_vm4, %v8442_v12  ;;  %v13517_v12 = vld [vmem:[%s13632_s7] ss:$0 sm:$0xff] }
 0x545   : > { %v10671_v44 = vadd.f32 %v13415_v13, %v13517_v12  ;;  %v10673_v6 = vadd.f32 %v13517_v12, %v13419_v10  ;;  %v10675_v30 = vadd.f32 %v13421_v31, %v13517_v12  ;;  %v10677_v13 = vadd.f32 %v13517_v12, %v13423_v18 }
 0x546   : > { %v10679_v31 = vadd.f32 %v13429_v56, %v13517_v12  ;;  %v10681_v25 = vadd.f32 %v13517_v12, %v13432_v5  ;;  %v10685_v22 = vadd.f32 %v13517_v12, %v13436_v20  ;;  %v10687_v5 = vadd.f32 %v13445_v26, %v13517_v12 }
 0x547   : > { %v10691_v51 = vadd.f32 %v13452_v8, %v13517_v12  ;;  %v10693_v54 = vadd.f32 %v13517_v12, %v13454_v21  ;;  %v10697_v8 = vadd.f32 %v13517_v12, %v13460_v34  ;;  %v10703_v34 = vadd.f32 %v13373_v63, %v13517_v12 }
 0x54b   : > { %10614 = vmatmul.mubr.msk.bf16.gmra.mrb[24].mxu1 %vm3311_vm4, %v8443_v50 }
 0x54c   : > { %10617 = vmatprep.mubr.msk.bf16.mxu1 %vm3311_vm4, %v8444_v14 }
 0x553   : > { %10618 = vmatmul.mubr.msk.bf16.gmra.mrb[28].mxu1 %vm3311_vm4, %v8445_v48  ;;  %v10683_v48 = vadd.f32 %v13434_v28, %v13517_v12  ;;  %v10689_v28 = vadd.f32 %v13517_v12, %v13448_v15  ;;  %v10695_v15 = vadd.f32 %v13457_v4, %v13517_v12 }
 0x554   : > { %10621 = vmatprep.mubr.msk.bf16.mxu1 %vm3311_vm4, %v8446_v46 }
 0x55b   : > { %10622 = vmatmul.mubr.msk.bf16.gmra.mrb[0].mxu1 %vm3311_vm4, %v8447_v52 }
 0x55c   : > { %10625 = vmatprep.mubr.msk.bf16.mxu1 %vm3311_vm4, %v8448_v55 }
 0x563   : > { %10626 = vmatmul.mubr.msk.bf16.gmra.mrb[4].mxu1 %vm3311_vm4, %v8449_v9 }
 0x564   : > { %10629 = vmatprep.mubr.msk.bf16.mxu1 %vm3311_vm4, %v8450_v3 }
 0x56b   : > { %10630 = vmatmul.mubr.msk.bf16.gmra.mrb[8].mxu1 %vm3311_vm4, %v8451_v33  ;;  %v10699_v33 = vadd.f32 %v13462_v39, %v13517_v12  ;;  %v10705_v39 = vadd.f32 %v13517_v12, %v13375_v57  ;;  %v10711_v57 = vadd.f32 %v13385_v47, %v13517_v12 }
 0x56c   : > { %10633 = vmatprep.mubr.msk.bf16.mxu1 %vm3311_vm4, %v13425_v17 }
 0x573   : > { %10634 = vmatmul.mubr.msk.bf16.gmra.mrb[12].mxu1 %vm3311_vm4, %v8453_v45  ;;  %v10701_v45 = vadd.f32 %v13517_v12, %v13464_v29 }
 0x60e   : > { %v10607_v17 = vpop.f32.mrb[16].mxu1 }
 0x60f   : > { %v10672_v1 = vadd.f32 %v10671_v44, %v10607_v17  ;;  %v8541_v50 = vpop.f32.mrb[17].mxu1 }
 0x610   : > { %v10674_v10 = vadd.f32 %v10673_v6, %v8541_v50  ;;  %v10608_v14 = vpop.f32.mrb[18].mxu1 }
 0x611   : > { %8702 = vst [vmem:[%s13528_s21 + $0x10] sm:$0xff] %v10672_v1  ;;  %v10676_v11 = vadd.f32 %v10675_v30, %v10608_v14  ;;  %v8544_v40 = vpop.f32.mrb[19].mxu1  ;;  %v10707_v1 = vadd.f32 %v13377_v36, %v13517_v12  ;;  %v10713_v36 = vadd.f32 %v13517_v12, %v13387_v42  ;;  %v10719_v42 = vadd.f32 %v13393_v19, %v13517_v12 }
 0x612   : > { %8700 = vst [vmem:[%s13528_s21] sm:$0xff] %v10674_v10  ;;  %v10678_v0 = vadd.f32 %v10677_v13, %v8544_v40  ;;  %v10709_v10 = vadd.f32 %v13517_v12, %v13381_v35 }
 0x613   : > { %8703 = vst [vmem:[%s13528_s21 + $0x18] sm:$0xff] %v10676_v11 }
 0x614   : > { %8701 = vst [vmem:[%s13528_s21 + $0x8] sm:$0xff] %v10678_v0 }
 0x616   : > { %v10611_v18 = vpop.f32.mrb[20].mxu1 }
 0x617   : > { %v10680_v46 = vadd.f32 %v10679_v31, %v10611_v18  ;;  %v8557_v53 = vpop.f32.mrb[21].mxu1  ;;  %v10715_v31 = vadd.f32 %v13389_v37, %v13517_v12  ;;  %v10721_v37 = vadd.f32 %v13517_v12, %v13395_v49  ;;  %v10727_v49 = vadd.f32 %v13405_v27, %v13517_v12 }
 0x618   : > { %v10682_v62 = vadd.f32 %v10681_v25, %v8557_v53  ;;  %v10612_v24 = vpop.f32.mrb[22].mxu1 }
 0x619   : > { %8706 = vst [vmem:[%s13528_s21 + $0x30] sm:$0xff] %v10680_v46  ;;  %v10684_v52 = vadd.f32 %v10683_v48, %v10612_v24  ;;  %v8560_v55 = vpop.f32.mrb[23].mxu1  ;;  %v10717_v48 = vadd.f32 %v13517_v12, %v13391_v7  ;;  %v10723_v24 = vadd.f32 %v13397_v32, %v13517_v12  ;;  %v10729_v32 = vadd.f32 %v13517_v12, %v13407_v2 }
 0x61a   : > { %8704 = vst [vmem:[%s13528_s21 + $0x20] sm:$0xff] %v10682_v62  ;;  %v10686_v56 = vadd.f32 %v10685_v22, %v8560_v55 }
 0x61b   : > { %8707 = vst [vmem:[%s13528_s21 + $0x38] sm:$0xff] %v10684_v52 }
 0x61c   : > { %8705 = vst [vmem:[%s13528_s21 + $0x28] sm:$0xff] %v10686_v56  ;;  %v10725_v56 = vadd.f32 %v13517_v12, %v13401_v38 }
 0x61e   : > { %v10615_v20 = vpop.f32.mrb[24].mxu1 }
 0x61f   : > { %v10688_v60 = vadd.f32 %v10687_v5, %v10615_v20  ;;  %v8573_v61 = vpop.f32.mrb[25].mxu1 }
 0x620   : > { %v10690_v9 = vadd.f32 %v10689_v28, %v8573_v61  ;;  %v10616_v3 = vpop.f32.mrb[26].mxu1 }
 0x621   : > { %8710 = vst [vmem:[%s13528_s21 + $0x50] sm:$0xff] %v10688_v60  ;;  %v10692_v41 = vadd.f32 %v10691_v51, %v10616_v3  ;;  %v8576_v16 = vpop.f32.mrb[27].mxu1  ;;  %v10731_v60 = vadd.f32 %v13409_v23, %v13517_v12 }
 0x622   : > { %8708 = vst [vmem:[%s13528_s21 + $0x40] sm:$0xff] %v10690_v9  ;;  %v10694_v26 = vadd.f32 %v10693_v54, %v8576_v16  ;;  %v10733_v9 = vadd.f32 %v13517_v12, %v13411_v58 }
 0x623   : > { %8711 = vst [vmem:[%s13528_s21 + $0x58] sm:$0xff] %v10692_v41 }
 0x624   : > { %8709 = vst [vmem:[%s13528_s21 + $0x48] sm:$0xff] %v10694_v26 }
 0x626   : > { %v10619_v21 = vpop.f32.mrb[28].mxu1 }
 0x627   : > { %v10696_v59 = vadd.f32 %v10695_v15, %v10619_v21  ;;  %v8589_v43 = vpop.f32.mrb[29].mxu1 }
 0x628   : > { %v10698_v44 = vadd.f32 %v10697_v8, %v8589_v43  ;;  %v10620_v6 = vpop.f32.mrb[30].mxu1 }
 0x629   : > { %8714 = vst [vmem:[%s13528_s21 + $0x70] sm:$0xff] %v10696_v59  ;;  %v10700_v17 = vadd.f32 %v10699_v33, %v10620_v6  ;;  %v8592_v30 = vpop.f32.mrb[31].mxu1 }
 0x62a   : > { %8712 = vst [vmem:[%s13528_s21 + $0x60] sm:$0xff] %v10698_v44  ;;  %v10702_v4 = vadd.f32 %v10701_v45, %v8592_v30 }
 0x62b   : > { %8715 = vst [vmem:[%s13528_s21 + $0x78] sm:$0xff] %v10700_v17 }
 0x62c   : > { %8713 = vst [vmem:[%s13528_s21 + $0x68] sm:$0xff] %v10702_v4 }
 0x62e   : > { %v10623_v29 = vpop.f32.mrb[0].mxu1 }
 0x62f   : > { %v10704_v50 = vadd.f32 %v10703_v34, %v10623_v29  ;;  %v8605_v13 = vpop.f32.mrb[1].mxu1 }
 0x630   : > { %v10706_v14 = vadd.f32 %v10705_v39, %v8605_v13  ;;  %v10624_v11 = vpop.f32.mrb[2].mxu1 }
 0x631   : > { %8718 = vst [vmem:[%s13528_s21 + $0x90] sm:$0xff] %v10704_v50  ;;  %v10708_v40 = vadd.f32 %v10707_v1, %v10624_v11  ;;  %v8608_v0 = vpop.f32.mrb[3].mxu1 }
 0x632   : > { %8716 = vst [vmem:[%s13528_s21 + $0x80] sm:$0xff] %v10706_v14  ;;  %v10710_v63 = vadd.f32 %v10709_v10, %v8608_v0 }
 0x633   : > { %8719 = vst [vmem:[%s13528_s21 + $0x98] sm:$0xff] %v10708_v40 }
 0x634   : > { %8717 = vst [vmem:[%s13528_s21 + $0x88] sm:$0xff] %v10710_v63 }
 0x636   : > { %v10627_v35 = vpop.f32.mrb[4].mxu1 }
 0x637   : > { %v10712_v25 = vadd.f32 %v10711_v57, %v10627_v35  ;;  %v8621_v18 = vpop.f32.mrb[5].mxu1 }
 0x638   : > { %v10714_v46 = vadd.f32 %v10713_v36, %v8621_v18  ;;  %v10628_v53 = vpop.f32.mrb[6].mxu1 }
 0x639   : > { %8722 = vst [vmem:[%s13528_s21 + $0xb0] sm:$0xff] %v10712_v25  ;;  %v10716_v22 = vadd.f32 %v10715_v31, %v10628_v53  ;;  %v8624_v62 = vpop.f32.mrb[7].mxu1 }
 0x63a   : > { %8720 = vst [vmem:[%s13528_s21 + $0xa0] sm:$0xff] %v10714_v46  ;;  %v10718_v47 = vadd.f32 %v10717_v48, %v8624_v62 }
 0x63b   : > { %8723 = vst [vmem:[%s13528_s21 + $0xb8] sm:$0xff] %v10716_v22 }
 0x63c   : > { %8721 = vst [vmem:[%s13528_s21 + $0xa8] sm:$0xff] %v10718_v47 }
 0x63e   : > { %v10631_v7 = vpop.f32.mrb[8].mxu1 }
 0x63f   : > { %v10720_v52 = vadd.f32 %v10719_v42, %v10631_v7  ;;  %v8637_v55 = vpop.f32.mrb[9].mxu1 }
 0x640   : > { %v10722_v5 = vadd.f32 %v10721_v37, %v8637_v55  ;;  %v10632_v28 = vpop.f32.mrb[10].mxu1 }
 0x641   : > { %8726 = vst [vmem:[%s13528_s21 + $0xd0] sm:$0xff] %v10720_v52  ;;  %v10724_v20 = vadd.f32 %v10723_v24, %v10632_v28  ;;  %v8640_v51 = vpop.f32.mrb[11].mxu1 }
 0x642   : > { %8724 = vst [vmem:[%s13528_s21 + $0xc0] sm:$0xff] %v10722_v5  ;;  %v10726_v19 = vadd.f32 %v10725_v56, %v8640_v51 }
 0x643   : > { %8727 = vst [vmem:[%s13528_s21 + $0xd8] sm:$0xff] %v10724_v20 }
 0x644   : > { %8725 = vst [vmem:[%s13528_s21 + $0xc8] sm:$0xff] %v10726_v19 }
 0x646   : > { %v10635_v38 = vpop.f32.mrb[12].mxu1 }
 0x647   : > { %v10728_v61 = vadd.f32 %v10727_v49, %v10635_v38  ;;  %v8653_v54 = vpop.f32.mrb[13].mxu1 }
 0x648   : > { %v10730_v3 = vadd.f32 %v10729_v32, %v8653_v54  ;;  %v10636_v41 = vpop.f32.mrb[14].mxu1 }
 0x649   : > { %8730 = vst [vmem:[%s13528_s21 + $0xf0] sm:$0xff] %v10728_v61  ;;  %v10732_v16 = vadd.f32 %v10731_v60, %v10636_v41  ;;  %v8656_v26 = vpop.f32.mrb[15].mxu1 }
 0x64a   : > { %8728 = vst [vmem:[%s13528_s21 + $0xe0] sm:$0xff] %v10730_v3  ;;  %v10734_v15 = vadd.f32 %v10733_v9, %v8656_v26 }
 0x64b   : > { %8731 = vst [vmem:[%s13528_s21 + $0xf8] sm:$0xff] %v10732_v16 }
 0x64c   : > { %8729 = vst [vmem:[%s13528_s21 + $0xe8] sm:$0xff] %v10734_v15 }
 0x64d PF: > { %s18_s27 = sadd.s32 1, %s11547_s27  }
 0x64e   : > { %p15_p4 = scmp.ge.s32.totalorder %s18_s27, 4  }
 0x650   :  { %17 = sbr.rel (!%p15_p4) target bundleno = 1 (0x1), region = 112 }

</bundles_post_ra>
